<compile_context>
chip_gen: v7x
topology: tpu7x:2x2x1
jax: 0.10.0
libtpu: 0.0.40
codegen_flags: <defaults>
</compile_context>

<pallas_src>
import jax
import jax.numpy as jnp
from jax import lax
from jax.experimental import pallas as pl
from jax.experimental.pallas import tpu as pltpu

# ---- model geometry (fixed by the PyTorch module: MNIST 28x28) ----
H = W = 28          # input spatial
K = 5               # conv kernel size
C1 = 32             # conv1 out channels
C2 = 32             # conv2 out channels
OW1 = H - K + 1     # 24  conv1 output spatial
P1 = OW1 // 2       # 12  pool1 output spatial
OW2 = P1 - K + 1    # 8   conv2 output spatial
P2 = OW2 // 2       # 4   pool2 output spatial
FC1_IN = C2 * P2 * P2   # 512
FC1_OUT = 128
NCLASS = 10


# ------------------------------ fused kernel ----------------------------------
def _mnist_fused_kernel(x_ref, s1_ref, b1_ref, rs1_ref, cs1_ref,
                        s2_ref, b2_ref, rs2_ref, cs2_ref,
                        w1_ref, bf1_ref, w2_ref, bf2_ref, o_ref):
    f32, bf16 = jnp.float32, jnp.bfloat16

    # ----- conv1 (5x5 valid) + bias + ReLU; output layout (24, 24*32) -----
    # y1[oh, ow*32+c] = sum_kh  x[oh+kh, :] @ S1[kh]   (kw/Cin folded into S1)
    y1 = None
    for kh in range(K):
        xs = x_ref[pl.ds(kh, OW1), :].astype(bf16)                      # (24, 28)
        t = jnp.dot(xs, s1_ref[kh], preferred_element_type=f32)          # (24, 768)
        y1 = t if y1 is None else y1 + t
    y1 = jnp.maximum(y1 + b1_ref[...], 0.0)

    # ----- maxpool1 2x2/2: row-pair max then lane(=W)-pair max via 0/1 matmuls -----
    y1b = y1.astype(bf16)
    hr = jnp.maximum(jnp.dot(rs1_ref[0], y1b, preferred_element_type=f32),
                     jnp.dot(rs1_ref[1], y1b, preferred_element_type=f32))   # (12, 768)
    hrb = hr.astype(bf16)
    p1 = jnp.maximum(jnp.dot(hrb, cs1_ref[0], preferred_element_type=f32),
                     jnp.dot(hrb, cs1_ref[1], preferred_element_type=f32))   # (12, 384)

    # ----- conv2 (5x5 valid, 32->32) + bias + ReLU; output layout (8, 8*32) -----
    y2 = None
    for kh in range(K):
        ps = p1[kh:kh + OW2, :].astype(bf16)                             # (8, 384)
        t = jnp.dot(ps, s2_ref[kh], preferred_element_type=f32)          # (8, 256)
        y2 = t if y2 is None else y2 + t
    y2 = jnp.maximum(y2 + b2_ref[...], 0.0)

    # ----- maxpool2 -----
    y2b = y2.astype(bf16)
    hr2 = jnp.maximum(jnp.dot(rs2_ref[0], y2b, preferred_element_type=f32),
                      jnp.dot(rs2_ref[1], y2b, preferred_element_type=f32))  # (4, 256)
    hr2b = hr2.astype(bf16)
    p2 = jnp.maximum(jnp.dot(hr2b, cs2_ref[0], preferred_element_type=f32),
                     jnp.dot(hr2b, cs2_ref[1], preferred_element_type=f32))  # (4, 128)

    # ----- fc1 + ReLU (torch's NCHW flatten permutation baked into w1) -----
    h1 = bf1_ref[...]                                                    # (1, 128) f32
    for hh in range(P2):
        h1 = h1 + jnp.dot(p2[hh:hh + 1, :].astype(bf16), w1_ref[hh],
                          preferred_element_type=f32)                    # (1, 128)
    h1 = jnp.maximum(h1, 0.0)

    # ----- fc2 + log_softmax -----
    logits = jnp.dot(h1.astype(bf16), w2_ref[...],
                     preferred_element_type=f32) + bf2_ref[...]          # (1, 10)
    m = jnp.max(logits, axis=-1, keepdims=True)
    s = logits - m
    lse = jnp.log(jnp.sum(jnp.exp(s), axis=-1, keepdims=True))
    o_ref[...] = s - lse


# --------------------------- parameter preparation -----------------------------
def _band_conv_matrix(w_hwio, n_in_w, n_out_w):
    """Per-kh structured conv matrices S[kh, wi*Cin+ci, ow*Cout+co] for a valid conv
    whose W axis is folded (together with channels) into the lane dimension."""
    KH, KW, Cin, Cout = w_hwio.shape
    ow = jnp.arange(n_out_w)
    wi = jnp.arange(n_in_w)
    kw = wi[None, :] - ow[:, None]                       # (n_out_w, n_in_w)
    valid = (kw >= 0) & (kw < KW)
    s = w_hwio[:, jnp.clip(kw, 0, KW - 1), :, :]         # (KH, n_out_w, n_in_w, Cin, Cout)
    s = jnp.where(valid[None, :, :, None, None], s, 0.0)
    s = jnp.transpose(s, (0, 2, 3, 1, 4))                # (KH, n_in_w, Cin, n_out_w, Cout)
    return s.reshape(KH, n_in_w * Cin, n_out_w * Cout)


def _pool_row_select(n_out):
    """(2, n_out, 2*n_out) exact 0/1 even/odd row-selection matrices."""
    r = jnp.arange(2 * n_out)[None, :]
    p = jnp.arange(n_out)[:, None]
    return jnp.stack([(r == 2 * p).astype(jnp.float32),
                      (r == 2 * p + 1).astype(jnp.float32)], axis=0)


def _pool_col_select(n_out_w, c):
    """(2, 2*n_out_w*c, n_out_w*c) even/odd selection over the W part of a (W*C) lane dim."""
    w = jnp.arange(2 * n_out_w)[:, None]
    p = jnp.arange(n_out_w)[None, :]
    eye = jnp.eye(c, dtype=jnp.float32)

    def expand(m):  # m: (2*n_out_w, n_out_w) -> (2*n_out_w*c, n_out_w*c)
        return (m[:, None, :, None] * eye[None, :, None, :]).reshape(2 * n_out_w * c,
                                                                     n_out_w * c)

    even = (w == 2 * p).astype(jnp.float32)
    odd = (w == 2 * p + 1).astype(jnp.float32)
    return jnp.stack([expand(even), expand(odd)], axis=0)


def init_params(key):
    """Parameters in native PyTorch layouts."""
    ks = jax.random.split(key, 8)
    return {
        "conv1_w": jax.random.normal(ks[0], (C1, 1, K, K), jnp.float32) * 0.20,
        "conv1_b": jax.random.normal(ks[1], (C1,), jnp.float32) * 0.10,
        "conv2_w": jax.random.normal(ks[2], (C2, C1, K, K), jnp.float32) * 0.05,
        "conv2_b": jax.random.normal(ks[3], (C2,), jnp.float32) * 0.10,
        "fc1_w": jax.random.normal(ks[4], (FC1_OUT, FC1_IN), jnp.float32) * 0.05,
        "fc1_b": jax.random.normal(ks[5], (FC1_OUT,), jnp.float32) * 0.10,
        "fc2_w": jax.random.normal(ks[6], (NCLASS, FC1_OUT), jnp.float32) * 0.08,
        "fc2_b": jax.random.normal(ks[7], (NCLASS,), jnp.float32) * 0.10,
    }


def prepare_kernel_params(p):
    """One-time prep: build structured conv matrices, pooling selectors, and a
    flatten-permuted fc1 weight.  Matmul operands stored in bf16."""
    bf16 = jnp.bfloat16
    w1_hwio = jnp.transpose(p["conv1_w"], (2, 3, 1, 0))        # (5,5,1,32)
    w2_hwio = jnp.transpose(p["conv2_w"], (2, 3, 1, 0))        # (5,5,32,32)
    s1 = _band_conv_matrix(w1_hwio, W, OW1)                    # (5, 28, 768)
    s2 = _band_conv_matrix(w2_hwio, P1, OW2)                   # (5, 384, 256)
    # fc1: torch flatten index is c*16 + h*4 + w; re-lay as [h][w*32+c, out].
    w1p = p["fc1_w"].reshape(FC1_OUT, C2, P2, P2)              # (o, c, h, w)
    w1p = jnp.transpose(w1p, (2, 3, 1, 0)).reshape(P2, P2 * C2, FC1_OUT)  # (4,128,128)
    return {
        "s1": s1.astype(bf16),
        "b1": jnp.tile(p["conv1_b"], OW1).reshape(1, OW1 * C1),        # (1, 768) f32
        "rs1": _pool_row_select(P1).astype(bf16),                       # (2, 12, 24)
        "cs1": _pool_col_select(P1, C1).astype(bf16),                   # (2, 768, 384)
        "s2": s2.astype(bf16),
        "b2": jnp.tile(p["conv2_b"], OW2).reshape(1, OW2 * C2),         # (1, 256) f32
        "rs2": _pool_row_select(P2).astype(bf16),                       # (2, 4, 8)
        "cs2": _pool_col_select(P2, C2).astype(bf16),                   # (2, 256, 128)
        "w1": w1p.astype(bf16),                                         # (4, 128, 128)
        "bf1": p["fc1_b"].reshape(1, FC1_OUT),                          # (1, 128) f32
        "w2": p["fc2_w"].T.astype(bf16),                                # (128, 10)
        "bf2": p["fc2_b"].reshape(1, NCLASS),                           # (1, 10) f32
    }


# ---------------------------------- forward ------------------------------------
@jax.jit
def mnist_small_net(x_nchw, kp):
    N = x_nchw.shape[0]
    x = x_nchw.reshape(N, H, W).astype(jnp.float32)            # Cin=1 squeezed
    vmem = pl.BlockSpec(memory_space=pltpu.MemorySpace.VMEM)   # whole array resident in VMEM
    out = pl.pallas_call(
        _mnist_fused_kernel,
        out_shape=jax.ShapeDtypeStruct((N, 1, NCLASS), jnp.float32),
        grid=(N,),
        in_specs=[pl.BlockSpec((None, H, W), lambda n: (n, 0, 0))] + [vmem] * 12,
        out_specs=pl.BlockSpec((None, 1, NCLASS), lambda n: (n, 0, 0)),
        compiler_params=pltpu.CompilerParams(dimension_semantics=("parallel",)),
    )(x, kp["s1"], kp["b1"], kp["rs1"], kp["cs1"],
      kp["s2"], kp["b2"], kp["rs2"], kp["cs2"],
      kp["w1"], kp["bf1"], kp["w2"], kp["bf2"])
    return out.reshape(N, NCLASS)


# ------------------------- pure-JAX reference (f32) -----------------------------
def reference_forward(x_nchw, p):
    dn = ("NCHW", "OIHW", "NCHW")
    y = lax.conv_general_dilated(x_nchw, p["conv1_w"], (1, 1), "VALID",
                                 dimension_numbers=dn)
    y = jax.nn.relu(y + p["conv1_b"][None, :, None, None])
    y = lax.reduce_window(y, -jnp.inf, lax.max, (1, 1, 2, 2), (1, 1, 2, 2), "VALID")
    y = lax.conv_general_dilated(y, p["conv2_w"], (1, 1), "VALID",
                                 dimension_numbers=dn)
    y = jax.nn.relu(y + p["conv2_b"][None, :, None, None])
    y = lax.reduce_window(y, -jnp.inf, lax.max, (1, 1, 2, 2), (1, 1, 2, 2), "VALID")
    feat = y.reshape(y.shape[0], -1)                           # torch (C,H,W) flatten order
    h = jax.nn.relu(feat @ p["fc1_w"].T + p["fc1_b"])
    logits = h @ p["fc2_w"].T + p["fc2_b"]
    return jax.nn.log_softmax(logits, axis=-1)


if __name__ == "__main__":
    key = jax.random.PRNGKey(0)
    k_param, k_x = jax.random.split(key)
    params = init_params(k_param)
    kparams = prepare_kernel_params(params)
    # MNIST-sized input (28x28 required by the fc1 = 4*4*32 contract), batch = 2.
    x = jax.random.normal(k_x, (2, 1, H, W), jnp.float32)

    out = jax.block_until_ready(mnist_small_net(x, kparams))
    assert out.shape == (2, NCLASS) and out.dtype == jnp.float32
    assert bool(jnp.all(jnp.isfinite(out)))
    # log_softmax rows must (log-)normalize to ~0
    assert bool(jnp.all(jnp.abs(jax.nn.logsumexp(out, axis=1)) < 1e-3))
    # Structural check vs a pure-JAX reference.  The reference uses bf16-rounded
    # weights/input (kernel matmul operands are bf16) so only intermediate
    # activation rounding differs -> loose-but-meaningful tolerance.
    q = lambda a: a.astype(jnp.bfloat16).astype(jnp.float32)
    params_q = jax.tree_util.tree_map(q, params)
    ref = reference_forward(q(x), params_q)
    assert bool(jnp.max(jnp.abs(out - ref)) < 0.25)
    print("KERNEL_OK")
</pallas_src>

<mosaic_0001>
module attributes {stable_mosaic.version = 11 : i64} {
  func.func @_mnist_fused_kernel(%arg0: i32, %arg1: memref<1x28x28xf32, #tpu.memory_space<vmem>>, %arg2: memref<5x28x768xbf16, #tpu.memory_space<vmem>>, %arg3: memref<1x768xf32, #tpu.memory_space<vmem>>, %arg4: memref<2x12x24xbf16, #tpu.memory_space<vmem>>, %arg5: memref<2x768x384xbf16, #tpu.memory_space<vmem>>, %arg6: memref<5x384x256xbf16, #tpu.memory_space<vmem>>, %arg7: memref<1x256xf32, #tpu.memory_space<vmem>>, %arg8: memref<2x4x8xbf16, #tpu.memory_space<vmem>>, %arg9: memref<2x256x128xbf16, #tpu.memory_space<vmem>>, %arg10: memref<4x128x128xbf16, #tpu.memory_space<vmem>>, %arg11: memref<1x128xf32, #tpu.memory_space<vmem>>, %arg12: memref<128x10xbf16, #tpu.memory_space<vmem>>, %arg13: memref<1x10xf32, #tpu.memory_space<vmem>>, %arg14: memref<1x1x10xf32, #tpu.memory_space<vmem>>) attributes {dimension_semantics = [#tpu.dimension_semantics<parallel>], iteration_bounds = array<i64: 2>, scalar_prefetch = 0 : i64, scratch_operands = 0 : i64, tpu.core_type = #tpu.core_type<tc>, window_params = [{transform_indices = @transform_0, window_bounds = array<i64: 1, 28, 28>}, {pipeline_mode = #tpu.pipeline_mode<synchronous>, transform_indices = @transform_1, window_bounds = array<i64: 5, 28, 768>}, {pipeline_mode = #tpu.pipeline_mode<synchronous>, transform_indices = @transform_2, window_bounds = array<i64: 1, 768>}, {pipeline_mode = #tpu.pipeline_mode<synchronous>, transform_indices = @transform_3, window_bounds = array<i64: 2, 12, 24>}, {pipeline_mode = #tpu.pipeline_mode<synchronous>, transform_indices = @transform_4, window_bounds = array<i64: 2, 768, 384>}, {pipeline_mode = #tpu.pipeline_mode<synchronous>, transform_indices = @transform_5, window_bounds = array<i64: 5, 384, 256>}, {pipeline_mode = #tpu.pipeline_mode<synchronous>, transform_indices = @transform_6, window_bounds = array<i64: 1, 256>}, {pipeline_mode = #tpu.pipeline_mode<synchronous>, transform_indices = @transform_7, window_bounds = array<i64: 2, 4, 8>}, {pipeline_mode = #tpu.pipeline_mode<synchronous>, transform_indices = @transform_8, window_bounds = array<i64: 2, 256, 128>}, {pipeline_mode = #tpu.pipeline_mode<synchronous>, transform_indices = @transform_9, window_bounds = array<i64: 4, 128, 128>}, {pipeline_mode = #tpu.pipeline_mode<synchronous>, transform_indices = @transform_10, window_bounds = array<i64: 1, 128>}, {pipeline_mode = #tpu.pipeline_mode<synchronous>, transform_indices = @transform_11, window_bounds = array<i64: 128, 10>}, {pipeline_mode = #tpu.pipeline_mode<synchronous>, transform_indices = @transform_12, window_bounds = array<i64: 1, 10>}, {transform_indices = @transform_13, window_bounds = array<i64: 1, 1, 10>}]} {
    %c0 = arith.constant 0 : index
    %c0_0 = arith.constant 0 : index
    %c0_1 = arith.constant 0 : index
    %0 = vector.load %arg1[%c0, %c0_0, %c0_1] : memref<1x28x28xf32, #tpu.memory_space<vmem>>, vector<1x24x28xf32>
    %1 = vector.shape_cast %0 : vector<1x24x28xf32> to vector<24x28xf32>
    %2 = arith.truncf %1 : vector<24x28xf32> to vector<24x28xbf16>
    %c0_2 = arith.constant 0 : index
    %c0_3 = arith.constant 0 : index
    %c0_4 = arith.constant 0 : index
    %3 = vector.load %arg2[%c0_2, %c0_3, %c0_4] : memref<5x28x768xbf16, #tpu.memory_space<vmem>>, vector<1x28x768xbf16>
    %4 = vector.shape_cast %3 : vector<1x28x768xbf16> to vector<28x768xbf16>
    %cst = arith.constant dense<0.000000e+00> : vector<24x768xf32>
    %5 = tpu.matmul %2, %4, %cst {dimension_numbers = #tpu.dot_dimension_numbers<[1], [0], [0], [1], [0, 0, 1, 1], [], []>} : vector<24x28xbf16>, vector<28x768xbf16>, vector<24x768xf32> -> vector<24x768xf32>
    %c0_5 = arith.constant 0 : index
    %c1 = arith.constant 1 : index
    %c0_6 = arith.constant 0 : index
    %6 = vector.load %arg1[%c0_5, %c1, %c0_6] : memref<1x28x28xf32, #tpu.memory_space<vmem>>, vector<1x24x28xf32>
    %7 = vector.shape_cast %6 : vector<1x24x28xf32> to vector<24x28xf32>
    %8 = arith.truncf %7 : vector<24x28xf32> to vector<24x28xbf16>
    %c1_7 = arith.constant 1 : index
    %c0_8 = arith.constant 0 : index
    %c0_9 = arith.constant 0 : index
    %9 = vector.load %arg2[%c1_7, %c0_8, %c0_9] : memref<5x28x768xbf16, #tpu.memory_space<vmem>>, vector<1x28x768xbf16>
    %10 = vector.shape_cast %9 : vector<1x28x768xbf16> to vector<28x768xbf16>
    %cst_10 = arith.constant dense<0.000000e+00> : vector<24x768xf32>
    %11 = tpu.matmul %8, %10, %cst_10 {dimension_numbers = #tpu.dot_dimension_numbers<[1], [0], [0], [1], [0, 0, 1, 1], [], []>} : vector<24x28xbf16>, vector<28x768xbf16>, vector<24x768xf32> -> vector<24x768xf32>
    %12 = arith.addf %5, %11 : vector<24x768xf32>
    %c0_11 = arith.constant 0 : index
    %c2 = arith.constant 2 : index
    %c0_12 = arith.constant 0 : index
    %13 = vector.load %arg1[%c0_11, %c2, %c0_12] : memref<1x28x28xf32, #tpu.memory_space<vmem>>, vector<1x24x28xf32>
    %14 = vector.shape_cast %13 : vector<1x24x28xf32> to vector<24x28xf32>
    %15 = arith.truncf %14 : vector<24x28xf32> to vector<24x28xbf16>
    %c2_13 = arith.constant 2 : index
    %c0_14 = arith.constant 0 : index
    %c0_15 = arith.constant 0 : index
    %16 = vector.load %arg2[%c2_13, %c0_14, %c0_15] : memref<5x28x768xbf16, #tpu.memory_space<vmem>>, vector<1x28x768xbf16>
    %17 = vector.shape_cast %16 : vector<1x28x768xbf16> to vector<28x768xbf16>
    %cst_16 = arith.constant dense<0.000000e+00> : vector<24x768xf32>
    %18 = tpu.matmul %15, %17, %cst_16 {dimension_numbers = #tpu.dot_dimension_numbers<[1], [0], [0], [1], [0, 0, 1, 1], [], []>} : vector<24x28xbf16>, vector<28x768xbf16>, vector<24x768xf32> -> vector<24x768xf32>
    %19 = arith.addf %12, %18 : vector<24x768xf32>
    %c0_17 = arith.constant 0 : index
    %c3 = arith.constant 3 : index
    %c0_18 = arith.constant 0 : index
    %20 = vector.load %arg1[%c0_17, %c3, %c0_18] : memref<1x28x28xf32, #tpu.memory_space<vmem>>, vector<1x24x28xf32>
    %21 = vector.shape_cast %20 : vector<1x24x28xf32> to vector<24x28xf32>
    %22 = arith.truncf %21 : vector<24x28xf32> to vector<24x28xbf16>
    %c3_19 = arith.constant 3 : index
    %c0_20 = arith.constant 0 : index
    %c0_21 = arith.constant 0 : index
    %23 = vector.load %arg2[%c3_19, %c0_20, %c0_21] : memref<5x28x768xbf16, #tpu.memory_space<vmem>>, vector<1x28x768xbf16>
    %24 = vector.shape_cast %23 : vector<1x28x768xbf16> to vector<28x768xbf16>
    %cst_22 = arith.constant dense<0.000000e+00> : vector<24x768xf32>
    %25 = tpu.matmul %22, %24, %cst_22 {dimension_numbers = #tpu.dot_dimension_numbers<[1], [0], [0], [1], [0, 0, 1, 1], [], []>} : vector<24x28xbf16>, vector<28x768xbf16>, vector<24x768xf32> -> vector<24x768xf32>
    %26 = arith.addf %19, %25 : vector<24x768xf32>
    %c0_23 = arith.constant 0 : index
    %c4 = arith.constant 4 : index
    %c0_24 = arith.constant 0 : index
    %27 = vector.load %arg1[%c0_23, %c4, %c0_24] : memref<1x28x28xf32, #tpu.memory_space<vmem>>, vector<1x24x28xf32>
    %28 = vector.shape_cast %27 : vector<1x24x28xf32> to vector<24x28xf32>
    %29 = arith.truncf %28 : vector<24x28xf32> to vector<24x28xbf16>
    %c4_25 = arith.constant 4 : index
    %c0_26 = arith.constant 0 : index
    %c0_27 = arith.constant 0 : index
    %30 = vector.load %arg2[%c4_25, %c0_26, %c0_27] : memref<5x28x768xbf16, #tpu.memory_space<vmem>>, vector<1x28x768xbf16>
    %31 = vector.shape_cast %30 : vector<1x28x768xbf16> to vector<28x768xbf16>
    %cst_28 = arith.constant dense<0.000000e+00> : vector<24x768xf32>
    %32 = tpu.matmul %29, %31, %cst_28 {dimension_numbers = #tpu.dot_dimension_numbers<[1], [0], [0], [1], [0, 0, 1, 1], [], []>} : vector<24x28xbf16>, vector<28x768xbf16>, vector<24x768xf32> -> vector<24x768xf32>
    %33 = arith.addf %26, %32 : vector<24x768xf32>
    %c0_29 = arith.constant 0 : index
    %c0_30 = arith.constant 0 : index
    %34 = vector.load %arg3[%c0_29, %c0_30] : memref<1x768xf32, #tpu.memory_space<vmem>>, vector<1x768xf32>
    %35 = vector.broadcast %34 : vector<1x768xf32> to vector<24x768xf32>
    %36 = arith.addf %33, %35 : vector<24x768xf32>
    %cst_31 = arith.constant 0.000000e+00 : f32
    %37 = vector.broadcast %cst_31 : f32 to vector<24x768xf32>
    %38 = arith.maximumf %36, %37 : vector<24x768xf32>
    %39 = arith.truncf %38 : vector<24x768xf32> to vector<24x768xbf16>
    %c0_32 = arith.constant 0 : index
    %c0_33 = arith.constant 0 : index
    %c0_34 = arith.constant 0 : index
    %40 = vector.load %arg4[%c0_32, %c0_33, %c0_34] : memref<2x12x24xbf16, #tpu.memory_space<vmem>>, vector<1x12x24xbf16>
    %41 = vector.shape_cast %40 : vector<1x12x24xbf16> to vector<12x24xbf16>
    %cst_35 = arith.constant dense<0.000000e+00> : vector<12x768xf32>
    %42 = tpu.matmul %41, %39, %cst_35 {dimension_numbers = #tpu.dot_dimension_numbers<[1], [0], [0], [1], [0, 0, 1, 1], [], []>} : vector<12x24xbf16>, vector<24x768xbf16>, vector<12x768xf32> -> vector<12x768xf32>
    %c1_36 = arith.constant 1 : index
    %c0_37 = arith.constant 0 : index
    %c0_38 = arith.constant 0 : index
    %43 = vector.load %arg4[%c1_36, %c0_37, %c0_38] : memref<2x12x24xbf16, #tpu.memory_space<vmem>>, vector<1x12x24xbf16>
    %44 = vector.shape_cast %43 : vector<1x12x24xbf16> to vector<12x24xbf16>
    %cst_39 = arith.constant dense<0.000000e+00> : vector<12x768xf32>
    %45 = tpu.matmul %44, %39, %cst_39 {dimension_numbers = #tpu.dot_dimension_numbers<[1], [0], [0], [1], [0, 0, 1, 1], [], []>} : vector<12x24xbf16>, vector<24x768xbf16>, vector<12x768xf32> -> vector<12x768xf32>
    %46 = arith.maximumf %42, %45 : vector<12x768xf32>
    %47 = arith.truncf %46 : vector<12x768xf32> to vector<12x768xbf16>
    %c0_40 = arith.constant 0 : index
    %c0_41 = arith.constant 0 : index
    %c0_42 = arith.constant 0 : index
    %48 = vector.load %arg5[%c0_40, %c0_41, %c0_42] : memref<2x768x384xbf16, #tpu.memory_space<vmem>>, vector<1x768x384xbf16>
    %49 = vector.shape_cast %48 : vector<1x768x384xbf16> to vector<768x384xbf16>
    %cst_43 = arith.constant dense<0.000000e+00> : vector<12x384xf32>
    %50 = tpu.matmul %47, %49, %cst_43 {dimension_numbers = #tpu.dot_dimension_numbers<[1], [0], [0], [1], [0, 0, 1, 1], [], []>} : vector<12x768xbf16>, vector<768x384xbf16>, vector<12x384xf32> -> vector<12x384xf32>
    %c1_44 = arith.constant 1 : index
    %c0_45 = arith.constant 0 : index
    %c0_46 = arith.constant 0 : index
    %51 = vector.load %arg5[%c1_44, %c0_45, %c0_46] : memref<2x768x384xbf16, #tpu.memory_space<vmem>>, vector<1x768x384xbf16>
    %52 = vector.shape_cast %51 : vector<1x768x384xbf16> to vector<768x384xbf16>
    %cst_47 = arith.constant dense<0.000000e+00> : vector<12x384xf32>
    %53 = tpu.matmul %47, %52, %cst_47 {dimension_numbers = #tpu.dot_dimension_numbers<[1], [0], [0], [1], [0, 0, 1, 1], [], []>} : vector<12x768xbf16>, vector<768x384xbf16>, vector<12x384xf32> -> vector<12x384xf32>
    %54 = arith.maximumf %50, %53 : vector<12x384xf32>
    %55 = vector.extract_strided_slice %54 {offsets = [0, 0], sizes = [8, 384], strides = [1, 1]} : vector<12x384xf32> to vector<8x384xf32>
    %56 = arith.truncf %55 : vector<8x384xf32> to vector<8x384xbf16>
    %c0_48 = arith.constant 0 : index
    %c0_49 = arith.constant 0 : index
    %c0_50 = arith.constant 0 : index
    %57 = vector.load %arg6[%c0_48, %c0_49, %c0_50] : memref<5x384x256xbf16, #tpu.memory_space<vmem>>, vector<1x384x256xbf16>
    %58 = vector.shape_cast %57 : vector<1x384x256xbf16> to vector<384x256xbf16>
    %cst_51 = arith.constant dense<0.000000e+00> : vector<8x256xf32>
    %59 = tpu.matmul %56, %58, %cst_51 {dimension_numbers = #tpu.dot_dimension_numbers<[1], [0], [0], [1], [0, 0, 1, 1], [], []>} : vector<8x384xbf16>, vector<384x256xbf16>, vector<8x256xf32> -> vector<8x256xf32>
    %60 = vector.extract_strided_slice %54 {offsets = [1, 0], sizes = [8, 384], strides = [1, 1]} : vector<12x384xf32> to vector<8x384xf32>
    %61 = arith.truncf %60 : vector<8x384xf32> to vector<8x384xbf16>
    %c1_52 = arith.constant 1 : index
    %c0_53 = arith.constant 0 : index
    %c0_54 = arith.constant 0 : index
    %62 = vector.load %arg6[%c1_52, %c0_53, %c0_54] : memref<5x384x256xbf16, #tpu.memory_space<vmem>>, vector<1x384x256xbf16>
    %63 = vector.shape_cast %62 : vector<1x384x256xbf16> to vector<384x256xbf16>
    %cst_55 = arith.constant dense<0.000000e+00> : vector<8x256xf32>
    %64 = tpu.matmul %61, %63, %cst_55 {dimension_numbers = #tpu.dot_dimension_numbers<[1], [0], [0], [1], [0, 0, 1, 1], [], []>} : vector<8x384xbf16>, vector<384x256xbf16>, vector<8x256xf32> -> vector<8x256xf32>
    %65 = arith.addf %59, %64 : vector<8x256xf32>
    %66 = vector.extract_strided_slice %54 {offsets = [2, 0], sizes = [8, 384], strides = [1, 1]} : vector<12x384xf32> to vector<8x384xf32>
    %67 = arith.truncf %66 : vector<8x384xf32> to vector<8x384xbf16>
    %c2_56 = arith.constant 2 : index
    %c0_57 = arith.constant 0 : index
    %c0_58 = arith.constant 0 : index
    %68 = vector.load %arg6[%c2_56, %c0_57, %c0_58] : memref<5x384x256xbf16, #tpu.memory_space<vmem>>, vector<1x384x256xbf16>
    %69 = vector.shape_cast %68 : vector<1x384x256xbf16> to vector<384x256xbf16>
    %cst_59 = arith.constant dense<0.000000e+00> : vector<8x256xf32>
    %70 = tpu.matmul %67, %69, %cst_59 {dimension_numbers = #tpu.dot_dimension_numbers<[1], [0], [0], [1], [0, 0, 1, 1], [], []>} : vector<8x384xbf16>, vector<384x256xbf16>, vector<8x256xf32> -> vector<8x256xf32>
    %71 = arith.addf %65, %70 : vector<8x256xf32>
    %72 = vector.extract_strided_slice %54 {offsets = [3, 0], sizes = [8, 384], strides = [1, 1]} : vector<12x384xf32> to vector<8x384xf32>
    %73 = arith.truncf %72 : vector<8x384xf32> to vector<8x384xbf16>
    %c3_60 = arith.constant 3 : index
    %c0_61 = arith.constant 0 : index
    %c0_62 = arith.constant 0 : index
    %74 = vector.load %arg6[%c3_60, %c0_61, %c0_62] : memref<5x384x256xbf16, #tpu.memory_space<vmem>>, vector<1x384x256xbf16>
    %75 = vector.shape_cast %74 : vector<1x384x256xbf16> to vector<384x256xbf16>
    %cst_63 = arith.constant dense<0.000000e+00> : vector<8x256xf32>
    %76 = tpu.matmul %73, %75, %cst_63 {dimension_numbers = #tpu.dot_dimension_numbers<[1], [0], [0], [1], [0, 0, 1, 1], [], []>} : vector<8x384xbf16>, vector<384x256xbf16>, vector<8x256xf32> -> vector<8x256xf32>
    %77 = arith.addf %71, %76 : vector<8x256xf32>
    %78 = vector.extract_strided_slice %54 {offsets = [4, 0], sizes = [8, 384], strides = [1, 1]} : vector<12x384xf32> to vector<8x384xf32>
    %79 = arith.truncf %78 : vector<8x384xf32> to vector<8x384xbf16>
    %c4_64 = arith.constant 4 : index
    %c0_65 = arith.constant 0 : index
    %c0_66 = arith.constant 0 : index
    %80 = vector.load %arg6[%c4_64, %c0_65, %c0_66] : memref<5x384x256xbf16, #tpu.memory_space<vmem>>, vector<1x384x256xbf16>
    %81 = vector.shape_cast %80 : vector<1x384x256xbf16> to vector<384x256xbf16>
    %cst_67 = arith.constant dense<0.000000e+00> : vector<8x256xf32>
    %82 = tpu.matmul %79, %81, %cst_67 {dimension_numbers = #tpu.dot_dimension_numbers<[1], [0], [0], [1], [0, 0, 1, 1], [], []>} : vector<8x384xbf16>, vector<384x256xbf16>, vector<8x256xf32> -> vector<8x256xf32>
    %83 = arith.addf %77, %82 : vector<8x256xf32>
    %c0_68 = arith.constant 0 : index
    %c0_69 = arith.constant 0 : index
    %84 = vector.load %arg7[%c0_68, %c0_69] : memref<1x256xf32, #tpu.memory_space<vmem>>, vector<1x256xf32>
    %85 = vector.broadcast %84 : vector<1x256xf32> to vector<8x256xf32>
    %86 = arith.addf %83, %85 : vector<8x256xf32>
    %cst_70 = arith.constant 0.000000e+00 : f32
    %87 = vector.broadcast %cst_70 : f32 to vector<8x256xf32>
    %88 = arith.maximumf %86, %87 : vector<8x256xf32>
    %89 = arith.truncf %88 : vector<8x256xf32> to vector<8x256xbf16>
    %c0_71 = arith.constant 0 : index
    %c0_72 = arith.constant 0 : index
    %c0_73 = arith.constant 0 : index
    %90 = vector.load %arg8[%c0_71, %c0_72, %c0_73] : memref<2x4x8xbf16, #tpu.memory_space<vmem>>, vector<1x4x8xbf16>
    %91 = vector.shape_cast %90 : vector<1x4x8xbf16> to vector<4x8xbf16>
    %cst_74 = arith.constant dense<0.000000e+00> : vector<4x256xf32>
    %92 = tpu.matmul %91, %89, %cst_74 {dimension_numbers = #tpu.dot_dimension_numbers<[1], [0], [0], [1], [0, 0, 1, 1], [], []>} : vector<4x8xbf16>, vector<8x256xbf16>, vector<4x256xf32> -> vector<4x256xf32>
    %c1_75 = arith.constant 1 : index
    %c0_76 = arith.constant 0 : index
    %c0_77 = arith.constant 0 : index
    %93 = vector.load %arg8[%c1_75, %c0_76, %c0_77] : memref<2x4x8xbf16, #tpu.memory_space<vmem>>, vector<1x4x8xbf16>
    %94 = vector.shape_cast %93 : vector<1x4x8xbf16> to vector<4x8xbf16>
    %cst_78 = arith.constant dense<0.000000e+00> : vector<4x256xf32>
    %95 = tpu.matmul %94, %89, %cst_78 {dimension_numbers = #tpu.dot_dimension_numbers<[1], [0], [0], [1], [0, 0, 1, 1], [], []>} : vector<4x8xbf16>, vector<8x256xbf16>, vector<4x256xf32> -> vector<4x256xf32>
    %96 = arith.maximumf %92, %95 : vector<4x256xf32>
    %97 = arith.truncf %96 : vector<4x256xf32> to vector<4x256xbf16>
    %c0_79 = arith.constant 0 : index
    %c0_80 = arith.constant 0 : index
    %c0_81 = arith.constant 0 : index
    %98 = vector.load %arg9[%c0_79, %c0_80, %c0_81] : memref<2x256x128xbf16, #tpu.memory_space<vmem>>, vector<1x256x128xbf16>
    %99 = vector.shape_cast %98 : vector<1x256x128xbf16> to vector<256x128xbf16>
    %cst_82 = arith.constant dense<0.000000e+00> : vector<4x128xf32>
    %100 = tpu.matmul %97, %99, %cst_82 {dimension_numbers = #tpu.dot_dimension_numbers<[1], [0], [0], [1], [0, 0, 1, 1], [], []>} : vector<4x256xbf16>, vector<256x128xbf16>, vector<4x128xf32> -> vector<4x128xf32>
    %c1_83 = arith.constant 1 : index
    %c0_84 = arith.constant 0 : index
    %c0_85 = arith.constant 0 : index
    %101 = vector.load %arg9[%c1_83, %c0_84, %c0_85] : memref<2x256x128xbf16, #tpu.memory_space<vmem>>, vector<1x256x128xbf16>
    %102 = vector.shape_cast %101 : vector<1x256x128xbf16> to vector<256x128xbf16>
    %cst_86 = arith.constant dense<0.000000e+00> : vector<4x128xf32>
    %103 = tpu.matmul %97, %102, %cst_86 {dimension_numbers = #tpu.dot_dimension_numbers<[1], [0], [0], [1], [0, 0, 1, 1], [], []>} : vector<4x256xbf16>, vector<256x128xbf16>, vector<4x128xf32> -> vector<4x128xf32>
    %104 = arith.maximumf %100, %103 : vector<4x128xf32>
    %c0_87 = arith.constant 0 : index
    %c0_88 = arith.constant 0 : index
    %105 = vector.load %arg11[%c0_87, %c0_88] : memref<1x128xf32, #tpu.memory_space<vmem>>, vector<1x128xf32>
    %106 = vector.extract_strided_slice %104 {offsets = [0, 0], sizes = [1, 128], strides = [1, 1]} : vector<4x128xf32> to vector<1x128xf32>
    %107 = arith.truncf %106 : vector<1x128xf32> to vector<1x128xbf16>
    %c0_89 = arith.constant 0 : index
    %c0_90 = arith.constant 0 : index
    %c0_91 = arith.constant 0 : index
    %108 = vector.load %arg10[%c0_89, %c0_90, %c0_91] : memref<4x128x128xbf16, #tpu.memory_space<vmem>>, vector<1x128x128xbf16>
    %109 = vector.shape_cast %108 : vector<1x128x128xbf16> to vector<128x128xbf16>
    %cst_92 = arith.constant dense<0.000000e+00> : vector<1x128xf32>
    %110 = tpu.matmul %107, %109, %cst_92 {dimension_numbers = #tpu.dot_dimension_numbers<[1], [0], [0], [1], [0, 0, 1, 1], [], []>} : vector<1x128xbf16>, vector<128x128xbf16>, vector<1x128xf32> -> vector<1x128xf32>
    %111 = arith.addf %105, %110 : vector<1x128xf32>
    %112 = vector.extract_strided_slice %104 {offsets = [1, 0], sizes = [1, 128], strides = [1, 1]} : vector<4x128xf32> to vector<1x128xf32>
    %113 = arith.truncf %112 : vector<1x128xf32> to vector<1x128xbf16>
    %c1_93 = arith.constant 1 : index
    %c0_94 = arith.constant 0 : index
    %c0_95 = arith.constant 0 : index
    %114 = vector.load %arg10[%c1_93, %c0_94, %c0_95] : memref<4x128x128xbf16, #tpu.memory_space<vmem>>, vector<1x128x128xbf16>
    %115 = vector.shape_cast %114 : vector<1x128x128xbf16> to vector<128x128xbf16>
    %cst_96 = arith.constant dense<0.000000e+00> : vector<1x128xf32>
    %116 = tpu.matmul %113, %115, %cst_96 {dimension_numbers = #tpu.dot_dimension_numbers<[1], [0], [0], [1], [0, 0, 1, 1], [], []>} : vector<1x128xbf16>, vector<128x128xbf16>, vector<1x128xf32> -> vector<1x128xf32>
    %117 = arith.addf %111, %116 : vector<1x128xf32>
    %118 = vector.extract_strided_slice %104 {offsets = [2, 0], sizes = [1, 128], strides = [1, 1]} : vector<4x128xf32> to vector<1x128xf32>
    %119 = arith.truncf %118 : vector<1x128xf32> to vector<1x128xbf16>
    %c2_97 = arith.constant 2 : index
    %c0_98 = arith.constant 0 : index
    %c0_99 = arith.constant 0 : index
    %120 = vector.load %arg10[%c2_97, %c0_98, %c0_99] : memref<4x128x128xbf16, #tpu.memory_space<vmem>>, vector<1x128x128xbf16>
    %121 = vector.shape_cast %120 : vector<1x128x128xbf16> to vector<128x128xbf16>
    %cst_100 = arith.constant dense<0.000000e+00> : vector<1x128xf32>
    %122 = tpu.matmul %119, %121, %cst_100 {dimension_numbers = #tpu.dot_dimension_numbers<[1], [0], [0], [1], [0, 0, 1, 1], [], []>} : vector<1x128xbf16>, vector<128x128xbf16>, vector<1x128xf32> -> vector<1x128xf32>
    %123 = arith.addf %117, %122 : vector<1x128xf32>
    %124 = vector.extract_strided_slice %104 {offsets = [3, 0], sizes = [1, 128], strides = [1, 1]} : vector<4x128xf32> to vector<1x128xf32>
    %125 = arith.truncf %124 : vector<1x128xf32> to vector<1x128xbf16>
    %c3_101 = arith.constant 3 : index
    %c0_102 = arith.constant 0 : index
    %c0_103 = arith.constant 0 : index
    %126 = vector.load %arg10[%c3_101, %c0_102, %c0_103] : memref<4x128x128xbf16, #tpu.memory_space<vmem>>, vector<1x128x128xbf16>
    %127 = vector.shape_cast %126 : vector<1x128x128xbf16> to vector<128x128xbf16>
    %cst_104 = arith.constant dense<0.000000e+00> : vector<1x128xf32>
    %128 = tpu.matmul %125, %127, %cst_104 {dimension_numbers = #tpu.dot_dimension_numbers<[1], [0], [0], [1], [0, 0, 1, 1], [], []>} : vector<1x128xbf16>, vector<128x128xbf16>, vector<1x128xf32> -> vector<1x128xf32>
    %129 = arith.addf %123, %128 : vector<1x128xf32>
    %cst_105 = arith.constant 0.000000e+00 : f32
    %130 = vector.broadcast %cst_105 : f32 to vector<1x128xf32>
    %131 = arith.maximumf %129, %130 : vector<1x128xf32>
    %132 = arith.truncf %131 : vector<1x128xf32> to vector<1x128xbf16>
    %c0_106 = arith.constant 0 : index
    %c0_107 = arith.constant 0 : index
    %133 = vector.load %arg12[%c0_106, %c0_107] : memref<128x10xbf16, #tpu.memory_space<vmem>>, vector<128x10xbf16>
    %cst_108 = arith.constant dense<0.000000e+00> : vector<1x10xf32>
    %134 = tpu.matmul %132, %133, %cst_108 {dimension_numbers = #tpu.dot_dimension_numbers<[1], [0], [0], [1], [0, 0, 1, 1], [], []>} : vector<1x128xbf16>, vector<128x10xbf16>, vector<1x10xf32> -> vector<1x10xf32>
    %c0_109 = arith.constant 0 : index
    %c0_110 = arith.constant 0 : index
    %135 = vector.load %arg13[%c0_109, %c0_110] : memref<1x10xf32, #tpu.memory_space<vmem>>, vector<1x10xf32>
    %136 = arith.addf %134, %135 : vector<1x10xf32>
    %cst_111 = arith.constant dense<0xFF800000> : vector<1xf32>
    %137 = vector.multi_reduction <maximumf>, %136, %cst_111 [1] : vector<1x10xf32> to vector<1xf32>
    %138 = vector.shape_cast %137 : vector<1xf32> to vector<1x1xf32>
    %139 = vector.broadcast %138 : vector<1x1xf32> to vector<1x10xf32>
    %140 = arith.subf %136, %139 : vector<1x10xf32>
    %141 = math.exp %140 : vector<1x10xf32>
    %cst_112 = arith.constant dense<0.000000e+00> : vector<1xf32>
    %142 = vector.multi_reduction <add>, %141, %cst_112 [1] : vector<1x10xf32> to vector<1xf32>
    %143 = vector.shape_cast %142 : vector<1xf32> to vector<1x1xf32>
    %144 = math.log %143 : vector<1x1xf32>
    %145 = vector.broadcast %144 : vector<1x1xf32> to vector<1x10xf32>
    %146 = arith.subf %140, %145 : vector<1x10xf32>
    %c0_113 = arith.constant 0 : index
    %c0_114 = arith.constant 0 : index
    %c0_115 = arith.constant 0 : index
    %147 = vector.load %arg14[%c0_113, %c0_114, %c0_115] : memref<1x1x10xf32, #tpu.memory_space<vmem>>, vector<1x1x10xf32>
    %148 = vector.shape_cast %147 : vector<1x1x10xf32> to vector<1x10xf32>
    %149 = vector.shape_cast %146 : vector<1x10xf32> to vector<1x1x10xf32>
    tpu.vector_store %arg14[%c0_113, %c0_114, %c0_115], %149 {strides = array<i32>} : memref<1x1x10xf32, #tpu.memory_space<vmem>>, vector<1x1x10xf32>,
    return
  }
  func.func @transform_0(%arg0: i32) -> (i32, i32, i32) {
    %c0_i32 = arith.constant 0 : i32
    %c0_i32_0 = arith.constant 0 : i32
    %c0_i32_1 = arith.constant 0 : i32
    return %arg0, %c0_i32, %c0_i32_0 : i32, i32, i32
  }
  func.func @transform_1(%arg0: i32) -> (i32, i32, i32) {
    %c0_i32 = arith.constant 0 : i32
    %c0_i32_0 = arith.constant 0 : i32
    %c0_i32_1 = arith.constant 0 : i32
    %c0_i32_2 = arith.constant 0 : i32
    return %c0_i32, %c0_i32_0, %c0_i32_1 : i32, i32, i32
  }
  func.func @transform_2(%arg0: i32) -> (i32, i32) {
    %c0_i32 = arith.constant 0 : i32
    %c0_i32_0 = arith.constant 0 : i32
    %c0_i32_1 = arith.constant 0 : i32
    return %c0_i32, %c0_i32_0 : i32, i32
  }
  func.func @transform_3(%arg0: i32) -> (i32, i32, i32) {
    %c0_i32 = arith.constant 0 : i32
    %c0_i32_0 = arith.constant 0 : i32
    %c0_i32_1 = arith.constant 0 : i32
    %c0_i32_2 = arith.constant 0 : i32
    return %c0_i32, %c0_i32_0, %c0_i32_1 : i32, i32, i32
  }
  func.func @transform_4(%arg0: i32) -> (i32, i32, i32) {
    %c0_i32 = arith.constant 0 : i32
    %c0_i32_0 = arith.constant 0 : i32
    %c0_i32_1 = arith.constant 0 : i32
    %c0_i32_2 = arith.constant 0 : i32
    return %c0_i32, %c0_i32_0, %c0_i32_1 : i32, i32, i32
  }
  func.func @transform_5(%arg0: i32) -> (i32, i32, i32) {
    %c0_i32 = arith.constant 0 : i32
    %c0_i32_0 = arith.constant 0 : i32
    %c0_i32_1 = arith.constant 0 : i32
    %c0_i32_2 = arith.constant 0 : i32
    return %c0_i32, %c0_i32_0, %c0_i32_1 : i32, i32, i32
  }
  func.func @transform_6(%arg0: i32) -> (i32, i32) {
    %c0_i32 = arith.constant 0 : i32
    %c0_i32_0 = arith.constant 0 : i32
    %c0_i32_1 = arith.constant 0 : i32
    return %c0_i32, %c0_i32_0 : i32, i32
  }
  func.func @transform_7(%arg0: i32) -> (i32, i32, i32) {
    %c0_i32 = arith.constant 0 : i32
    %c0_i32_0 = arith.constant 0 : i32
    %c0_i32_1 = arith.constant 0 : i32
    %c0_i32_2 = arith.constant 0 : i32
    return %c0_i32, %c0_i32_0, %c0_i32_1 : i32, i32, i32
  }
  func.func @transform_8(%arg0: i32) -> (i32, i32, i32) {
    %c0_i32 = arith.constant 0 : i32
    %c0_i32_0 = arith.constant 0 : i32
    %c0_i32_1 = arith.constant 0 : i32
    %c0_i32_2 = arith.constant 0 : i32
    return %c0_i32, %c0_i32_0, %c0_i32_1 : i32, i32, i32
  }
  func.func @transform_9(%arg0: i32) -> (i32, i32, i32) {
    %c0_i32 = arith.constant 0 : i32
    %c0_i32_0 = arith.constant 0 : i32
    %c0_i32_1 = arith.constant 0 : i32
    %c0_i32_2 = arith.constant 0 : i32
    return %c0_i32, %c0_i32_0, %c0_i32_1 : i32, i32, i32
  }
  func.func @transform_10(%arg0: i32) -> (i32, i32) {
    %c0_i32 = arith.constant 0 : i32
    %c0_i32_0 = arith.constant 0 : i32
    %c0_i32_1 = arith.constant 0 : i32
    return %c0_i32, %c0_i32_0 : i32, i32
  }
  func.func @transform_11(%arg0: i32) -> (i32, i32) {
    %c0_i32 = arith.constant 0 : i32
    %c0_i32_0 = arith.constant 0 : i32
    %c0_i32_1 = arith.constant 0 : i32
    return %c0_i32, %c0_i32_0 : i32, i32
  }
  func.func @transform_12(%arg0: i32) -> (i32, i32) {
    %c0_i32 = arith.constant 0 : i32
    %c0_i32_0 = arith.constant 0 : i32
    %c0_i32_1 = arith.constant 0 : i32
    return %c0_i32, %c0_i32_0 : i32, i32
  }
  func.func @transform_13(%arg0: i32) -> (i32, i32, i32) {
    %c0_i32 = arith.constant 0 : i32
    %c0_i32_0 = arith.constant 0 : i32
    %c0_i32_1 = arith.constant 0 : i32
    return %arg0, %c0_i32, %c0_i32_0 : i32, i32, i32
  }
}

</mosaic_0001>

<bundles_post_ra>
// kernel: mnist_small_net.1
= control target key start
LH: loop header
LB: loop body
LE: loop exit
PB: predicated region body
PF: predicated region fallthrough
CT: control target
= control target key end

     0   :  { %s11308_s0 = inlined_call_operand.vmem [shape: f32[2,28,28], index: 0, kind: input, shape index: {}]   ;;  %s11309_s1 = inlined_call_operand.hbm [shape: bf16[5,28,768], index: 1, kind: input, shape index: {}]   ;;  %s11310_s2 = inlined_call_operand.hbm [shape: f32[1,768], index: 2, kind: input, shape index: {}]   ;;  %s11311_s3 = inlined_call_operand.vmem [shape: bf16[2,12,24], index: 3, kind: input, shape index: {}]   ;;  %s11312_s4 = inlined_call_operand.hbm [shape: bf16[2,768,384], index: 4, kind: input, shape index: {}]   ;;  %s11313_s5 = inlined_call_operand.hbm [shape: bf16[5,384,256], index: 5, kind: input, shape index: {}]   ;;  %s11314_s6 = inlined_call_operand.hbm [shape: f32[1,256], index: 6, kind: input, shape index: {}]   ;;  %s11315_s7 = inlined_call_operand.hbm [shape: bf16[2,4,8], index: 7, kind: input, shape index: {}]   ;;  %s11316_s8 = inlined_call_operand.hbm [shape: bf16[2,256,128], index: 8, kind: input, shape index: {}]   ;;  %s11317_s9 = inlined_call_operand.hbm [shape: bf16[4,128,128], index: 9, kind: input, shape index: {}]   ;;  %s11318_s10 = inlined_call_operand.hbm [shape: f32[1,128], index: 10, kind: input, shape index: {}]   ;;  %s11319_s11 = inlined_call_operand.vmem [shape: bf16[128,10], index: 11, kind: input, shape index: {}]   ;;  %s11320_s12 = inlined_call_operand.hbm [shape: f32[1,10], index: 12, kind: input, shape index: {}]   ;;  %s11321_s13 = inlined_call_operand.hbm [shape: f32[2,1,10], index: 13, kind: output, shape index: {}]  }
   0x1   :  { %11335 = sst [smem:[#allocation35_spill]] %s11310_s2 }
   0x2   :  { %11336 = sst [smem:[#allocation36_spill]] %s11313_s5 }
   0x3   :  { %11337 = sst [smem:[#allocation37_spill]] %s11321_s13 }
   0x4   :  { %18 = vsyncpa [#allocation3], 0 }
   0x5   :  { %19 = vsyncpa [#allocation6], 0 }
   0x6   :  { %20 = vsyncpa [#allocation9], 0 }
   0x7   :  { %21 = vsyncpa [#allocation12], 0 }
   0x8   :  { %22 = vsyncpa [#allocation15], 0 }
   0x9   :  { %23 = vsyncpa [#allocation18], 0 }
   0xa   :  { %24 = vsyncpa [#allocation4], 0 }
   0xb   :  { %26 = vsyncpa [#allocation4 + $0x1], 0  ;;  %s10481_s25 = smov 0   ;;  %s10483_s26 = smov 0  }
   0xc   :  { %s10485_s27 = smov 0   ;;  %s10487_s28 = smov 0  }
   0xd LB: > { %11338 = sst [smem:[#allocation27_spill]] %s10373_s25  ;;  %s10502_s29 = sadd.s32 4294967295, %s10385_s28   ;;  %s10385_s28 = sphi %s10487_s28, %s11375_s28   ;;  %s10381_s27 = sphi %s10485_s27, %s11378_s27   ;;  %s10377_s26 = sphi %s10483_s26, %s11377_s26   ;;  %s10373_s25 = sphi %s10481_s25, %s11376_s25  }
   0xe   : > { %11339 = sst [smem:[#allocation28_spill]] %s10377_s26  ;;  %s7801_s30 = sadd.s32 4294967294, %s10385_s28  }
   0xf   : > { %11340 = sst [smem:[#allocation29_spill]] %s10381_s27  ;;  %s10506_s14 = sadd.s32 1, %s10385_s28  }
  0x10   : > { %11341 = sst [smem:[#allocation30_spill]] %s10385_s28  ;;  %s317_s15 = sadd.s32 1, %s10381_s27 }
  0x11   : > { %11342 = sst [smem:[#allocation31_spill]] %s10506_s14  ;;  %s314_s16 = ssub.s32 %s10385_s28, %s10506_s14 }
  0x12   : > { %p327_p0 = scmp.ne.s32.totalorder %s10381_s27, %s10377_s26  ;;  %p315_p1 = scmp.eq.s32.totalorder %s314_s16, 0 }
  0x13   : > { %p328_p2 = scmp.eq.s32.totalorder %s10502_s29, 1  ;;  %p333_p3 = scmp.ne.s32.totalorder %s10377_s26, %s10373_s25 }
  0x14   : > { %p334_p4 = scmp.eq.s32.totalorder %s7801_s30, 1  ;;  %p7802_p7 = scmp.ge.s32.totalorder %s10385_s28, 1 }
  0x15   : > { %s10517_s17 = scalar_select %p315_p1, %s10381_s27, %s317_s15  }
  0x16   : > { %p10519_p5 = por %p328_p2, %p327_p0  ;;  %p10523_p6 = por %p334_p4, %p333_p3 }
  0x17   : > { %11343 = sst [smem:[#allocation32_spill]] %s10517_s17  ;;  %p341_p8 = scmp.lt.s32.totalorder %s10385_s28, 3 }
  0x18   : > { %s11344_s18 = scalar_select %p10519_p5, 1, 0 }
  0x19   : > { %s11346_s19 = scalar_select %p10523_p6, 1, 0 }
  0x1a   : > { %11345 = sst [smem:[#allocation33_spill]] %s11344_s18  ;;  %p11327_p9 = scmp.eq.s32.totalorder %s10502_s29, 0 }
  0x1b   : > { %11347 = sst [smem:[#allocation34_spill]] %s11346_s19  ;;  %p10530_p10 = pnand %p7802_p7, %p341_p8 }
  0x1c   : > { %s10387_s21 = smov [#allocation5]   ;;  %s10388_s23 = smov [#allocation8]  }
  0x1d   : > { %s11348_s20 = scalar_select %p10530_p10, 1, 0 }
  0x1e   : > { %s367_s22 = sshll.u32 %s10387_s21, 4  ;;  %p8996_p11 = pneg %p10530_p10  ;;  %s368_s22 = int_to_ptr.vmem [resolvable:$true] %s367_s22 }
  0x1f   : > { %s393_s24 = sshll.u32 %s10388_s23, 4  ;;  %s10389_s15 = smov [#allocation11]   ;;  %s10542_s24 = int_to_ptr.vmem [resolvable:$true] %s393_s24 }
  0x20   : > { %p10538_p12 = pnand %p11327_p9, %p8996_p11  ;;  %s10544_s16 = sshll.u32 %s10389_s15, 4  ;;  %s418_s16 = int_to_ptr.vmem [resolvable:$true] %s10544_s16 }
  0x21   : > { %s11350_s2 = sld [smem:[#allocation35_spill]] }
  0x22   : > { %p10554_p0 = pneg %p10538_p12 }
  0x27   : > { %s10019_s21 = scalar_lea.hbm %s11350_s2, 96 }
  0x28   : > { %p10020_p13 = scmp.ne.s32.totalorder %s11350_s2, %s10019_s21  ;;  %p10026_p3 = scmp.lt.u32.totalorder %s10019_s21, %s11350_s2 }
  0x2a   : > { %p10022_p1 = pnand %p10554_p0, %p10020_p13 }
  0x2c   : > { %p10023_p2 = pneg %p10022_p1 }
  0x2e   : > { %p10028_p4 = pnand %p10026_p3, %p10023_p2 }
  0x30   : > { %10031 = shalt.err (!%p10028_p4)
}
  0x31   : > { %s10032_s27 = scalar_lea.vmem %s368_s22, 96  ;;  %p10040_p9 = scmp.lt.s32.totalorder %s368_s22, %s368_s22 }
  0x32   : > { %p10033_p7 = scmp.ne.s32.totalorder %s368_s22, %s10032_s27  ;;  %p10041_p6 = scmp.lt.s32.totalorder %s10032_s27, %s10032_s27 }
  0x34   : > { %p10035_p8 = pnand %p10033_p7, %p10554_p0  ;;  %p10042_p5 = por %p10041_p6, %p10040_p9 }
  0x36   : > { %p10036_p11 = pneg %p10035_p8 }
  0x38   : > { %p10043_p10 = pnand %p10042_p5, %p10036_p11 }
  0x3a   : > { %10046 = shalt.err (!%p10043_p10)
}
  0x3b   : > { %9002 = dma.hbm_to_vmem [thread:$0]  (!%p10538_p12), %s11350_s2, 96, %s368_s22, [#allocation6]  }
  0x3c   : > { %s11352_s5 = sld [smem:[#allocation36_spill]] }
  0x42   : > { %s10047_s21 = scalar_lea.hbm %s11352_s5, 30720 }
  0x43   : > { %p10048_p13 = scmp.ne.s32.totalorder %s11352_s5, %s10047_s21  ;;  %p10054_p5 = scmp.lt.u32.totalorder %s10047_s21, %s11352_s5 }
  0x45   : > { %p10050_p1 = pnand %p10048_p13, %p10554_p0 }
  0x47   : > { %p10051_p6 = pneg %p10050_p1 }
  0x49   : > { %p10056_p9 = pnand %p10054_p5, %p10051_p6 }
  0x4b   : > { %10059 = shalt.err (!%p10056_p9)
}
  0x4c   : > { %s10060_s22 = scalar_lea.vmem %s10542_s24, 30720  ;;  %p10068_p4 = scmp.lt.s32.totalorder %s10542_s24, %s10542_s24 }
  0x4d   : > { %p10061_p10 = scmp.ne.s32.totalorder %s10542_s24, %s10060_s22  ;;  %p10069_p7 = scmp.lt.s32.totalorder %s10060_s22, %s10060_s22 }
  0x4f   : > { %p10063_p2 = pnand %p10061_p10, %p10554_p0  ;;  %p10070_p8 = por %p10069_p7, %p10068_p4 }
  0x51   : > { %p10064_p3 = pneg %p10063_p2 }
  0x53   : > { %p10071_p11 = pnand %p10070_p8, %p10064_p3 }
  0x55   : > { %10074 = shalt.err (!%p10071_p11)
}
  0x56   : > { %s10390_s28 = smov 128   ;;  %s10391_s13 = smov 8  }
  0x57   : > { %9008 = dma.hbm_to_vmem [thread:$0]  (!%p10538_p12), %s11352_s5, 30720, %s10542_s24, [#allocation9], %s10390_s28, %s10390_s28, %s10391_s13  }
  0x58   : > { %s10075_s21 = scalar_lea.hbm %s11315_s7, 64 }
  0x59   : > { %p10076_p13 = scmp.ne.s32.totalorder %s11315_s7, %s10075_s21  ;;  %p10082_p5 = scmp.lt.u32.totalorder %s10075_s21, %s11315_s7 }
  0x5b   : > { %p10078_p1 = pnand %p10076_p13, %p10554_p0 }
  0x5d   : > { %p10079_p6 = pneg %p10078_p1 }
  0x5f   : > { %p10084_p9 = pnand %p10082_p5, %p10079_p6 }
  0x61   : > { %10087 = shalt.err (!%p10084_p9)
}
  0x62   : > { %s10088_s14 = scalar_lea.vmem %s418_s16, 64  ;;  %p10096_p4 = scmp.lt.s32.totalorder %s418_s16, %s418_s16 }
  0x63   : > { %p10089_p10 = scmp.ne.s32.totalorder %s418_s16, %s10088_s14  ;;  %p10097_p7 = scmp.lt.s32.totalorder %s10088_s14, %s10088_s14 }
  0x65   : > { %p10091_p2 = pnand %p10089_p10, %p10554_p0  ;;  %p10098_p8 = por %p10097_p7, %p10096_p4 }
  0x67   : > { %p10092_p3 = pneg %p10091_p2 }
  0x69   : > { %p10099_p11 = pnand %p10098_p8, %p10092_p3 }
  0x6b   : > { %10102 = shalt.err (!%p10099_p11)
}
  0x6c   : > { %s10392_s24 = smov 32   ;;  %s10393_s28 = smov 2  }
  0x6d   : > { %9014 = dma.hbm_to_vmem [thread:$0]  (!%p10538_p12), %s11315_s7, 64, %s418_s16, [#allocation12], %s10392_s24, %s10392_s24, %s10393_s28  }
  0x6e   : > { %s10394_s17 = smov [#allocation14]   ;;  %s10395_s19 = smov [#allocation2]  }
  0x6f   : > { %s443_s25 = sshll.u32 %s10394_s17, 4  ;;  %s353_s21 = sshll.u32 %s10395_s19, 4  ;;  %s444_s25 = int_to_ptr.vmem [resolvable:$true] %s443_s25  ;;  %s354_s21 = int_to_ptr.vmem [resolvable:$true] %s353_s21 }
  0x70   : > { %s10103_s22 = scalar_lea.hbm %s11317_s9, 4096 }
  0x71   : > { %p10104_p13 = scmp.ne.s32.totalorder %s11317_s9, %s10103_s22  ;;  %p10110_p5 = scmp.lt.u32.totalorder %s10103_s22, %s11317_s9 }
  0x73   : > { %p10106_p1 = pnand %p10104_p13, %p10554_p0 }
  0x75   : > { %p10107_p6 = pneg %p10106_p1 }
  0x77   : > { %p10112_p9 = pnand %p10110_p5, %p10107_p6 }
  0x79   : > { %10115 = shalt.err (!%p10112_p9)
}
  0x7a   : > { %s10116_s16 = scalar_lea.vmem %s444_s25, 4096  ;;  %p10124_p4 = scmp.lt.s32.totalorder %s444_s25, %s444_s25 }
  0x7b   : > { %p10117_p10 = scmp.ne.s32.totalorder %s444_s25, %s10116_s16  ;;  %p10125_p7 = scmp.lt.s32.totalorder %s10116_s16, %s10116_s16 }
  0x7d   : > { %p10119_p2 = pnand %p10117_p10, %p10554_p0  ;;  %p10126_p8 = por %p10125_p7, %p10124_p4 }
  0x7f   : > { %p10120_p3 = pneg %p10119_p2 }
  0x81   : > { %p10127_p11 = pnand %p10126_p8, %p10120_p3 }
  0x83   : > { %10130 = shalt.err (!%p10127_p11)
}
  0x84   : > { %s10396_s5 = smov 64   ;;  %s10397_s24 = smov 4  }
  0x85   : > { %9020 = dma.hbm_to_vmem [thread:$0]  (!%p10538_p12), %s11317_s9, 4096, %s444_s25, [#allocation15], %s10396_s5, %s10396_s5, %s10397_s24  }
  0x86   : > { %s10131_s13 = scalar_lea.hbm %s11309_s1, 7680 }
  0x87   : > { %p10132_p13 = scmp.ne.s32.totalorder %s11309_s1, %s10131_s13  ;;  %p10138_p5 = scmp.lt.u32.totalorder %s10131_s13, %s11309_s1 }
  0x89   : > { %p10134_p1 = pnand %p10132_p13, %p10554_p0 }
  0x8b   : > { %p10135_p6 = pneg %p10134_p1 }
  0x8d   : > { %p10140_p9 = pnand %p10138_p5, %p10135_p6 }
  0x8f   : > { %10143 = shalt.err (!%p10140_p9)
}
  0x90   : > { %s10144_s22 = scalar_lea.vmem %s354_s21, 7680  ;;  %p10152_p4 = scmp.lt.s32.totalorder %s354_s21, %s354_s21 }
  0x91   : > { %p10145_p10 = scmp.ne.s32.totalorder %s354_s21, %s10144_s22  ;;  %p10153_p7 = scmp.lt.s32.totalorder %s10144_s22, %s10144_s22 }
  0x93   : > { %p10147_p2 = pnand %p10145_p10, %p10554_p0  ;;  %p10154_p8 = por %p10153_p7, %p10152_p4 }
  0x95   : > { %p10148_p3 = pneg %p10147_p2 }
  0x97   : > { %p10155_p11 = pnand %p10154_p8, %p10148_p3 }
  0x99   : > { %10158 = shalt.err (!%p10155_p11)
}
  0x9a   : > { %s10398_s25 = smov 384   ;;  %s10399_s14 = smov 24  }
  0x9b   : > { %8999 = dma.hbm_to_vmem [thread:$0]  (!%p10538_p12), %s11309_s1, 7680, %s354_s21, [#allocation3], %s10398_s25, %s10398_s25, %s10399_s14  }
  0x9c   : > { %s10400_s18 = smov [#allocation7]   ;;  %s10159_s17 = scalar_lea.hbm %s11312_s4, 36864 }
  0x9d   : > { %s380_s28 = sshll.u32 %s10400_s18, 4  ;;  %p10160_p13 = scmp.ne.s32.totalorder %s11312_s4, %s10159_s17  ;;  %s381_s28 = int_to_ptr.vmem [resolvable:$true] %s380_s28 }
  0x9e   : > { %p10166_p5 = scmp.lt.u32.totalorder %s10159_s17, %s11312_s4 }
  0x9f   : > { %p10162_p1 = pnand %p10160_p13, %p10554_p0 }
  0xa1   : > { %p10163_p6 = pneg %p10162_p1 }
  0xa3   : > { %p10168_p9 = pnand %p10166_p5, %p10163_p6 }
  0xa5   : > { %10171 = shalt.err (!%p10168_p9)
}
  0xa6   : > { %s10172_s21 = scalar_lea.vmem %s381_s28, 36864  ;;  %p10180_p4 = scmp.lt.s32.totalorder %s381_s28, %s381_s28 }
  0xa7   : > { %p10173_p10 = scmp.ne.s32.totalorder %s381_s28, %s10172_s21  ;;  %p10181_p7 = scmp.lt.s32.totalorder %s10172_s21, %s10172_s21 }
  0xa9   : > { %p10175_p2 = pnand %p10173_p10, %p10554_p0  ;;  %p10182_p8 = por %p10181_p7, %p10180_p4 }
  0xab   : > { %p10176_p3 = pneg %p10175_p2 }
  0xad   : > { %p10183_p11 = pnand %p10182_p8, %p10176_p3 }
  0xaf   : > { %10186 = shalt.err (!%p10183_p11)
}
  0xb0   : > { %s10401_s25 = smov 192   ;;  %s10402_s14 = smov 12  }
  0xb1   : > { %9005 = dma.hbm_to_vmem [thread:$0]  (!%p10538_p12), %s11312_s4, 36864, %s381_s28, [#allocation6], %s10401_s25, %s10401_s25, %s10402_s14  }
  0xb2   : > { %s10403_s18 = smov [#allocation10]   ;;  %s10404_s13 = smov [#allocation13]  }
  0xb3   : > { %s407_s2 = sshll.u32 %s10403_s18, 4  ;;  %s430_s17 = sshll.u32 %s10404_s13, 4  ;;  %s408_s2 = int_to_ptr.vmem [resolvable:$true] %s407_s2  ;;  %s10669_s17 = int_to_ptr.vmem [resolvable:$true] %s430_s17 }
  0xb4   : > { %s10187_s27 = scalar_lea.hbm %s11314_s6, 32 }
  0xb5   : > { %p10188_p13 = scmp.ne.s32.totalorder %s11314_s6, %s10187_s27  ;;  %p10194_p5 = scmp.lt.u32.totalorder %s10187_s27, %s11314_s6 }
  0xb7   : > { %p10190_p1 = pnand %p10188_p13, %p10554_p0 }
  0xb9   : > { %p10191_p6 = pneg %p10190_p1 }
  0xbb   : > { %p10196_p9 = pnand %p10194_p5, %p10191_p6 }
  0xbd   : > { %10199 = shalt.err (!%p10196_p9)
}
  0xbe   : > { %s10200_s25 = scalar_lea.vmem %s408_s2, 32  ;;  %p10208_p4 = scmp.lt.s32.totalorder %s408_s2, %s408_s2 }
  0xbf   : > { %p10201_p10 = scmp.ne.s32.totalorder %s408_s2, %s10200_s25  ;;  %p10209_p7 = scmp.lt.s32.totalorder %s10200_s25, %s10200_s25 }
  0xc1   : > { %p10203_p2 = pnand %p10201_p10, %p10554_p0  ;;  %p10210_p8 = por %p10209_p7, %p10208_p4 }
  0xc3   : > { %p10204_p3 = pneg %p10203_p2 }
  0xc5   : > { %p10211_p11 = pnand %p10210_p8, %p10204_p3 }
  0xc7   : > { %10214 = shalt.err (!%p10211_p11)
}
  0xc8   : > { %9011 = dma.hbm_to_vmem [thread:$0]  (!%p10538_p12), %s11314_s6, 32, %s408_s2, [#allocation9]  }
  0xc9   : > { %s10215_s19 = scalar_lea.hbm %s11316_s8, 4096 }
  0xca   : > { %p10216_p13 = scmp.ne.s32.totalorder %s11316_s8, %s10215_s19  ;;  %p10222_p5 = scmp.lt.u32.totalorder %s10215_s19, %s11316_s8 }
  0xcc   : > { %p10218_p1 = pnand %p10216_p13, %p10554_p0 }
  0xce   : > { %p10219_p6 = pneg %p10218_p1 }
  0xd0   : > { %p10224_p9 = pnand %p10222_p5, %p10219_p6 }
  0xd2   : > { %10227 = shalt.err (!%p10224_p9)
}
  0xd3   : > { %s10228_s2 = scalar_lea.vmem %s10669_s17, 4096  ;;  %p10236_p4 = scmp.lt.s32.totalorder %s10669_s17, %s10669_s17 }
  0xd4   : > { %p10229_p10 = scmp.ne.s32.totalorder %s10669_s17, %s10228_s2  ;;  %p10237_p7 = scmp.lt.s32.totalorder %s10228_s2, %s10228_s2 }
  0xd6   : > { %p10231_p2 = pnand %p10229_p10, %p10554_p0  ;;  %p10238_p8 = por %p10237_p7, %p10236_p4 }
  0xd8   : > { %p10232_p3 = pneg %p10231_p2 }
  0xda   : > { %p10239_p11 = pnand %p10238_p8, %p10232_p3 }
  0xdc   : > { %10242 = shalt.err (!%p10239_p11)
}
  0xdd   : > { %9017 = dma.hbm_to_vmem [thread:$0]  (!%p10538_p12), %s11316_s8, 4096, %s10669_s17, [#allocation12], %s10396_s5, %s10396_s5, %s10397_s24  }
  0xde   : > { %s10405_s25 = smov [#allocation16]   ;;  %s10406_s26 = smov [#allocation17]  }
  0xdf   : > { %s457_s14 = sshll.u32 %s10405_s25, 4  ;;  %s471_s18 = sshll.u32 %s10406_s26, 4  ;;  %s458_s14 = int_to_ptr.vmem [resolvable:$true] %s457_s14  ;;  %s10715_s18 = int_to_ptr.vmem [resolvable:$true] %s471_s18 }
  0xe0   : > { %s10243_s15 = scalar_lea.hbm %s11318_s10, 16 }
  0xe1   : > { %p10244_p13 = scmp.ne.s32.totalorder %s11318_s10, %s10243_s15  ;;  %p10250_p5 = scmp.lt.u32.totalorder %s10243_s15, %s11318_s10 }
  0xe3   : > { %p10246_p1 = pnand %p10244_p13, %p10554_p0 }
  0xe5   : > { %p10247_p6 = pneg %p10246_p1 }
  0xe7   : > { %p10252_p9 = pnand %p10250_p5, %p10247_p6 }
  0xe9   : > { %10255 = shalt.err (!%p10252_p9)
}
  0xea   : > { %s10256_s24 = scalar_lea.vmem %s458_s14, 16  ;;  %s10263_s17 = scalar_lea.vmem %s458_s14, 32 }
  0xeb   : > { %p10257_p10 = scmp.ne.s32.totalorder %s458_s14, %s10256_s24  ;;  %p10264_p4 = scmp.lt.s32.totalorder %s458_s14, %s458_s14 }
  0xec   : > { %p10265_p7 = scmp.lt.s32.totalorder %s10263_s17, %s10256_s24 }
  0xed   : > { %p10259_p2 = pnand %p10257_p10, %p10554_p0 }
  0xee   : > { %p10266_p8 = por %p10265_p7, %p10264_p4 }
  0xef   : > { %p10260_p3 = pneg %p10259_p2 }
  0xf1   : > { %p10267_p11 = pnand %p10266_p8, %p10260_p3 }
  0xf3   : > { %10270 = shalt.err (!%p10267_p11)
}
  0xf4   : > { %9023 = dma.hbm_to_vmem [thread:$0]  (!%p10538_p12), %s11318_s10, 16, %s458_s14, [#allocation15]  }
  0xf5   : > { %s10271_s26 = scalar_lea.hbm %s11320_s12, 16 }
  0xf6   : > { %p10272_p13 = scmp.ne.s32.totalorder %s11320_s12, %s10271_s26  ;;  %p10278_p5 = scmp.lt.u32.totalorder %s10271_s26, %s11320_s12 }
  0xf8   : > { %p10274_p1 = pnand %p10272_p13, %p10554_p0 }
  0xfa   : > { %p10275_p6 = pneg %p10274_p1 }
  0xfc   : > { %p10280_p9 = pnand %p10278_p5, %p10275_p6 }
  0xfe   : > { %10283 = shalt.err (!%p10280_p9)
}
  0xff   : > { %s10284_s14 = scalar_lea.vmem %s10715_s18, 16  ;;  %s10291_s22 = scalar_lea.vmem %s10715_s18, 32 }
 0x100   : > { %p10285_p10 = scmp.ne.s32.totalorder %s10715_s18, %s10284_s14  ;;  %p10292_p4 = scmp.lt.s32.totalorder %s10715_s18, %s10715_s18 }
 0x101   : > { %p10293_p7 = scmp.lt.s32.totalorder %s10291_s22, %s10284_s14 }
 0x102   : > { %p10287_p2 = pnand %p10285_p10, %p10554_p0 }
 0x103   : > { %p10294_p8 = por %p10293_p7, %p10292_p4 }
 0x104   : > { %p10288_p3 = pneg %p10287_p2 }
 0x106   : > { %p10295_p11 = pnand %p10294_p8, %p10288_p3 }
 0x108   : > { %10298 = shalt.err (!%p10295_p11)
}
 0x109   : > { %9026 = dma.hbm_to_vmem [thread:$0]  (!%p10538_p12), %s11320_s12, 16, %s10715_s18, [#allocation18]  }
 0x10a   : > { %p11353_p13 = scmp.ne.s32.totalorder %s11348_s20, 0 }
 0x10b   : > { %p11354_p0 = scmp.eq.s32.totalorder (!%p11353_p13), %s10502_s29, 0 }
 0x10c   : > { %492 = sbr.rel (%p11353_p13) target bundleno = 3164 (0xc5c), region = 72 }
 0x113   : > { %10344 = dma.done.wait (%p11354_p0), [#allocation3], 7680   ;;  %p11355_p1 = pmov %p11354_p0 }
 0x114   : > { %p11356_p6 = pmov %p11354_p0 }
 0x115   : > { %10346 = vsyncadd (%p11355_p1), [#allocation3], 4294959616 }
 0x116   : > { %10348 = dma.done.wait (%p11356_p6), [#allocation6], 36960   ;;  %p11357_p5 = pmov %p11354_p0 }
 0x117   : > { %p11358_p9 = pmov %p11354_p0 }
 0x118   : > { %10350 = vsyncadd (%p11357_p5), [#allocation6], 4294930336 }
 0x119   : > { %10352 = dma.done.wait (%p11358_p9), [#allocation9], 30752   ;;  %p11359_p12 = pmov %p11354_p0 }
 0x11a   : > { %p11360_p10 = pmov %p11354_p0 }
 0x11b   : > { %10354 = vsyncadd (%p11359_p12), [#allocation9], 4294936544 }
 0x11c   : > { %10356 = dma.done.wait (%p11360_p10), [#allocation12], 4160   ;;  %p11361_p2 = pmov %p11354_p0 }
 0x11d   : > { %p11362_p3 = pmov %p11354_p0 }
 0x11e   : > { %10358 = vsyncadd (%p11361_p2), [#allocation12], 4294963136 }
 0x11f   : > { %10360 = dma.done.wait (%p11362_p3), [#allocation15], 4112   ;;  %p11363_p4 = pmov %p11354_p0 }
 0x120   : > { %p11364_p7 = pmov %p11354_p0 }
 0x121   : > { %10362 = vsyncadd (%p11363_p4), [#allocation15], 4294963184 }
 0x122   : > { %10364 = dma.done.wait (%p11364_p7), [#allocation18], 16   ;;  %p11365_p8 = pmov %p11354_p0 }
 0x123   : > { %p571_p11 = scmp.lt.s32.totalorder %s10502_s29, 1  ;;  %v10407_v0 = vmov 0   ;;  %v9107_v1 = vld [vmem:[#allocation2 + $0x64] ss:$24 sps:$4 sm:$0xff]   ;;  %v9111_v3 = vld [vmem:[#allocation2 + $0x60] ss:$24 sps:$4 sm:$0xff]  }
 0x124   : > { %10366 = vsyncadd (%p11365_p8), [#allocation18], 4294967280  ;;  %724 = vmatprep.mubr.bf16.mxu0 %v10407_v0  ;;  %1006 = vmatprep.mubr.bf16.mxu1 %v10407_v0  ;;  %v9109_v2 = vld [vmem:[#allocation2 + $0xc] ss:$24 sps:$4 sm:$0xff]   ;;  %v9112_v4 = vld [vmem:[#allocation2 + $0x8] ss:$24 sps:$4 sm:$0xff]  }
 0x125   : > { %s572_s20 = scalar_select %p571_p11, %s10502_s29, 1  ;;  %692 = vmatprep.subr.bf16.mxu0 %v9107_v1  ;;  %vm673_vm0 = vcmask 1045504   ;;  %974 = vmatprep.subr.bf16.mxu1 %v9109_v2  ;;  %v9113_v5 = vld [vmem:[#allocation2 + $0x94] ss:$24 sps:$4 sm:$0x3f]   ;;  %vm666_vm1 = vcmask 228352  }
 0x126   : > { %693 = vmatpush1.bf16.msra.mxu0 %v9111_v3  ;;  %975 = vmatpush1.bf16.msra.mxu1 %v9112_v4  ;;  %v9115_v6 = vld [vmem:[#allocation2 + $0x3c] ss:$24 sps:$4 sm:$0x3f]   ;;  %v9117_v8 = vld [vmem:[#allocation2 + $0x90] ss:$24 sps:$4 sm:$0x3f]  }
 0x127   : > { %s8555_s30 = sshll.u32 %s572_s20, 5  ;;  %7839 = vmatprep.subr.msk.bf16.mxu0 %vm673_vm0, %v9113_v5  ;;  %v9118_v9 = vld [vmem:[#allocation2 + $0x38] ss:$24 sps:$4 sm:$0x3f]   ;;  %7863 = vmatprep.subr.msk.bf16.mxu1 %vm673_vm0, %v9115_v6  ;;  %v675_v13 = vsel %vm673_vm0, %v9117_v8, 0  ;;  %vm1968_vm2 = vcmask 1043456  }
 0x128   : > { %s10792_s24 = scalar_lea.vmem %s11308_s0, %s8555_s30  ;;  %v912_v14 = vsel %vm673_vm0, %v9118_v9, 0  ;;  %v9119_v17 = vld [vmem:[#allocation2 + $0x68] ss:$24 sps:$4 sm:$0xff]   ;;  %v9121_v18 = vld [vmem:[#allocation2 + $0x6c] ss:$24 sps:$4 sm:$0xff]   ;;  %vm1964_vm3 = vcmask 195584  }
 0x129   : > { %v594_v7 = vld [vmem:[%s10792_s24 + $0x1] sm:$0xff]  ;;  %v595_v10 = vld [vmem:[%s10792_s24 + $0x9] sm:$0xff]  ;;  %v596_v20 = vld [vmem:[%s10792_s24 + $0x11] sm:$0xff]  ;;  %vm6641_vm4 = vcmask 64512   ;;  %vm10409_vm5 = vmmov 0   ;;  %vm7621_vm6 = vcmask 73728  }
 0x12a   : > { %v577_v11 = vld [vmem:[%s10792_s24] sm:$0xff]  ;;  %v578_v12 = vld [vmem:[%s10792_s24 + $0x8] sm:$0xff]  ;;  %v10802_v15 = vpack.c.bf16 %v595_v10, %v594_v7  ;;  %695 = vmatpush1.bf16.msra.mxu0 %v675_v13  ;;  %977 = vmatpush1.bf16.msra.mxu1 %v912_v14  ;;  %v579_v21 = vld [vmem:[%s10792_s24 + $0x10] sm:$0xff]  ;;  %v10816_v28 = vpack.c.bf16 %v596_v20, %v596_v20  ;;  %s11366_s2 = sld [smem:[#allocation28_spill]]  ;;  %s11367_s16 = sld [smem:[#allocation33_spill]] }
 0x12b   : > { %v10804_v16 = vpack.c.bf16 %v578_v12, %v577_v11  ;;  %v9122_v19 = vld [vmem:[#allocation2 + $0xc8] ss:$24 sps:$4 sm:$0xff]   ;;  %743 = vmatprep.subr.bf16.mxu0 %v9121_v18  ;;  %v9124_v22 = vld [vmem:[#allocation2 + $0xcc] ss:$24 sps:$4 sm:$0xff]   ;;  %v10818_v29 = vpack.c.bf16 %v579_v21, %v579_v21  ;;  %v1078_v42 = vld [vmem:[%s10792_s24 + $0x12] sm:$0xff]  ;;  %s8552_s25 = sshll.u32 %s10502_s29, 4 }
 0x12c   : > { %v9125_v23 = vld [vmem:[#allocation2 + $0x9c] ss:$24 sps:$4 sm:$0x3f]   ;;  %v9129_v25 = vld [vmem:[#allocation2 + $0x98] ss:$24 sps:$4 sm:$0x3f]   ;;  %1223 = vmatprep.subr.bf16.mxu1 %v9124_v22  ;;  %v10843_v47 = vpack.c.bf16 %v1078_v42, %v1078_v42 }
 0x12d   : > { %7840 = vmatmul.mubr.msk.bf16.vlgmr.msra.gmra.mrb[0].mxu0 %vm666_vm1, %v10802_v15  ;;  %7864 = vmatmul.mubr.msk.bf16.vlgmr.msra.gmra.mrb[0].mxu1 %vm666_vm1, %v10804_v16  ;;  %v9127_v24 = vld [vmem:[#allocation2 + $0xfc] ss:$24 sps:$4 sm:$0x3f]   ;;  %v9130_v26 = vld [vmem:[#allocation2 + $0xf8] ss:$24 sps:$4 sm:$0x3f]  }
 0x12e   : > { %744 = vmatpush1.bf16.msra.mxu0 %v9119_v17  ;;  %734 = vmatprep.mubr.bf16.mxu0 %v10407_v0  ;;  %v681_v27 = vsel %vm673_vm0, %v9129_v25, 0  ;;  %v1161_v30 = vsel %vm673_vm0, %v9130_v26, 0  ;;  %v9133_v31 = vld [vmem:[#allocation2 + $0x74] ss:$24 sps:$4 sm:$0xff]   ;;  %v1076_v33 = vld [vmem:[%s10792_s24 + $0x2] sm:$0xff]  ;;  %s11368_s27 = sld [smem:[#allocation37_spill]] }
 0x12f   : > { %1016 = vmatprep.mubr.bf16.mxu1 %v10407_v0  ;;  %1224 = vmatpush1.bf16.msra.mxu1 %v9122_v19  ;;  %v9136_v32 = vld [vmem:[#allocation2 + $0x12c] ss:$24 sps:$4 sm:$0xff]   ;;  %v9131_v36 = vld [vmem:[#allocation2 + $0x70] ss:$24 sps:$4 sm:$0xff]   ;;  %v9143_v51 = vld [vmem:[#allocation2] ss:$24 sps:$4 sm:$0xff]  }
 0x130   : > { %7842 = vmatprep.subr.msk.bf16.mxu0 %vm673_vm0, %v9125_v23  ;;  %7884 = vmatprep.subr.msk.bf16.mxu1 %vm673_vm0, %v9127_v24  ;;  %v1077_v34 = vld [vmem:[%s10792_s24 + $0xa] sm:$0xff]  ;;  %v9137_v38 = vld [vmem:[#allocation2 + $0xa4] ss:$24 sps:$4 sm:$0x3f]   ;;  %v1345_v57 = vld [vmem:[%s10792_s24 + $0x13] sm:$0xff]  ;;  %s569_s28 = sand.u32 1, %s11366_s2  }
 0x131   : > { %v10830_v35 = vpack.c.bf16 %v1077_v34, %v1076_v33  ;;  %v9134_v37 = vld [vmem:[#allocation2 + $0x128] ss:$24 sps:$4 sm:$0xff]   ;;  %v9139_v40 = vld [vmem:[#allocation2 + $0x15c] ss:$24 sps:$4 sm:$0x3f]   ;;  %v10866_v61 = vpack.c.bf16 %v1345_v57, %v1345_v57  ;;  %v1611_v63 = vld [vmem:[%s10792_s24 + $0xc] sm:$0xff] }
 0x132   : > { %746 = vmatpush1.bf16.msra.mxu0 %v681_v27  ;;  %v9141_v39 = vld [vmem:[#allocation2 + $0xa0] ss:$24 sps:$4 sm:$0x3f]   ;;  %v9145_v44 = vld [vmem:[#allocation2 + $0x4] ss:$24 sps:$4 sm:$0xff]   ;;  %v1344_v49 = vld [vmem:[%s10792_s24 + $0xb] sm:$0xff] }
 0x133   : > { %794 = vmatprep.subr.bf16.mxu0 %v9133_v31  ;;  %1226 = vmatpush1.bf16.msra.mxu1 %v1161_v30  ;;  %v9142_v41 = vld [vmem:[#allocation2 + $0x158] ss:$24 sps:$4 sm:$0x3f]   ;;  %v687_v43 = vsel %vm673_vm0, %v9141_v39, 0  ;;  %v9148_v46 = vld [vmem:[#allocation2 + $0x18c] ss:$24 sps:$4 sm:$0xff]  }
 0x134   : > { %1490 = vmatprep.subr.bf16.mxu1 %v9136_v32  ;;  %v1428_v45 = vsel %vm673_vm0, %v9142_v41, 0  ;;  %v1343_v48 = vld [vmem:[%s10792_s24 + $0x3] sm:$0xff]  ;;  %v9149_v53 = vld [vmem:[#allocation2 + $0x34] ss:$24 sps:$4 sm:$0x3f]   ;;  %s570_s26 = scalar_lea.vmem [#allocation19], %s569_s28  ;;  %s11369_s14 = smov %s11368_s27 }
 0x135   : > { %7841 = vmatmul.mubr.msk.bf16.gmra.mrb[4].mxu0 %vm666_vm1, %v10816_v28  ;;  %7865 = vmatmul.mubr.msk.bf16.gmra.mrb[4].mxu1 %vm666_vm1, %v10818_v29  ;;  %v10853_v50 = vpack.c.bf16 %v1344_v49, %v1343_v48  ;;  %v9146_v52 = vld [vmem:[#allocation2 + $0x188] ss:$24 sps:$4 sm:$0xff]   ;;  %v9151_v55 = vld [vmem:[#allocation2 + $0x1bc] ss:$24 sps:$4 sm:$0x3f]   ;;  %s7648_s13 = sshll.u32 %s570_s26, 4  ;;  %s11265_s22 = scalar_lea.hbm %s11368_s27, %s8552_s25  ;;  %s11267_s13 = int_to_ptr.vmem [resolvable:$true] %s7648_s13 }
 0x136   : > { %775 = vmatprep.mubr.bf16.mxu0 %v10407_v0  ;;  %1255 = vmatprep.mubr.bf16.mxu1 %v10407_v0  ;;  %v9153_v54 = vld [vmem:[#allocation2 + $0x30] ss:$24 sps:$4 sm:$0x3f]   ;;  %v9157_v59 = vld [vmem:[#allocation2 + $0x14] ss:$24 sps:$4 sm:$0xff]   ;;  %s7636_s21 = scalar_lea.sflag [#allocation4], %s569_s28 }
 0x137   : > { %v9154_v56 = vld [vmem:[#allocation2 + $0x1b8] ss:$24 sps:$4 sm:$0x3f]   ;;  %v906_v58 = vsel %vm673_vm0, %v9153_v54, 0  ;;  %v1610_v62 = vld [vmem:[%s10792_s24 + $0x4] sm:$0xff]  ;;  %s10299_s5 = scalar_lea.vmem %s11267_s13, 16 }
 0x138   : > { %v1695_v60 = vsel %vm673_vm0, %v9154_v56, 0  ;;  %v9155_v1 = vld [vmem:[#allocation2 + $0x10] ss:$24 sps:$4 sm:$0xff]   ;;  %v10876_v2 = vpack.c.bf16 %v1611_v63, %v1610_v62  ;;  %v9158_v3 = vld [vmem:[#allocation2 + $0x44] ss:$24 sps:$4 sm:$0x3f]   ;;  %v1879_v62 = vlaneseq  ;;  %p10300_p13 = scmp.ne.s32.totalorder %s11267_s13, %s10299_s5 }
 0x139   : > { %v9160_v4 = vld [vmem:[#allocation2 + $0x40] ss:$24 sps:$4 sm:$0x3f]   ;;  %v9163_v6 = vld [vmem:[#allocation2 + $0xc4] ss:$24 sps:$4 sm:$0xff]   ;;  %p11370_p0 = scmp.ne.s32.totalorder %s11367_s16, 0 }
 0x13a   : > { %v1612_v5 = vld [vmem:[%s10792_s24 + $0x14] sm:$0xff]  ;;  %v918_v7 = vsel %vm673_vm0, %v9160_v4, 0  ;;  %v9166_v11 = vld [vmem:[#allocation2 + $0xf0] ss:$24 sps:$4 sm:$0x3f]   ;;  %v10948_v63 = vshrl.u32 %v1879_v62, 7 }
 0x13b   : > { %v10887_v8 = vpack.c.bf16 %v1612_v5, %v1612_v5  ;;  %v9161_v9 = vld [vmem:[#allocation2 + $0xc0] ss:$24 sps:$4 sm:$0xff]   ;;  %v9164_v10 = vld [vmem:[#allocation2 + $0xf4] ss:$24 sps:$4 sm:$0x3f]   ;;  %v1155_v13 = vsel %vm673_vm0, %v9166_v11, 0  ;;  %p10301_p1 = pnand %p10300_p13, %p11370_p0 }
 0x13c   : > { %v9169_v12 = vld [vmem:[#allocation2 + $0xd4] ss:$24 sps:$4 sm:$0xff]   ;;  %v9167_v14 = vld [vmem:[#allocation2 + $0xd0] ss:$24 sps:$4 sm:$0xff]   ;;  %v9173_v19 = vld [vmem:[#allocation2 + $0x120] ss:$24 sps:$4 sm:$0xff]  }
 0x13d   : > { %7843 = vmatmul.mubr.msk.bf16.vlgmr.msra.gmra.mrb[8].mxu0 %vm666_vm1, %v10802_v15  ;;  %7885 = vmatmul.mubr.msk.bf16.vlgmr.msra.gmra.mrb[0].mxu1 %vm666_vm1, %v10830_v35  ;;  %v9172_v17 = vld [vmem:[#allocation2 + $0x100] ss:$24 sps:$4 sm:$0x3f]   ;;  %v9176_v20 = vld [vmem:[#allocation2 + $0x154] ss:$24 sps:$4 sm:$0x3f]   ;;  %p10302_p6 = pneg %p10301_p1 }
 0x13e   : > { %795 = vmatpush1.bf16.msra.mxu0 %v9131_v36  ;;  %785 = vmatprep.mubr.bf16.mxu0 %v10407_v0  ;;  %v1167_v18 = vsel %vm673_vm0, %v9172_v17, 0  ;;  %v9178_v21 = vld [vmem:[#allocation2 + $0x150] ss:$24 sps:$4 sm:$0x3f]   ;;  %v9181_v22 = vld [vmem:[#allocation2 + $0x134] ss:$24 sps:$4 sm:$0xff]  }
 0x13f   : > { %1265 = vmatprep.mubr.bf16.mxu1 %v10407_v0  ;;  %1491 = vmatpush1.bf16.msra.mxu1 %v9134_v37  ;;  %v1422_v23 = vsel %vm673_vm0, %v9178_v21, 0  ;;  %v9179_v24 = vld [vmem:[#allocation2 + $0x130] ss:$24 sps:$4 sm:$0xff]   ;;  %v9182_v25 = vld [vmem:[#allocation2 + $0x164] ss:$24 sps:$4 sm:$0x3f]  }
 0x140   : > { %7845 = vmatprep.subr.msk.bf16.mxu0 %vm673_vm0, %v9137_v38  ;;  %7905 = vmatprep.subr.msk.bf16.mxu1 %vm673_vm0, %v9139_v40  ;;  %v9184_v26 = vld [vmem:[#allocation2 + $0x160] ss:$24 sps:$4 sm:$0x3f]   ;;  %v9187_v27 = vld [vmem:[#allocation2 + $0x184] ss:$24 sps:$4 sm:$0xff]   ;;  %s10410_s29 = smov [#allocation19]  }
 0x141   : > { %v9188_v30 = vld [vmem:[#allocation2 + $0x1b4] ss:$24 sps:$4 sm:$0x3f]   ;;  %v9190_v31 = vld [vmem:[#allocation2 + $0x1b0] ss:$24 sps:$4 sm:$0x3f]  }
 0x142   : > { %797 = vmatpush1.bf16.msra.mxu0 %v687_v43  ;;  %v9193_v32 = vld [vmem:[#allocation2 + $0x194] ss:$24 sps:$4 sm:$0xff]   ;;  %v1689_v33 = vsel %vm673_vm0, %v9190_v31, 0  ;;  %v9191_v34 = vld [vmem:[#allocation2 + $0x190] ss:$24 sps:$4 sm:$0xff]   ;;  %s10303_s20 = sshll.u32 %s10410_s29, 4  ;;  %s10304_s20 = int_to_ptr.vmem [resolvable:$false] %s10303_s20 }
 0x143   : > { %1493 = vmatpush1.bf16.msra.mxu1 %v1428_v45  ;;  %923 = vmatprep.subr.bf16.mxu0 %v9145_v44  ;;  %v9196_v36 = vld [vmem:[#allocation2 + $0x1c0] ss:$24 sps:$4 sm:$0x3f]   ;;  %s10305_s30 = scalar_lea.vmem %s10304_s20, 32  ;;  %p10306_p5 = scmp.lt.s32.totalorder %s11267_s13, %s10304_s20 }
 0x144   : > { %1757 = vmatprep.subr.bf16.mxu1 %v9148_v46  ;;  %v1701_v37 = vsel %vm673_vm0, %v9196_v36, 0  ;;  %v10952_v11 = vld [vmem:[#allocation5] sm:$0x3f]  ;;  %p10307_p9 = scmp.lt.s32.totalorder %s10305_s30, %s10299_s5 }
 0x145   : > { %7844 = vmatmul.mubr.msk.bf16.gmra.mrb[12].mxu0 %vm666_vm1, %v10816_v28  ;;  %7886 = vmatmul.mubr.msk.bf16.gmra.mrb[8].mxu1 %vm666_vm1, %v10843_v47 }
 0x146   : > { %826 = vmatprep.mubr.bf16.mxu0 %v10407_v0  ;;  %1522 = vmatprep.mubr.bf16.mxu1 %v10407_v0  ;;  %p10308_p12 = por %p10307_p9, %p10306_p5 }
 0x148   : > { %p10309_p10 = pnand %p10308_p12, %p10302_p6 }
 0x14d   : > { %7846 = vmatmul.mubr.msk.bf16.vlgmr.msra.gmra.mrb[16].mxu0 %vm666_vm1, %v10802_v15  ;;  %7906 = vmatmul.mubr.msk.bf16.vlgmr.msra.gmra.mrb[0].mxu1 %vm666_vm1, %v10853_v50  ;;  %v9170_v15 = vld [vmem:[#allocation2 + $0x104] ss:$24 sps:$4 sm:$0x3f]  }
 0x14e   : > { %924 = vmatpush1.bf16.msra.mxu0 %v9143_v51  ;;  %836 = vmatprep.mubr.bf16.mxu0 %v10407_v0 }
 0x14f   : > { %1532 = vmatprep.mubr.bf16.mxu1 %v10407_v0  ;;  %1758 = vmatpush1.bf16.msra.mxu1 %v9146_v52 }
 0x150   : > { %7860 = vmatprep.subr.msk.bf16.mxu0 %vm673_vm0, %v9149_v53  ;;  %7926 = vmatprep.subr.msk.bf16.mxu1 %vm673_vm0, %v9151_v55 }
 0x152   : > { %926 = vmatpush1.bf16.msra.mxu0 %v906_v58 }
 0x153   : > { %1760 = vmatpush1.bf16.msra.mxu1 %v1695_v60  ;;  %1025 = vmatprep.subr.bf16.mxu0 %v9157_v59 }
 0x155   : > { %7847 = vmatmul.mubr.msk.bf16.gmra.mrb[20].mxu0 %vm666_vm1, %v10816_v28  ;;  %7907 = vmatmul.mubr.msk.bf16.gmra.mrb[12].mxu1 %vm666_vm1, %v10866_v61  ;;  %v1434_v28 = vsel %vm673_vm0, %v9184_v26, 0 }
 0x156   : > { %955 = vmatprep.mubr.bf16.mxu0 %v10407_v0  ;;  %1789 = vmatprep.mubr.bf16.mxu1 %v10407_v0 }
 0x15d   : > { %7861 = vmatmul.mubr.msk.bf16.vlgmr.msra.gmra.mrb[0].mxu0 %vm666_vm1, %v10804_v16  ;;  %7927 = vmatmul.mubr.msk.bf16.vlgmr.msra.gmra.mrb[0].mxu1 %vm666_vm1, %v10876_v2 }
 0x15e   : > { %1026 = vmatpush1.bf16.msra.mxu0 %v9155_v1  ;;  %965 = vmatprep.mubr.bf16.mxu0 %v10407_v0  ;;  %v1889_v1 = vsub.s32 2, %v10948_v63 }
 0x15f   : > { %1799 = vmatprep.mubr.bf16.mxu1 %v10407_v0  ;;  %7866 = vmatprep.subr.msk.bf16.mxu0 %vm673_vm0, %v9158_v3 }
 0x162   : > { %1028 = vmatpush1.bf16.msra.mxu0 %v918_v7 }
 0x163   : > { %1172 = vmatprep.subr.bf16.mxu0 %v9163_v6 }
 0x165   : > { %7862 = vmatmul.mubr.msk.bf16.gmra.mrb[24].mxu0 %vm666_vm1, %v10818_v29  ;;  %7928 = vmatmul.mubr.msk.bf16.gmra.mrb[16].mxu1 %vm666_vm1, %v10887_v8 }
 0x166   : > { %1057 = vmatprep.mubr.bf16.mxu0 %v10407_v0  ;;  %2019 = vmatprep.mubr.bf16.mxu1 %v10407_v0 }
 0x16d   : > { %7867 = vmatmul.mubr.msk.bf16.vlgmr.msra.gmra.mrb[16].mxu0 %vm666_vm1, %v10804_v16  ;;  %v9175_v16 = vld [vmem:[#allocation2 + $0x124] ss:$24 sps:$4 sm:$0xff]  }
 0x16e   : > { %1173 = vmatpush1.bf16.msra.mxu0 %v9161_v9  ;;  %1067 = vmatprep.mubr.bf16.mxu0 %v10407_v0 }
 0x16f   : > { %7881 = vmatprep.subr.msk.bf16.mxu0 %vm673_vm0, %v9164_v10 }
 0x172   : > { %1175 = vmatpush1.bf16.msra.mxu0 %v1155_v13 }
 0x173   : > { %1274 = vmatprep.subr.bf16.mxu0 %v9169_v12 }
 0x175   : > { %7868 = vmatmul.mubr.msk.bf16.gmra.mrb[28].mxu0 %vm666_vm1, %v10818_v29  ;;  %v9185_v29 = vld [vmem:[#allocation2 + $0x180] ss:$24 sps:$4 sm:$0xff]  }
 0x176   : > { %1204 = vmatprep.mubr.bf16.mxu0 %v10407_v0 }
 0x17d   : > { %7882 = vmatmul.mubr.msk.bf16.vlgmr.msra.gmra.mrb[0].mxu0 %vm666_vm1, %v10830_v35 }
 0x17e   : > { %1275 = vmatpush1.bf16.msra.mxu0 %v9167_v14  ;;  %1214 = vmatprep.mubr.bf16.mxu0 %v10407_v0  ;;  %v10955_v14 = vrot.slane %v10952_v11, %v1889_v1 }
 0x17f   : > { %7887 = vmatprep.subr.msk.bf16.mxu0 %vm673_vm0, %v9170_v15 }
 0x182   : > { %1277 = vmatpush1.bf16.msra.mxu0 %v1167_v18 }
 0x183   : > { %1439 = vmatprep.subr.bf16.mxu0 %v9175_v16 }
 0x185   : > { %7883 = vmatmul.mubr.msk.bf16.gmra.mrb[32].mxu0 %vm666_vm1, %v10843_v47 }
 0x186   : > { %1306 = vmatprep.mubr.bf16.mxu0 %v10407_v0 }
 0x18d   : > { %7888 = vmatmul.mubr.msk.bf16.vlgmr.msra.gmra.mrb[16].mxu0 %vm666_vm1, %v10830_v35  ;;  %v9194_v35 = vld [vmem:[#allocation2 + $0x1c4] ss:$24 sps:$4 sm:$0x3f]  }
 0x18e   : > { %1440 = vmatpush1.bf16.msra.mxu0 %v9173_v19  ;;  %1316 = vmatprep.mubr.bf16.mxu0 %v10407_v0 }
 0x18f   : > { %7902 = vmatprep.subr.msk.bf16.mxu0 %vm673_vm0, %v9176_v20 }
 0x192   : > { %1442 = vmatpush1.bf16.msra.mxu0 %v1422_v23 }
 0x193   : > { %1541 = vmatprep.subr.bf16.mxu0 %v9181_v22 }
 0x195   : > { %7889 = vmatmul.mubr.msk.bf16.gmra.mrb[36].mxu0 %vm666_vm1, %v10843_v47 }
 0x196   : > { %1471 = vmatprep.mubr.bf16.mxu0 %v10407_v0 }
 0x19d   : > { %7903 = vmatmul.mubr.msk.bf16.vlgmr.msra.gmra.mrb[0].mxu0 %vm666_vm1, %v10853_v50 }
 0x19e   : > { %1542 = vmatpush1.bf16.msra.mxu0 %v9179_v24  ;;  %1481 = vmatprep.mubr.bf16.mxu0 %v10407_v0 }
 0x19f   : > { %7908 = vmatprep.subr.msk.bf16.mxu0 %vm673_vm0, %v9182_v25 }
 0x1a2   : > { %1544 = vmatpush1.bf16.msra.mxu0 %v1434_v28 }
 0x1a3   : > { %1706 = vmatprep.subr.bf16.mxu0 %v9187_v27 }
 0x1a5   : > { %7904 = vmatmul.mubr.msk.bf16.gmra.mrb[40].mxu0 %vm666_vm1, %v10866_v61 }
 0x1a6   : > { %1573 = vmatprep.mubr.bf16.mxu0 %v10407_v0 }
 0x1ad   : > { %7909 = vmatmul.mubr.msk.bf16.vlgmr.msra.gmra.mrb[16].mxu0 %vm666_vm1, %v10853_v50 }
 0x1ae   : > { %1707 = vmatpush1.bf16.msra.mxu0 %v9185_v29  ;;  %1583 = vmatprep.mubr.bf16.mxu0 %v10407_v0 }
 0x1af   : > { %7923 = vmatprep.subr.msk.bf16.mxu0 %vm673_vm0, %v9188_v30 }
 0x1b2   : > { %1709 = vmatpush1.bf16.msra.mxu0 %v1689_v33 }
 0x1b3   : > { %1808 = vmatprep.subr.bf16.mxu0 %v9193_v32 }
 0x1b5   : > { %7910 = vmatmul.mubr.msk.bf16.gmra.mrb[44].mxu0 %vm666_vm1, %v10866_v61 }
 0x1b6   : > { %1738 = vmatprep.mubr.bf16.mxu0 %v10407_v0 }
 0x1bd   : > { %7924 = vmatmul.mubr.msk.bf16.vlgmr.msra.gmra.mrb[0].mxu0 %vm666_vm1, %v10876_v2 }
 0x1be   : > { %1809 = vmatpush1.bf16.msra.mxu0 %v9191_v34  ;;  %1748 = vmatprep.mubr.bf16.mxu0 %v10407_v0 }
 0x1bf   : > { %7929 = vmatprep.subr.msk.bf16.mxu0 %vm673_vm0, %v9194_v35 }
 0x1c2   : > { %1811 = vmatpush1.bf16.msra.mxu0 %v1701_v37 }
 0x1c5   : > { %7925 = vmatmul.mubr.msk.bf16.gmra.mrb[48].mxu0 %vm666_vm1, %v10887_v8 }
 0x1c6   : > { %1840 = vmatprep.mubr.bf16.mxu0 %v10407_v0 }
 0x1cd   : > { %7930 = vmatmul.mubr.msk.bf16.vlgmr.msra.gmra.mrb[16].mxu0 %vm666_vm1, %v10876_v2  ;;  %v1893_v2 = vsub.s32 3, %v10948_v63 }
 0x1ce   : > { %1850 = vmatprep.mubr.bf16.mxu0 %v10407_v0 }
 0x1cf   : > { %v10958_v17 = vrot.slane %v10952_v11, %v1893_v2 }
 0x1d5   : > { %7931 = vmatmul.mubr.msk.bf16.gmra.mrb[52].mxu0 %vm666_vm1, %v10887_v8 }
 0x208   : > { %v736_v38 = vpop.f32.mrb[4].mxu0  ;;  %v1018_v39 = vpop.f32.mrb[4].mxu1 }
 0x209   : > { %v738_v40 = vpop.f32.mrb[5].mxu0  ;;  %v1020_v41 = vpop.f32.mrb[5].mxu1 }
 0x20a   : > { %v740_v42 = vpop.f32.mrb[6].mxu0  ;;  %v1022_v43 = vpop.f32.mrb[6].mxu1 }
 0x20b   : > { %v741_v44 = vpop.f32.mrb[7].mxu0  ;;  %v1023_v45 = vpop.f32.mrb[7].mxu1 }
 0x210   : > { %v777_v46 = vpop.f32.mrb[8].mxu0 }
 0x211   : > { %v779_v47 = vpop.f32.mrb[9].mxu0 }
 0x212   : > { %v781_v48 = vpop.f32.mrb[10].mxu0 }
 0x213   : > { %v783_v49 = vpop.f32.mrb[11].mxu0 }
 0x218   : > { %v787_v50 = vpop.f32.mrb[12].mxu0  ;;  %v1267_v51 = vpop.f32.mrb[8].mxu1 }
 0x219   : > { %v1019_v52 = vadd.f32 %v1018_v39, %v787_v50  ;;  %v789_v53 = vpop.f32.mrb[13].mxu0  ;;  %v1269_v54 = vpop.f32.mrb[9].mxu1 }
 0x21a   : > { %v1021_v55 = vadd.f32 %v1020_v41, %v789_v53  ;;  %v791_v56 = vpop.f32.mrb[14].mxu0  ;;  %v1271_v57 = vpop.f32.mrb[10].mxu1 }
 0x21b   : > { %v1339_v58 = vadd.f32 %v1267_v51, %v1019_v52  ;;  %v792_v59 = vpop.f32.mrb[15].mxu0  ;;  %v1272_v60 = vpop.f32.mrb[11].mxu1 }
 0x21c   : > { %v1340_v61 = vadd.f32 %v1269_v54, %v1021_v55 }
 0x228   : > { %v838_v3 = vpop.f32.mrb[20].mxu0  ;;  %v1534_v4 = vpop.f32.mrb[12].mxu1 }
 0x229   : > { %v1606_v5 = vadd.f32 %v1534_v4, %v1339_v58  ;;  %v840_v6 = vpop.f32.mrb[21].mxu0  ;;  %v1536_v7 = vpop.f32.mrb[13].mxu1 }
 0x22a   : > { %v1607_v8 = vadd.f32 %v1536_v7, %v1340_v61  ;;  %v842_v9 = vpop.f32.mrb[22].mxu0  ;;  %v1538_v10 = vpop.f32.mrb[14].mxu1 }
 0x22b   : > { %v843_v12 = vpop.f32.mrb[23].mxu0  ;;  %v1539_v13 = vpop.f32.mrb[15].mxu1 }
 0x22c   : > { %v1881_v12 = vsub.s32 0, %v10948_v63 }
 0x230   : > { %v1791_v15 = vpop.f32.mrb[0].mxu1 }
 0x231   : > { %v8877_v16 = vadd.f32 %v1791_v15, %v777_v46  ;;  %v1793_v18 = vpop.f32.mrb[1].mxu1 }
 0x232   : > { %v8878_v19 = vadd.f32 %v1793_v18, %v779_v47  ;;  %v1795_v20 = vpop.f32.mrb[2].mxu1 }
 0x233   : > { %v1911_v21 = vadd.f32 %v8877_v16, %v10955_v14  ;;  %v8879_v22 = vadd.f32 %v1795_v20, %v781_v48  ;;  %v1797_v23 = vpop.f32.mrb[3].mxu1  ;;  %v1885_v16 = vsub.s32 1, %v10948_v63 }
 0x234   : > { %v1912_v24 = vadd.f32 %v8878_v19, %v10958_v17  ;;  %v8880_v25 = vadd.f32 %v1797_v23, %v783_v49  ;;  %v1882_v19 = vrot.slane %v10952_v11, %v1881_v12 }
 0x235   : > { %v1917_v26 = vadd.f32 %v8879_v22, %v10955_v14  ;;  %v1929_v28 = vmax.f32 %v1911_v21, 0.0  ;;  %v1886_v20 = vrot.slane %v10952_v11, %v1885_v16 }
 0x236   : > { %v1918_v27 = vadd.f32 %v8880_v25, %v10958_v17  ;;  %v1930_v30 = vmax.f32 %v1912_v24, 0.0 }
 0x237   : > { %v1935_v29 = vmax.f32 %v1917_v26, 0.0 }
 0x238   : > { %v1936_v31 = vmax.f32 %v1918_v27, 0.0  ;;  %v967_v32 = vpop.f32.mrb[24].mxu0  ;;  %v1801_v33 = vpop.f32.mrb[16].mxu1 }
 0x239   : > { %v10964_v34 = vpack.c.bf16 %v1935_v29, %v1929_v28  ;;  %v968_v35 = vadd.f32 %v967_v32, %v736_v38  ;;  %v10966_v36 = vadd.f32 %v1801_v33, %v1606_v5  ;;  %v969_v37 = vpop.f32.mrb[25].mxu0  ;;  %v1803_v39 = vpop.f32.mrb[17].mxu1 }
 0x23a   : > { %v970_v41 = vadd.f32 %v969_v37, %v738_v40  ;;  %v10968_v42 = vadd.f32 %v1803_v39, %v1607_v8  ;;  %v971_v43 = vpop.f32.mrb[26].mxu0  ;;  %v1805_v44 = vpop.f32.mrb[18].mxu1  ;;  %v10970_v45 = vpack.c.bf16 %v1936_v31, %v1930_v30 }
 0x23b   : > { %v972_v46 = vpop.f32.mrb[27].mxu0  ;;  %v1806_v47 = vpop.f32.mrb[19].mxu1  ;;  %v1897_v43 = vsub.s32 4, %v10948_v63 }
 0x23c   : > { %v1901_v47 = vsub.s32 5, %v10948_v63  ;;  %v9944_v63 = vld [vmem:[#allocation13 + $0xc0] sm:$0xff]  }
 0x248   : > { %v1069_v48 = vpop.f32.mrb[28].mxu0 }
 0x249   : > { %v1070_v49 = vadd.f32 %v1069_v48, %v838_v3  ;;  %v1071_v50 = vpop.f32.mrb[29].mxu0 }
 0x24a   : > { %v1072_v51 = vadd.f32 %v1071_v50, %v840_v6  ;;  %v1073_v52 = vpop.f32.mrb[30].mxu0 }
 0x24b   : > { %v1074_v53 = vpop.f32.mrb[31].mxu0  ;;  %v1898_v52 = vrot.slane %v10952_v11, %v1897_v43  ;;  %v9216_v43 = vld [vmem:[#allocation7 + $0x7c] ss:$12 sps:$4 sm:$0xff]  }
 0x24c   : > { %v1923_v53 = vadd.f32 %v10955_v14, %v10966_v36  ;;  %v9197_v14 = vld [vmem:[%s11311_s3] sm:$0x3f]  }
 0x258   : > { %v1216_v38 = vpop.f32.mrb[32].mxu0 }
 0x259   : > { %v1337_v54 = vadd.f32 %v1216_v38, %v968_v35  ;;  %v1218_v55 = vpop.f32.mrb[33].mxu0  ;;  %v1924_v38 = vadd.f32 %v10958_v17, %v10968_v42 }
 0x25a   : > { %v1338_v56 = vadd.f32 %v1218_v55, %v970_v41  ;;  %v1220_v57 = vpop.f32.mrb[34].mxu0  ;;  %v1902_v55 = vrot.slane %v10952_v11, %v1901_v47  ;;  %v9217_v47 = vld [vmem:[#allocation7 + $0x90] ss:$12 sps:$4 sm:$0xff]  }
 0x25b   : > { %v1221_v40 = vpop.f32.mrb[35].mxu0 }
 0x268   : > { %v1318_v58 = vpop.f32.mrb[36].mxu0 }
 0x269   : > { %v1341_v59 = vadd.f32 %v1318_v58, %v1070_v49  ;;  %v1320_v60 = vpop.f32.mrb[37].mxu0 }
 0x26a   : > { %v1342_v61 = vadd.f32 %v1320_v60, %v1072_v51  ;;  %v1322_v62 = vpop.f32.mrb[38].mxu0 }
 0x26b   : > { %v1323_v1 = vpop.f32.mrb[39].mxu0  ;;  %v1942_v62 = vmax.f32 %v1924_v38, 0.0  ;;  %v9230_v38 = vld [vmem:[#allocation7 + $0xdc] ss:$12 sps:$4 sm:$0xff]  }
 0x278   : > { %v1483_v2 = vpop.f32.mrb[40].mxu0 }
 0x279   : > { %v1604_v4 = vadd.f32 %v1483_v2, %v1337_v54  ;;  %v1485_v5 = vpop.f32.mrb[41].mxu0 }
 0x27a   : > { %v1605_v3 = vadd.f32 %v1485_v5, %v1338_v56  ;;  %v1487_v7 = vpop.f32.mrb[42].mxu0 }
 0x27b   : > { %v1488_v6 = vpop.f32.mrb[43].mxu0 }
 0x288   : > { %v1585_v8 = vpop.f32.mrb[44].mxu0 }
 0x289   : > { %v10972_v9 = vadd.f32 %v1585_v8, %v1341_v59  ;;  %v1587_v10 = vpop.f32.mrb[45].mxu0 }
 0x28a   : > { %v10975_v13 = vadd.f32 %v1587_v10, %v1342_v61  ;;  %v1589_v15 = vpop.f32.mrb[46].mxu0  ;;  %v1941_v61 = vmax.f32 %v1923_v53, 0.0  ;;  %v9227_v53 = vld [vmem:[#allocation7 + $0x8] ss:$12 sps:$4 sm:$0xff]  }
 0x28b   : > { %v1590_v18 = vpop.f32.mrb[47].mxu0 }
 0x28c   : > { %v1953_v5 = vpack.c.bf16 %v1941_v61, %v1941_v61  ;;  %v9241_v61 = vld [vmem:[#allocation7 + $0x110] ss:$12 sps:$4 sm:$0xff]  }
 0x290   : > { %v1740_v21 = vpop.f32.mrb[0].mxu0 }
 0x291   : > { %v1909_v22 = vadd.f32 %v1882_v19, %v1740_v21  ;;  %v1742_v23 = vpop.f32.mrb[1].mxu0 }
 0x292   : > { %v1910_v24 = vadd.f32 %v1886_v20, %v1742_v23  ;;  %v1744_v25 = vpop.f32.mrb[2].mxu0 }
 0x293   : > { %v1915_v26 = vadd.f32 %v1882_v19, %v1744_v25  ;;  %v1746_v27 = vpop.f32.mrb[3].mxu0  ;;  %v1927_v29 = vmax.f32 %v1909_v22, 0.0  ;;  %v1976_v22 = vsel %vm1968_vm2, %v1953_v5, 0  ;;  %v9252_v5 = vld [vmem:[#allocation7 + $0x80] ss:$12 sps:$4 sm:$0xff]  }
 0x294   : > { %v1916_v28 = vadd.f32 %v1886_v20, %v1746_v27  ;;  %v1928_v31 = vmax.f32 %v1910_v24, 0.0 }
 0x295   : > { %v1933_v30 = vmax.f32 %v1915_v26, 0.0 }
 0x296   : > { %v1934_v32 = vmax.f32 %v1916_v28, 0.0 }
 0x297   : > { %v10984_v33 = vpack.c.bf16 %v1933_v30, %v1927_v29  ;;  %v9201_v30 = vld [vmem:[#allocation7 + $0x4] ss:$12 sps:$4 sm:$0xff]  }
 0x298   : > { %v10986_v35 = vpack.c.bf16 %v1934_v32, %v1928_v31  ;;  %v1750_v37 = vpop.f32.mrb[48].mxu0  ;;  %v9204_v31 = vld [vmem:[#allocation7 + $0x1c] ss:$12 sps:$4 sm:$0xff]   ;;  %v9207_v32 = vld [vmem:[#allocation7 + $0x34] ss:$12 sps:$4 sm:$0xff]  }
 0x299   : > { %v1871_v39 = vadd.f32 %v1750_v37, %v1604_v4  ;;  %v1752_v41 = vpop.f32.mrb[49].mxu0  ;;  %v9208_v37 = vld [vmem:[#allocation7 + $0x48] ss:$12 sps:$4 sm:$0xff]  }
 0x29a   : > { %v1872_v44 = vadd.f32 %v1752_v41, %v1605_v3  ;;  %v1754_v46 = vpop.f32.mrb[50].mxu0  ;;  %1987 = vmatprep.subr.bf16.mxu1 %v10986_v35  ;;  %v1954_v3 = vpack.c.bf16 %v1942_v62, %v1942_v62  ;;  %v9211_v41 = vld [vmem:[#allocation7 + $0x60] ss:$12 sps:$4 sm:$0xff]   ;;  %v9238_v62 = vld [vmem:[#allocation7 + $0x108] ss:$12 sps:$4 sm:$0xff]  }
 0x29b   : > { %v1921_v48 = vadd.f32 %v1882_v19, %v1871_v39  ;;  %v1755_v49 = vpop.f32.mrb[51].mxu0  ;;  %1988 = vmatpush1.bf16.msra.mxu1 %v10984_v33  ;;  %v9213_v39 = vld [vmem:[#allocation7 + $0x64] ss:$12 sps:$4 sm:$0xff]   ;;  %v9219_v46 = vld [vmem:[#allocation7 + $0x94] ss:$12 sps:$4 sm:$0xff]  }
 0x29c   : > { %v1922_v50 = vadd.f32 %v1886_v20, %v1872_v44  ;;  %v9214_v44 = vld [vmem:[#allocation7 + $0x78] ss:$12 sps:$4 sm:$0xff]   ;;  %v9220_v49 = vld [vmem:[#allocation7 + $0xa8] ss:$12 sps:$4 sm:$0xff]  }
 0x29d   : > { %v1939_v51 = vmax.f32 %v1921_v48, 0.0  ;;  %v9222_v48 = vld [vmem:[#allocation7 + $0xac] ss:$12 sps:$4 sm:$0xff]  }
 0x29e   : > { %v1940_v54 = vmax.f32 %v1922_v50, 0.0  ;;  %v9225_v50 = vld [vmem:[#allocation7 + $0xc4] ss:$12 sps:$4 sm:$0xff]  }
 0x29f   : > { %v1951_v56 = vpack.c.bf16 %v1939_v51, %v1939_v51  ;;  %v9226_v51 = vld [vmem:[#allocation7 + $0xc8] ss:$12 sps:$4 sm:$0xff]  }
 0x2a0   : > { %v1952_v57 = vpack.c.bf16 %v1940_v54, %v1940_v54  ;;  %v1842_v40 = vpop.f32.mrb[16].mxu0  ;;  %8556 = vmatprep.subr.bf16.mxu0 %v9226_v51  ;;  %v9231_v54 = vld [vmem:[#allocation7 + $0xe0] ss:$12 sps:$4 sm:$0xff]  }
 0x2a1   : > { %v1913_v58 = vadd.f32 %v1898_v52, %v1842_v40  ;;  %v1844_v59 = vpop.f32.mrb[17].mxu0  ;;  %v1970_v60 = vsel %vm1968_vm2, %v1951_v56, 0  ;;  %8557 = vmatpush3.bf16.msra.mxu0 %v9227_v53  ;;  %v9232_v56 = vld [vmem:[#allocation7 + $0x20] ss:$12 sps:$4 sm:$0xff]   ;;  %v9236_v40 = vld [vmem:[#allocation7 + $0xf8] ss:$12 sps:$4 sm:$0xff]  }
 0x2a2   : > { %v1914_v1 = vadd.f32 %v1902_v55, %v1844_v59  ;;  %v1846_v2 = vpop.f32.mrb[18].mxu0  ;;  %7933 = vmatprep.subr.msk.bf16.mxu1 %vm1968_vm2, %v1952_v57  ;;  %8558 = vmatprep.subr.bf16.mxu0 %v9231_v54  ;;  %v9237_v59 = vld [vmem:[#allocation7 + $0x38] ss:$12 sps:$4 sm:$0xff]  }
 0x2a3   : > { %v1919_v17 = vadd.f32 %v1898_v52, %v1846_v2  ;;  %v1848_v11 = vpop.f32.mrb[19].mxu0  ;;  %1990 = vmatpush1.bf16.msra.mxu1 %v1970_v60  ;;  %v1931_v42 = vmax.f32 %v1913_v58, 0.0  ;;  %v9233_v58 = vld [vmem:[#allocation7 + $0xf0] ss:$12 sps:$4 sm:$0xff]   ;;  %v9268_v54 = vld [vmem:[#allocation7 + $0x198] ss:$12 sps:$4 sm:$0xff]  }
 0x2a4   : > { %v1920_v36 = vadd.f32 %v1902_v55, %v1848_v11  ;;  %2030 = vmatprep.subr.bf16.mxu1 %v10970_v45  ;;  %v1932_v7 = vmax.f32 %v1914_v1, 0.0  ;;  %v9242_v1 = vld [vmem:[#allocation7 + $0x50] ss:$12 sps:$4 sm:$0xff]   ;;  %v9247_v11 = vld [vmem:[#allocation7 + $0x68] ss:$12 sps:$4 sm:$0xff]  }
 0x2a5   : > { %v1937_v4 = vmax.f32 %v1919_v17, 0.0  ;;  %8559 = vmatpush3.bf16.msra.mxu0 %v9232_v56  ;;  %v9245_v2 = vld [vmem:[#allocation7 + $0x124] ss:$12 sps:$4 sm:$0xff]   ;;  %v9243_v17 = vld [vmem:[#allocation7 + $0x120] ss:$12 sps:$4 sm:$0xff]  }
 0x2a6   : > { %v1938_v6 = vmax.f32 %v1920_v36, 0.0  ;;  %7934 = vmatmul.mubr.msk.bf16.vlgmr.msra.gmra.mrb[20].mxu1 %vm1964_vm3, %v9197_v14  ;;  %8560 = vmatprep.subr.bf16.mxu0 %v9236_v40  ;;  %v9250_v36 = vld [vmem:[#allocation7 + $0x13c] ss:$12 sps:$4 sm:$0xff]   ;;  %v9275_v40 = vld [vmem:[#allocation7 + $0x1b4] ss:$12 sps:$4 sm:$0xff]  }
 0x2a7   : > { %v1949_v8 = vpack.c.bf16 %v1937_v4, %v1931_v42  ;;  %2031 = vmatpush1.bf16.msra.mxu1 %v10964_v34  ;;  %2062 = vmatprep.mubr.bf16.mxu1 %v10407_v0  ;;  %v9251_v42 = vld [vmem:[#allocation7 + $0x140] ss:$12 sps:$4 sm:$0xff]   ;;  %v9248_v4 = vld [vmem:[#allocation7 + $0x138] ss:$12 sps:$4 sm:$0xff]  }
 0x2a8   : > { %v1950_v10 = vpack.c.bf16 %v1938_v6, %v1932_v7  ;;  %v1852_v15 = vpop.f32.mrb[52].mxu0  ;;  %7935 = vmatprep.subr.msk.bf16.mxu1 %vm1968_vm2, %v1954_v3  ;;  %v9256_v7 = vld [vmem:[#allocation7 + $0x158] ss:$12 sps:$4 sm:$0xff]   ;;  %v9253_v6 = vld [vmem:[#allocation7 + $0x150] ss:$12 sps:$4 sm:$0xff]  }
 0x2a9   : > { %v1875_v18 = vadd.f32 %v1852_v15, %v10972_v9  ;;  %v1854_v19 = vpop.f32.mrb[53].mxu0  ;;  %8561 = vmatpush3.bf16.msra.mxu0 %v9237_v59  ;;  %v9261_v15 = vld [vmem:[#allocation7 + $0x170] ss:$12 sps:$4 sm:$0xff]  }
 0x2aa   : > { %v1876_v20 = vadd.f32 %v1854_v19, %v10975_v13  ;;  %v1856_v21 = vpop.f32.mrb[54].mxu0  ;;  %v9198_v13 = vld [vmem:[%s11311_s3 + $0x8] sm:$0x3f]   ;;  %8562 = vmatprep.subr.bf16.mxu0 %v9241_v61  ;;  %v9262_v19 = vld [vmem:[#allocation7 + $0xb0] ss:$12 sps:$4 sm:$0xff]  }
 0x2ab   : > { %v1925_v23 = vadd.f32 %v1898_v52, %v1875_v18  ;;  %v1857_v24 = vpop.f32.mrb[55].mxu0  ;;  %2033 = vmatpush1.bf16.msra.mxu1 %v1976_v22  ;;  %v9223_v52 = vld [vmem:[#allocation7 + $0xc0] ss:$12 sps:$4 sm:$0xff]   ;;  %v9258_v18 = vld [vmem:[#allocation7 + $0x168] ss:$12 sps:$4 sm:$0xff]  }
 0x2ac   : > { %v1926_v25 = vadd.f32 %v1902_v55, %v1876_v20  ;;  %2073 = vmatprep.subr.bf16.mxu1 %v1950_v10  ;;  %v9228_v55 = vld [vmem:[#allocation7 + $0xd8] ss:$12 sps:$4 sm:$0xff]   ;;  %v9266_v21 = vld [vmem:[#allocation7 + $0x248] ss:$12 sps:$4 sm:$0xff]  }
 0x2ad   : > { %v1943_v26 = vmax.f32 %v1925_v23, 0.0  ;;  %8563 = vmatpush3.bf16.msra.mxu0 %v9242_v1  ;;  %v9265_v20 = vld [vmem:[#allocation7 + $0x184] ss:$12 sps:$4 sm:$0xff]  }
 0x2ae   : > { %v1944_v27 = vmax.f32 %v1926_v25, 0.0  ;;  %7936 = vmatmul.mubr.msk.bf16.vlgmr.msra.gmra.mrb[24].mxu1 %vm1964_vm3, %v9197_v14  ;;  %v9277_v1 = vld [vmem:[#allocation7 + $0x1b8] ss:$12 sps:$4 sm:$0xff]  }
 0x2af   : > { %v1955_v28 = vpack.c.bf16 %v1943_v26, %v1943_v26  ;;  %2074 = vmatpush1.bf16.msra.mxu1 %v1949_v8  ;;  %2105 = vmatprep.mubr.bf16.mxu1 %v10407_v0 }
 0x2b0   : > { %v1956_v9 = vpack.c.bf16 %v1944_v27, %v1944_v27 }
 0x2b1   : > { %v1982_v29 = vsel %vm1968_vm2, %v1955_v28, 0 }
 0x2b2   : > { %7937 = vmatprep.subr.msk.bf16.mxu1 %vm1968_vm2, %v1956_v9 }
 0x2b3   : > { %2076 = vmatpush1.bf16.msra.mxu1 %v1982_v29 }
 0x2b4   : > { %2127 = vmatprep.subr.bf16.mxu1 %v10986_v35  ;;  %v9210_v35 = vld [vmem:[#allocation7 + $0x4c] ss:$12 sps:$4 sm:$0xff]  }
 0x2b6   : > { %7938 = vmatmul.mubr.msk.bf16.vlgmr.msra.gmra.mrb[28].mxu1 %vm1964_vm3, %v9197_v14  ;;  %v9246_v14 = vld [vmem:[#allocation7 + $0x128] ss:$12 sps:$4 sm:$0xff]  }
 0x2b7   : > { %2128 = vmatpush1.bf16.msra.mxu1 %v10984_v33  ;;  %2159 = vmatprep.mubr.bf16.mxu1 %v10407_v0  ;;  %v9205_v33 = vld [vmem:[#allocation7 + $0x30] ss:$12 sps:$4 sm:$0xff]  }
 0x2b8   : > { %7942 = vmatprep.subr.msk.bf16.mxu1 %vm1968_vm2, %v1952_v57  ;;  %v9235_v57 = vld [vmem:[#allocation7 + $0xf4] ss:$12 sps:$4 sm:$0xff]   ;;  %8564 = vmatprep.subr.bf16.mxu0 %v9246_v14  ;;  %v9281_v14 = vld [vmem:[#allocation7 + $0x290] ss:$12 sps:$4 sm:$0xff]  }
 0x2b9   : > { %8565 = vmatpush3.bf16.msra.mxu0 %v9247_v11 }
 0x2ba   : > { %8566 = vmatprep.subr.bf16.mxu0 %v9251_v42 }
 0x2bb   : > { %2130 = vmatpush1.bf16.msra.mxu1 %v1970_v60  ;;  %v9240_v60 = vld [vmem:[#allocation7 + $0x10c] ss:$12 sps:$4 sm:$0xff]  }
 0x2bc   : > { %2170 = vmatprep.subr.bf16.mxu1 %v10970_v45  ;;  %v9199_v45 = vld [vmem:[#allocation7] ss:$12 sps:$4 sm:$0xff]  }
 0x2bd   : > { %8567 = vmatpush3.bf16.msra.mxu0 %v9252_v5  ;;  %v9278_v5 = vld [vmem:[#allocation7 + $0x1c8] ss:$12 sps:$4 sm:$0xff]  }
 0x2be   : > { %7943 = vmatmul.mubr.msk.bf16.vlgmr.msra.gmra.mrb[32].mxu1 %vm1964_vm3, %v9198_v13  ;;  %8568 = vmatprep.subr.bf16.mxu0 %v9256_v7 }
 0x2bf   : > { %2171 = vmatpush1.bf16.msra.mxu1 %v10964_v34  ;;  %2202 = vmatprep.mubr.bf16.mxu1 %v10407_v0  ;;  %v9202_v34 = vld [vmem:[#allocation7 + $0x18] ss:$12 sps:$4 sm:$0xff]  }
 0x2c0   : > { %7944 = vmatprep.subr.msk.bf16.mxu1 %vm1968_vm2, %v1954_v3  ;;  %v9255_v3 = vld [vmem:[#allocation7 + $0x154] ss:$12 sps:$4 sm:$0xff]  }
 0x2c3   : > { %2173 = vmatpush1.bf16.msra.mxu1 %v1976_v22 }
 0x2c4   : > { %2213 = vmatprep.subr.bf16.mxu1 %v1950_v10  ;;  %v9260_v10 = vld [vmem:[#allocation7 + $0x16c] ss:$12 sps:$4 sm:$0xff]  }
 0x2c6   : > { %7945 = vmatmul.mubr.msk.bf16.vlgmr.msra.gmra.mrb[36].mxu1 %vm1964_vm3, %v9198_v13 }
 0x2c7   : > { %2214 = vmatpush1.bf16.msra.mxu1 %v1949_v8  ;;  %2245 = vmatprep.mubr.bf16.mxu1 %v10407_v0  ;;  %v9257_v8 = vld [vmem:[#allocation7 + $0x98] ss:$12 sps:$4 sm:$0xff]  }
 0x2c8   : > { %7946 = vmatprep.subr.msk.bf16.mxu1 %vm1968_vm2, %v1956_v9  ;;  %8569 = vmatpush3.bf16.msra.mxu0 %v9257_v8  ;;  %v9285_v8 = vld [vmem:[#allocation7 + $0x1e4] ss:$12 sps:$4 sm:$0xff]  }
 0x2c9   : > { %8570 = vmatprep.subr.bf16.mxu0 %v9261_v15 }
 0x2cb   : > { %2216 = vmatpush1.bf16.msra.mxu1 %v1982_v29 }
 0x2cc   : > { %3234 = vmatprep.subr.bf16.mxu1 %v9201_v30  ;;  %8571 = vmatpush3.bf16.msra.mxu0 %v9262_v19 }
 0x2cd   : > { %8578 = vmatprep.subr.bf16.mxu0 %v9266_v21  ;;  %v9287_v21 = vld [vmem:[#allocation7 + $0x1e8] ss:$12 sps:$4 sm:$0xff]  }
 0x2ce   : > { %7947 = vmatmul.mubr.msk.bf16.vlgmr.msra.gmra.mrb[40].mxu1 %vm1964_vm3, %v9198_v13 }
 0x2cf   : > { %3235 = vmatpush1.bf16.msra.mxu1 %v9199_v45 }
 0x2d0   : > { %3236 = vmatprep.subr.bf16.mxu1 %v9204_v31 }
 0x2d3   : > { %3237 = vmatpush1.bf16.msra.mxu1 %v9202_v34 }
 0x2d4   : > { %3238 = vmatprep.subr.bf16.mxu1 %v9207_v32 }
 0x2d7   : > { %3239 = vmatpush1.bf16.msra.mxu1 %v9205_v33 }
 0x2d8   : > { %3240 = vmatprep.subr.bf16.mxu1 %v9210_v35 }
 0x2db   : > { %3241 = vmatpush1.bf16.msra.mxu1 %v9208_v37 }
 0x2dc   : > { %3242 = vmatprep.subr.bf16.mxu1 %v9213_v39 }
 0x2df   : > { %3243 = vmatpush1.bf16.msra.mxu1 %v9211_v41 }
 0x2e0   : > { %3244 = vmatprep.subr.bf16.mxu1 %v9216_v43 }
 0x2e3   : > { %3245 = vmatpush1.bf16.msra.mxu1 %v9214_v44 }
 0x2e4   : > { %3246 = vmatprep.subr.bf16.mxu1 %v9219_v46  ;;  %v9263_v46 = vld [vmem:[#allocation7 + $0x180] ss:$12 sps:$4 sm:$0xff]  }
 0x2e7   : > { %3247 = vmatpush1.bf16.msra.mxu1 %v9217_v47  ;;  %v9267_v47 = vld [vmem:[#allocation7 + $0x188] ss:$12 sps:$4 sm:$0xff]  }
 0x2e8   : > { %3248 = vmatprep.subr.bf16.mxu1 %v9222_v48  ;;  %v9270_v48 = vld [vmem:[#allocation7 + $0x19c] ss:$12 sps:$4 sm:$0xff]  }
 0x2eb   : > { %3249 = vmatpush1.bf16.msra.mxu1 %v9220_v49  ;;  %v9271_v49 = vld [vmem:[#allocation7 + $0x260] ss:$12 sps:$4 sm:$0xff]  }
 0x2ec   : > { %3250 = vmatprep.subr.bf16.mxu1 %v9225_v50 }
 0x2ef   : > { %3251 = vmatpush1.bf16.msra.mxu1 %v9223_v52 }
 0x2f0   : > { %3252 = vmatprep.subr.bf16.mxu1 %v9230_v38 }
 0x2f3   : > { %3253 = vmatpush1.bf16.msra.mxu1 %v9228_v55  ;;  %v9272_v55 = vld [vmem:[#allocation7 + $0x1a0] ss:$12 sps:$4 sm:$0xff]  }
 0x2f4   : > { %3254 = vmatprep.subr.bf16.mxu1 %v9235_v57 }
 0x2f7   : > { %3255 = vmatpush1.bf16.msra.mxu1 %v9233_v58  ;;  %v9276_v58 = vld [vmem:[#allocation7 + $0x278] ss:$12 sps:$4 sm:$0xff]  }
 0x2f8   : > { %3256 = vmatprep.subr.bf16.mxu1 %v9240_v60 }
 0x2fb   : > { %3257 = vmatpush1.bf16.msra.mxu1 %v9238_v62  ;;  %v9273_v62 = vld [vmem:[#allocation7 + $0x1b0] ss:$12 sps:$4 sm:$0xff]  }
 0x2fc   : > { %3258 = vmatprep.subr.bf16.mxu1 %v9245_v2  ;;  %v9280_v2 = vld [vmem:[#allocation7 + $0x1cc] ss:$12 sps:$4 sm:$0xff]  }
 0x2ff   : > { %3259 = vmatpush1.bf16.msra.mxu1 %v9243_v17 }
 0x300   : > { %3260 = vmatprep.subr.bf16.mxu1 %v9250_v36 }
 0x303   : > { %3261 = vmatpush1.bf16.msra.mxu1 %v9248_v4 }
 0x304   : > { %3262 = vmatprep.subr.bf16.mxu1 %v9255_v3  ;;  %v9282_v3 = vld [vmem:[#allocation7 + $0x1d0] ss:$12 sps:$4 sm:$0xff]  }
 0x307   : > { %3263 = vmatpush1.bf16.msra.mxu1 %v9253_v6 }
 0x308   : > { %3264 = vmatprep.subr.bf16.mxu1 %v9260_v10  ;;  %v9286_v10 = vld [vmem:[#allocation7 + $0x2a8] ss:$12 sps:$4 sm:$0xff]  }
 0x30b   : > { %3265 = vmatpush1.bf16.msra.mxu1 %v9258_v18 }
 0x30c   : > { %3277 = vmatprep.subr.bf16.mxu1 %v9265_v20  ;;  %v9283_v20 = vld [vmem:[#allocation7 + $0x1e0] ss:$12 sps:$4 sm:$0xff]  }
 0x379   : > { %v2021_v22 = vpop.f32.mrb[20].mxu1 }
 0x37a   : > { %v2023_v23 = vpop.f32.mrb[21].mxu1 }
 0x37b   : > { %v2025_v24 = vpop.f32.mrb[22].mxu1 }
 0x37c   : > { %v2027_v25 = vpop.f32.mrb[23].mxu1 }
 0x381   : > { %v2064_v26 = vpop.f32.mrb[24].mxu1 }
 0x382   : > { %v2066_v27 = vpop.f32.mrb[25].mxu1 }
 0x383   : > { %v2068_v28 = vpop.f32.mrb[26].mxu1 }
 0x384   : > { %v2070_v9 = vpop.f32.mrb[27].mxu1 }
 0x389   : > { %v11032_v29 = vpop.f32.mrb[28].mxu1 }
 0x38a   : > { %v11034_v13 = vpop.f32.mrb[29].mxu1 }
 0x38b   : > { %v11036_v30 = vpop.f32.mrb[30].mxu1 }
 0x38c   : > { %v11038_v45 = vpop.f32.mrb[31].mxu1 }
 0x391   : > { %v2161_v31 = vpop.f32.mrb[32].mxu1 }
 0x392   : > { %v2256_v34 = vmax.f32 %v2021_v22, %v2161_v31  ;;  %v2163_v32 = vpop.f32.mrb[33].mxu1  ;;  %v9290_v22 = vld [vmem:[#allocation7 + $0x1fc] ss:$12 sps:$4 sm:$0xff]   ;;  %v9305_v31 = vld [vmem:[#allocation7 + $0x244] ss:$12 sps:$4 sm:$0xff]  }
 0x393   : > { %v2257_v33 = vmax.f32 %v2023_v23, %v2163_v32  ;;  %v2165_v35 = vpop.f32.mrb[34].mxu1  ;;  %v9291_v23 = vld [vmem:[#allocation7 + $0x2c0] ss:$12 sps:$4 sm:$0xff]  }
 0x394   : > { %v2262_v37 = vmax.f32 %v2025_v24, %v2165_v35  ;;  %v2167_v39 = vpop.f32.mrb[35].mxu1  ;;  %v9288_v24 = vld [vmem:[#allocation7 + $0x1f8] ss:$12 sps:$4 sm:$0xff]   ;;  %v9303_v32 = vld [vmem:[#allocation7 + $0x240] ss:$12 sps:$4 sm:$0xff]  }
 0x395   : > { %v2263_v41 = vmax.f32 %v2027_v25, %v2167_v39  ;;  %v9292_v25 = vld [vmem:[#allocation7 + $0x200] ss:$12 sps:$4 sm:$0xff]   ;;  %v9310_v35 = vld [vmem:[#allocation7 + $0x25c] ss:$12 sps:$4 sm:$0xff]   ;;  %v9308_v39 = vld [vmem:[#allocation7 + $0x258] ss:$12 sps:$4 sm:$0xff]  }
 0x396   : > { %v11040_v43 = vpack.c.bf16 %v2262_v37, %v2256_v34  ;;  %v9306_v34 = vld [vmem:[#allocation7 + $0x3c8] ss:$12 sps:$4 sm:$0xff]   ;;  %v9311_v37 = vld [vmem:[#allocation7 + $0x3e0] ss:$12 sps:$4 sm:$0xff]  }
 0x397   : > { %v11042_v44 = vpack.c.bf16 %v2263_v41, %v2257_v33  ;;  %v9307_v33 = vld [vmem:[#allocation7 + $0x308] ss:$12 sps:$4 sm:$0xff]   ;;  %v9312_v41 = vld [vmem:[#allocation7 + $0x320] ss:$12 sps:$4 sm:$0xff]  }
 0x399   : > { %v2204_v50 = vpop.f32.mrb[36].mxu1  ;;  %3266 = vmatprep.mubr.bf16.mxu1 %v11042_v44  ;;  %3395 = vmatprep.mubr.bf16.mxu0 %v11042_v44 }
 0x39a   : > { %v2258_v51 = vmax.f32 %v2064_v26, %v2204_v50  ;;  %v2206_v52 = vpop.f32.mrb[37].mxu1  ;;  %3267 = vmatmul.mubr.bf16.vlgmr.msra.gmra.mrb[44].mxu1 %v11040_v43  ;;  %3396 = vmatmul.mubr.bf16.vlgmr.msra.gmra.mrb[56].mxu0 %v11040_v43  ;;  %v9295_v26 = vld [vmem:[#allocation7 + $0x214] ss:$12 sps:$4 sm:$0xff]   ;;  %v9320_v50 = vld [vmem:[#allocation7 + $0x28c] ss:$12 sps:$4 sm:$0xff]  }
 0x39b   : > { %v2259_v53 = vmax.f32 %v2066_v27, %v2206_v52  ;;  %3278 = vmatpush1.bf16.msra.mxu1 %v9263_v46  ;;  %8579 = vmatpush3.bf16.msra.mxu0 %v9267_v47  ;;  %v2208_v38 = vpop.f32.mrb[38].mxu1  ;;  %v9296_v27 = vld [vmem:[#allocation7 + $0x2d8] ss:$12 sps:$4 sm:$0xff]   ;;  %v9315_v46 = vld [vmem:[#allocation7 + $0x274] ss:$12 sps:$4 sm:$0xff]  }
 0x39c   : > { %v2264_v56 = vmax.f32 %v2068_v28, %v2208_v38  ;;  %v2210_v57 = vpop.f32.mrb[39].mxu1  ;;  %3279 = vmatprep.subr.bf16.mxu1 %v9270_v48  ;;  %8580 = vmatprep.subr.bf16.mxu0 %v9271_v49  ;;  %v9293_v28 = vld [vmem:[#allocation7 + $0x210] ss:$12 sps:$4 sm:$0xff]   ;;  %v9316_v47 = vld [vmem:[#allocation7 + $0x3f8] ss:$12 sps:$4 sm:$0xff]  }
 0x39d   : > { %v2265_v59 = vmax.f32 %v2070_v9, %v2210_v57  ;;  %v9297_v9 = vld [vmem:[#allocation7 + $0x218] ss:$12 sps:$4 sm:$0xff]   ;;  %v9313_v48 = vld [vmem:[#allocation7 + $0x270] ss:$12 sps:$4 sm:$0xff]   ;;  %v9318_v52 = vld [vmem:[#allocation7 + $0x288] ss:$12 sps:$4 sm:$0xff]  }
 0x39e   : > { %v11048_v60 = vpack.c.bf16 %v2264_v56, %v2258_v51  ;;  %v9317_v49 = vld [vmem:[#allocation7 + $0x338] ss:$12 sps:$4 sm:$0xff]   ;;  %v9321_v51 = vld [vmem:[#allocation7 + $0x410] ss:$12 sps:$4 sm:$0xff]   ;;  %v9327_v56 = vld [vmem:[#allocation7 + $0x368] ss:$12 sps:$4 sm:$0xff]  }
 0x39f   : > { %v11050_v61 = vpack.c.bf16 %v2265_v59, %v2259_v53  ;;  %3280 = vmatpush1.bf16.msra.mxu1 %v9268_v54  ;;  %8581 = vmatpush3.bf16.msra.mxu0 %v9272_v55  ;;  %v9322_v53 = vld [vmem:[#allocation7 + $0x350] ss:$12 sps:$4 sm:$0xff]   ;;  %v9326_v54 = vld [vmem:[#allocation7 + $0x428] ss:$12 sps:$4 sm:$0xff]   ;;  %v9323_v55 = vld [vmem:[#allocation7 + $0x2a0] ss:$12 sps:$4 sm:$0xff]  }
 0x3a0   : > { %3281 = vmatprep.subr.bf16.mxu1 %v9275_v40  ;;  %8582 = vmatprep.subr.bf16.mxu0 %v9276_v58  ;;  %v9325_v38 = vld [vmem:[#allocation7 + $0x2a4] ss:$12 sps:$4 sm:$0xff]   ;;  %v9330_v57 = vld [vmem:[#allocation7 + $0x2bc] ss:$12 sps:$4 sm:$0xff]   ;;  %v9331_v40 = vld [vmem:[#allocation7 + $0x440] ss:$12 sps:$4 sm:$0xff]  }
 0x3a1   : > { %v2247_v17 = vpop.f32.mrb[40].mxu1  ;;  %3309 = vmatprep.mubr.bf16.mxu1 %v11050_v61  ;;  %3436 = vmatprep.mubr.bf16.mxu0 %v11050_v61  ;;  %v9328_v58 = vld [vmem:[#allocation7 + $0x2b8] ss:$12 sps:$4 sm:$0xff]   ;;  %v9332_v59 = vld [vmem:[#allocation7 + $0x380] ss:$12 sps:$4 sm:$0xff]  }
 0x3a2   : > { %v2260_v11 = vmax.f32 %v11032_v29, %v2247_v17  ;;  %v2249_v36 = vpop.f32.mrb[41].mxu1  ;;  %v9300_v29 = vld [vmem:[#allocation7 + $0x22c] ss:$12 sps:$4 sm:$0xff]  }
 0x3a3   : > { %v2261_v42 = vmax.f32 %v11034_v13, %v2249_v36  ;;  %3282 = vmatpush1.bf16.msra.mxu1 %v9273_v62  ;;  %8583 = vmatpush3.bf16.msra.mxu0 %v9277_v1  ;;  %v2251_v4 = vpop.f32.mrb[42].mxu1  ;;  %v9301_v13 = vld [vmem:[#allocation7 + $0x2f0] ss:$12 sps:$4 sm:$0xff]   ;;  %v9335_v62 = vld [vmem:[#allocation7 + $0x2d4] ss:$12 sps:$4 sm:$0xff]  }
 0x3a4   : > { %v2266_v7 = vmax.f32 %v11036_v30, %v2251_v4  ;;  %v2253_v6 = vpop.f32.mrb[43].mxu1  ;;  %3283 = vmatprep.subr.bf16.mxu1 %v9280_v2  ;;  %8584 = vmatprep.subr.bf16.mxu0 %v9281_v14  ;;  %v9298_v30 = vld [vmem:[#allocation7 + $0x228] ss:$12 sps:$4 sm:$0xff]   ;;  %v9336_v1 = vld [vmem:[#allocation7 + $0x458] ss:$12 sps:$4 sm:$0xff]  }
 0x3a5   : > { %v2267_v15 = vmax.f32 %v11038_v45, %v2253_v6  ;;  %v9302_v45 = vld [vmem:[#allocation7 + $0x230] ss:$12 sps:$4 sm:$0xff]   ;;  %v9337_v14 = vld [vmem:[#allocation7 + $0x398] ss:$12 sps:$4 sm:$0xff]   ;;  %v9338_v36 = vld [vmem:[#allocation7 + $0x2e8] ss:$12 sps:$4 sm:$0xff]  }
 0x3a6   : > { %v11058_v18 = vpack.c.bf16 %v2266_v7, %v2260_v11  ;;  %v9333_v2 = vld [vmem:[#allocation7 + $0x2d0] ss:$12 sps:$4 sm:$0xff]   ;;  %v9340_v17 = vld [vmem:[#allocation7 + $0x2ec] ss:$12 sps:$4 sm:$0xff]  }
 0x3a7   : > { %v11060_v19 = vpack.c.bf16 %v2267_v15, %v2261_v42  ;;  %3284 = vmatpush1.bf16.msra.mxu1 %v9278_v5  ;;  %8585 = vmatpush3.bf16.msra.mxu0 %v9282_v3  ;;  %v9341_v11 = vld [vmem:[#allocation7 + $0x470] ss:$12 sps:$4 sm:$0xff]   ;;  %v9343_v3 = vld [vmem:[#allocation7 + $0x300] ss:$12 sps:$4 sm:$0xff]   ;;  %v9352_v15 = vld [vmem:[#allocation7 + $0x498] ss:$12 sps:$4 sm:$0xff]  }
 0x3a8   : > { %3285 = vmatprep.subr.bf16.mxu1 %v9285_v8  ;;  %8586 = vmatprep.subr.bf16.mxu0 %v9286_v10  ;;  %v9342_v42 = vld [vmem:[#allocation7 + $0x3b0] ss:$12 sps:$4 sm:$0xff]   ;;  %v9346_v7 = vld [vmem:[#allocation7 + $0x480] ss:$12 sps:$4 sm:$0xff]   ;;  %v9349_v10 = vld [vmem:[#allocation7 + $0x318] ss:$12 sps:$4 sm:$0xff]  }
 0x3a9   : > { %v9345_v4 = vld [vmem:[#allocation7 + $0x304] ss:$12 sps:$4 sm:$0xff]   ;;  %v9351_v6 = vld [vmem:[#allocation7 + $0x31c] ss:$12 sps:$4 sm:$0xff]  }
 0x3aa   : > { %v9348_v5 = vld [vmem:[#allocation7 + $0x484] ss:$12 sps:$4 sm:$0xff]   ;;  %v9354_v8 = vld [vmem:[#allocation7 + $0x49c] ss:$12 sps:$4 sm:$0xff]  }
 0x3ab   : > { %3286 = vmatpush1.bf16.msra.mxu1 %v9283_v20  ;;  %8587 = vmatpush3.bf16.msra.mxu0 %v9287_v21  ;;  %v9357_v20 = vld [vmem:[#allocation7 + $0x334] ss:$12 sps:$4 sm:$0xff]  }
 0x3ac   : > { %3287 = vmatprep.subr.bf16.mxu1 %v9290_v22  ;;  %8588 = vmatprep.subr.bf16.mxu0 %v9291_v23  ;;  %v9360_v21 = vld [vmem:[#allocation7 + $0x4b4] ss:$12 sps:$4 sm:$0xff]   ;;  %v9355_v22 = vld [vmem:[#allocation7 + $0x330] ss:$12 sps:$4 sm:$0xff]  }
 0x3ad   : > { %v9358_v23 = vld [vmem:[#allocation7 + $0x4b0] ss:$12 sps:$4 sm:$0xff]  }
 0x3af   : > { %3288 = vmatpush1.bf16.msra.mxu1 %v9288_v24  ;;  %8589 = vmatpush3.bf16.msra.mxu0 %v9292_v25  ;;  %v9363_v24 = vld [vmem:[#allocation7 + $0x34c] ss:$12 sps:$4 sm:$0xff]  }
 0x3b0   : > { %3289 = vmatprep.subr.bf16.mxu1 %v9295_v26  ;;  %8590 = vmatprep.subr.bf16.mxu0 %v9296_v27  ;;  %v9366_v25 = vld [vmem:[#allocation7 + $0x4cc] ss:$12 sps:$4 sm:$0xff]   ;;  %v9361_v26 = vld [vmem:[#allocation7 + $0x348] ss:$12 sps:$4 sm:$0xff]  }
 0x3b1   : > { %v9364_v27 = vld [vmem:[#allocation7 + $0x4c8] ss:$12 sps:$4 sm:$0xff]  }
 0x3b3   : > { %3290 = vmatpush1.bf16.msra.mxu1 %v9293_v28  ;;  %8591 = vmatpush3.bf16.msra.mxu0 %v9297_v9  ;;  %v9369_v28 = vld [vmem:[#allocation7 + $0x364] ss:$12 sps:$4 sm:$0xff]  }
 0x3b4   : > { %3291 = vmatprep.subr.bf16.mxu1 %v9300_v29  ;;  %8592 = vmatprep.subr.bf16.mxu0 %v9301_v13  ;;  %v9372_v9 = vld [vmem:[#allocation7 + $0x4e4] ss:$12 sps:$4 sm:$0xff]   ;;  %v9367_v29 = vld [vmem:[#allocation7 + $0x360] ss:$12 sps:$4 sm:$0xff]  }
 0x3b5   : > { %v9370_v13 = vld [vmem:[#allocation7 + $0x4e0] ss:$12 sps:$4 sm:$0xff]  }
 0x3b7   : > { %3292 = vmatpush1.bf16.msra.mxu1 %v9298_v30  ;;  %8593 = vmatpush3.bf16.msra.mxu0 %v9302_v45  ;;  %v9375_v30 = vld [vmem:[#allocation7 + $0x37c] ss:$12 sps:$4 sm:$0xff]  }
 0x3b8   : > { %3293 = vmatprep.subr.bf16.mxu1 %v9305_v31  ;;  %8600 = vmatprep.subr.bf16.mxu0 %v9306_v34  ;;  %v9378_v45 = vld [vmem:[#allocation7 + $0x4fc] ss:$12 sps:$4 sm:$0xff]   ;;  %v9373_v31 = vld [vmem:[#allocation7 + $0x378] ss:$12 sps:$4 sm:$0xff]  }
 0x3b9   : > { %v9376_v34 = vld [vmem:[#allocation7 + $0x4f8] ss:$12 sps:$4 sm:$0xff]  }
 0x3ba   : > { %3437 = vmatmul.mubr.bf16.vlgmr.msra.gmra.mrb[60].mxu0 %v11048_v60 }
 0x3bb   : > { %3294 = vmatpush1.bf16.msra.mxu1 %v9303_v32  ;;  %8601 = vmatpush3.bf16.msra.mxu0 %v9307_v33  ;;  %v9381_v32 = vld [vmem:[#allocation7 + $0x394] ss:$12 sps:$4 sm:$0xff]  }
 0x3bc   : > { %3477 = vmatprep.mubr.bf16.mxu0 %v11060_v19  ;;  %3295 = vmatprep.subr.bf16.mxu1 %v9310_v35  ;;  %v9384_v33 = vld [vmem:[#allocation7 + $0x514] ss:$12 sps:$4 sm:$0xff]   ;;  %v9379_v35 = vld [vmem:[#allocation7 + $0x390] ss:$12 sps:$4 sm:$0xff]  }
 0x3bd   : > { %8602 = vmatprep.subr.bf16.mxu0 %v9311_v37  ;;  %v9382_v37 = vld [vmem:[#allocation7 + $0x510] ss:$12 sps:$4 sm:$0xff]  }
 0x3bf   : > { %3296 = vmatpush1.bf16.msra.mxu1 %v9308_v39  ;;  %8603 = vmatpush3.bf16.msra.mxu0 %v9312_v41  ;;  %v9387_v39 = vld [vmem:[#allocation7 + $0x3ac] ss:$12 sps:$4 sm:$0xff]  }
 0x3c0   : > { %3297 = vmatprep.subr.bf16.mxu1 %v9315_v46  ;;  %8604 = vmatprep.subr.bf16.mxu0 %v9316_v47  ;;  %v9390_v41 = vld [vmem:[#allocation7 + $0x52c] ss:$12 sps:$4 sm:$0xff]   ;;  %v9385_v46 = vld [vmem:[#allocation7 + $0x3a8] ss:$12 sps:$4 sm:$0xff]  }
 0x3c1   : > { %v9388_v47 = vld [vmem:[#allocation7 + $0x528] ss:$12 sps:$4 sm:$0xff]  }
 0x3c3   : > { %3298 = vmatpush1.bf16.msra.mxu1 %v9313_v48  ;;  %8605 = vmatpush3.bf16.msra.mxu0 %v9317_v49  ;;  %v9393_v48 = vld [vmem:[#allocation7 + $0x3c4] ss:$12 sps:$4 sm:$0xff]  }
 0x3c4   : > { %3299 = vmatprep.subr.bf16.mxu1 %v9320_v50  ;;  %8606 = vmatprep.subr.bf16.mxu0 %v9321_v51  ;;  %v9396_v49 = vld [vmem:[#allocation7 + $0x544] ss:$12 sps:$4 sm:$0xff]   ;;  %v9391_v50 = vld [vmem:[#allocation7 + $0x3c0] ss:$12 sps:$4 sm:$0xff]  }
 0x3c5   : > { %v9394_v51 = vld [vmem:[#allocation7 + $0x540] ss:$12 sps:$4 sm:$0xff]  }
 0x3c7   : > { %3300 = vmatpush1.bf16.msra.mxu1 %v9318_v52  ;;  %8607 = vmatpush3.bf16.msra.mxu0 %v9322_v53  ;;  %v9399_v52 = vld [vmem:[#allocation7 + $0x3dc] ss:$12 sps:$4 sm:$0xff]  }
 0x3c8   : > { %3301 = vmatprep.subr.bf16.mxu1 %v9325_v38  ;;  %8608 = vmatprep.subr.bf16.mxu0 %v9326_v54  ;;  %v9402_v53 = vld [vmem:[#allocation7 + $0x55c] ss:$12 sps:$4 sm:$0xff]   ;;  %v9397_v38 = vld [vmem:[#allocation7 + $0x3d8] ss:$12 sps:$4 sm:$0xff]  }
 0x3c9   : > { %v9400_v54 = vld [vmem:[#allocation7 + $0x558] ss:$12 sps:$4 sm:$0xff]  }
 0x3cb   : > { %3302 = vmatpush1.bf16.msra.mxu1 %v9323_v55  ;;  %8609 = vmatpush3.bf16.msra.mxu0 %v9327_v56  ;;  %v9405_v55 = vld [vmem:[#allocation7 + $0x3f4] ss:$12 sps:$4 sm:$0xff]  }
 0x3cc   : > { %3303 = vmatprep.subr.bf16.mxu1 %v9330_v57  ;;  %8610 = vmatprep.subr.bf16.mxu0 %v9331_v40  ;;  %v9408_v56 = vld [vmem:[#allocation7 + $0x574] ss:$12 sps:$4 sm:$0xff]   ;;  %v9403_v57 = vld [vmem:[#allocation7 + $0x3f0] ss:$12 sps:$4 sm:$0xff]  }
 0x3cd   : > { %v9406_v40 = vld [vmem:[#allocation7 + $0x570] ss:$12 sps:$4 sm:$0xff]  }
 0x3cf   : > { %3304 = vmatpush1.bf16.msra.mxu1 %v9328_v58  ;;  %8611 = vmatpush3.bf16.msra.mxu0 %v9332_v59  ;;  %v9411_v58 = vld [vmem:[#allocation7 + $0x40c] ss:$12 sps:$4 sm:$0xff]  }
 0x3d0   : > { %3305 = vmatprep.subr.bf16.mxu1 %v9335_v62  ;;  %8612 = vmatprep.subr.bf16.mxu0 %v9336_v1  ;;  %v9414_v59 = vld [vmem:[#allocation7 + $0x58c] ss:$12 sps:$4 sm:$0xff]   ;;  %v9409_v62 = vld [vmem:[#allocation7 + $0x408] ss:$12 sps:$4 sm:$0xff]  }
 0x3d1   : > { %v9412_v1 = vld [vmem:[#allocation7 + $0x588] ss:$12 sps:$4 sm:$0xff]  }
 0x3d3   : > { %3306 = vmatpush1.bf16.msra.mxu1 %v9333_v2  ;;  %8613 = vmatpush3.bf16.msra.mxu0 %v9337_v14  ;;  %v9417_v2 = vld [vmem:[#allocation7 + $0x424] ss:$12 sps:$4 sm:$0xff]  }
 0x3d4   : > { %3307 = vmatprep.subr.bf16.mxu1 %v9340_v17  ;;  %8614 = vmatprep.subr.bf16.mxu0 %v9341_v11  ;;  %v9420_v14 = vld [vmem:[#allocation7 + $0x5a4] ss:$12 sps:$4 sm:$0xff]   ;;  %v9415_v17 = vld [vmem:[#allocation7 + $0x420] ss:$12 sps:$4 sm:$0xff]  }
 0x3d5   : > { %v9418_v11 = vld [vmem:[#allocation7 + $0x5a0] ss:$12 sps:$4 sm:$0xff]  }
 0x3d7   : > { %3308 = vmatpush1.bf16.msra.mxu1 %v9338_v36  ;;  %8615 = vmatpush3.bf16.msra.mxu0 %v9342_v42  ;;  %v9423_v36 = vld [vmem:[#allocation7 + $0x43c] ss:$12 sps:$4 sm:$0xff]  }
 0x3d8   : > { %3320 = vmatprep.subr.bf16.mxu1 %v9345_v4  ;;  %4447 = vmatprep.subr.bf16.mxu0 %v9348_v5  ;;  %v9426_v42 = vld [vmem:[#allocation7 + $0x5bc] ss:$12 sps:$4 sm:$0xff]   ;;  %v9421_v4 = vld [vmem:[#allocation7 + $0x438] ss:$12 sps:$4 sm:$0xff]  }
 0x3d9   : > { %v9424_v5 = vld [vmem:[#allocation7 + $0x5b8] ss:$12 sps:$4 sm:$0xff]  }
 0x3da   : > { %3310 = vmatmul.mubr.bf16.vlgmr.msra.gmra.mrb[44].mxu1 %v11048_v60  ;;  %3478 = vmatmul.mubr.bf16.vlgmr.msra.gmra.mrb[64].mxu0 %v11058_v18 }
 0x3db   : > { %3321 = vmatpush1.bf16.msra.mxu1 %v9343_v3  ;;  %3352 = vmatprep.mubr.bf16.mxu1 %v11060_v19  ;;  %v9429_v3 = vld [vmem:[#allocation7 + $0x454] ss:$12 sps:$4 sm:$0xff]  }
 0x3dc   : > { %4448 = vmatpush1.bf16.msra.mxu0 %v9346_v7  ;;  %4479 = vmatprep.mubr.bf16.mxu0 %v11042_v44  ;;  %v9432_v7 = vld [vmem:[#allocation7 + $0x5d4] ss:$12 sps:$4 sm:$0xff]  }
 0x3dd   : > { %3322 = vmatprep.subr.bf16.mxu1 %v9351_v6  ;;  %4449 = vmatprep.subr.bf16.mxu0 %v9354_v8  ;;  %v9427_v6 = vld [vmem:[#allocation7 + $0x450] ss:$12 sps:$4 sm:$0xff]  }
 0x3de   : > { %v9430_v8 = vld [vmem:[#allocation7 + $0x5d0] ss:$12 sps:$4 sm:$0xff]  }
 0x3df   : > { %3323 = vmatpush1.bf16.msra.mxu1 %v9349_v10  ;;  %v9435_v10 = vld [vmem:[#allocation7 + $0x46c] ss:$12 sps:$4 sm:$0xff]  }
 0x3e0   : > { %4450 = vmatpush1.bf16.msra.mxu0 %v9352_v15  ;;  %3324 = vmatprep.subr.bf16.mxu1 %v9357_v20  ;;  %v9438_v15 = vld [vmem:[#allocation7 + $0x5ec] ss:$12 sps:$4 sm:$0xff]   ;;  %v9433_v20 = vld [vmem:[#allocation7 + $0x468] ss:$12 sps:$4 sm:$0xff]  }
 0x3e1   : > { %4451 = vmatprep.subr.bf16.mxu0 %v9360_v21  ;;  %v9436_v21 = vld [vmem:[#allocation7 + $0x5e8] ss:$12 sps:$4 sm:$0xff]  }
 0x3e3   : > { %3325 = vmatpush1.bf16.msra.mxu1 %v9355_v22  ;;  %v9442_v22 = vld [vmem:[#allocation7 + $0x6c8] ss:$12 sps:$4 sm:$0xff]  }
 0x3e4   : > { %4452 = vmatpush1.bf16.msra.mxu0 %v9358_v23  ;;  %3326 = vmatprep.subr.bf16.mxu1 %v9363_v24  ;;  %v9441_v23 = vld [vmem:[#allocation7 + $0x604] ss:$12 sps:$4 sm:$0xff]   ;;  %v9443_v24 = vld [vmem:[#allocation7 + $0x608] ss:$12 sps:$4 sm:$0xff]  }
 0x3e5   : > { %4453 = vmatprep.subr.bf16.mxu0 %v9366_v25  ;;  %v9439_v25 = vld [vmem:[#allocation7 + $0x600] ss:$12 sps:$4 sm:$0xff]  }
 0x3e7   : > { %3327 = vmatpush1.bf16.msra.mxu1 %v9361_v26  ;;  %v9446_v26 = vld [vmem:[#allocation7 + $0x61c] ss:$12 sps:$4 sm:$0xff]  }
 0x3e8   : > { %4454 = vmatpush1.bf16.msra.mxu0 %v9364_v27  ;;  %3328 = vmatprep.subr.bf16.mxu1 %v9369_v28  ;;  %v9447_v27 = vld [vmem:[#allocation7 + $0x6e0] ss:$12 sps:$4 sm:$0xff]  }
 0x3e9   : > { %4455 = vmatprep.subr.bf16.mxu0 %v9372_v9  ;;  %v9448_v28 = vld [vmem:[#allocation7 + $0x620] ss:$12 sps:$4 sm:$0xff]   ;;  %v9444_v9 = vld [vmem:[#allocation7 + $0x618] ss:$12 sps:$4 sm:$0xff]  }
 0x3eb   : > { %3329 = vmatpush1.bf16.msra.mxu1 %v9367_v29  ;;  %v9452_v29 = vld [vmem:[#allocation7 + $0x6f8] ss:$12 sps:$4 sm:$0xff]  }
 0x3ec   : > { %4456 = vmatpush1.bf16.msra.mxu0 %v9370_v13  ;;  %3330 = vmatprep.subr.bf16.mxu1 %v9375_v30  ;;  %v9451_v13 = vld [vmem:[#allocation7 + $0x634] ss:$12 sps:$4 sm:$0xff]   ;;  %v9453_v30 = vld [vmem:[#allocation7 + $0x638] ss:$12 sps:$4 sm:$0xff]  }
 0x3ed   : > { %4457 = vmatprep.subr.bf16.mxu0 %v9378_v45  ;;  %v9449_v45 = vld [vmem:[#allocation7 + $0x630] ss:$12 sps:$4 sm:$0xff]  }
 0x3ef   : > { %3331 = vmatpush1.bf16.msra.mxu1 %v9373_v31  ;;  %v9457_v31 = vld [vmem:[#allocation7 + $0x710] ss:$12 sps:$4 sm:$0xff]  }
 0x3f0   : > { %4458 = vmatpush1.bf16.msra.mxu0 %v9376_v34  ;;  %3332 = vmatprep.subr.bf16.mxu1 %v9381_v32  ;;  %v9456_v34 = vld [vmem:[#allocation7 + $0x64c] ss:$12 sps:$4 sm:$0xff]   ;;  %v9458_v32 = vld [vmem:[#allocation7 + $0x650] ss:$12 sps:$4 sm:$0xff]  }
 0x3f1   : > { %4459 = vmatprep.subr.bf16.mxu0 %v9384_v33  ;;  %v9454_v33 = vld [vmem:[#allocation7 + $0x648] ss:$12 sps:$4 sm:$0xff]  }
 0x3f3   : > { %3333 = vmatpush1.bf16.msra.mxu1 %v9379_v35  ;;  %v9462_v35 = vld [vmem:[#allocation7 + $0x728] ss:$12 sps:$4 sm:$0xff]  }
 0x3f4   : > { %4460 = vmatpush1.bf16.msra.mxu0 %v9382_v37  ;;  %3334 = vmatprep.subr.bf16.mxu1 %v9387_v39  ;;  %v9461_v37 = vld [vmem:[#allocation7 + $0x664] ss:$12 sps:$4 sm:$0xff]   ;;  %v9459_v39 = vld [vmem:[#allocation7 + $0x660] ss:$12 sps:$4 sm:$0xff]  }
 0x3f5   : > { %4461 = vmatprep.subr.bf16.mxu0 %v9390_v41  ;;  %v9467_v41 = vld [vmem:[#allocation7 + $0x740] ss:$12 sps:$4 sm:$0xff]  }
 0x3f7   : > { %3335 = vmatpush1.bf16.msra.mxu1 %v9385_v46  ;;  %v9466_v46 = vld [vmem:[#allocation7 + $0x67c] ss:$12 sps:$4 sm:$0xff]  }
 0x3f8   : > { %4462 = vmatpush1.bf16.msra.mxu0 %v9388_v47  ;;  %3336 = vmatprep.subr.bf16.mxu1 %v9393_v48  ;;  %v9468_v47 = vld [vmem:[#allocation7 + $0x680] ss:$12 sps:$4 sm:$0xff]   ;;  %v9464_v48 = vld [vmem:[#allocation7 + $0x678] ss:$12 sps:$4 sm:$0xff]  }
 0x3f9   : > { %4463 = vmatprep.subr.bf16.mxu0 %v9396_v49  ;;  %v9472_v49 = vld [vmem:[#allocation7 + $0x758] ss:$12 sps:$4 sm:$0xff]  }
 0x3fb   : > { %3337 = vmatpush1.bf16.msra.mxu1 %v9391_v50  ;;  %v9471_v50 = vld [vmem:[#allocation7 + $0x694] ss:$12 sps:$4 sm:$0xff]  }
 0x3fc   : > { %4464 = vmatpush1.bf16.msra.mxu0 %v9394_v51  ;;  %3338 = vmatprep.subr.bf16.mxu1 %v9399_v52  ;;  %v9473_v51 = vld [vmem:[#allocation7 + $0x698] ss:$12 sps:$4 sm:$0xff]   ;;  %v9469_v52 = vld [vmem:[#allocation7 + $0x690] ss:$12 sps:$4 sm:$0xff]  }
 0x3fd   : > { %4465 = vmatprep.subr.bf16.mxu0 %v9402_v53  ;;  %v9477_v53 = vld [vmem:[#allocation7 + $0x770] ss:$12 sps:$4 sm:$0xff]  }
 0x3ff   : > { %3339 = vmatpush1.bf16.msra.mxu1 %v9397_v38  ;;  %v9476_v38 = vld [vmem:[#allocation7 + $0x6ac] ss:$12 sps:$4 sm:$0xff]  }
 0x400   : > { %4466 = vmatpush1.bf16.msra.mxu0 %v9400_v54  ;;  %3340 = vmatprep.subr.bf16.mxu1 %v9405_v55  ;;  %v9478_v54 = vld [vmem:[#allocation7 + $0x6b0] ss:$12 sps:$4 sm:$0xff]   ;;  %v9474_v55 = vld [vmem:[#allocation7 + $0x6a8] ss:$12 sps:$4 sm:$0xff]  }
 0x401   : > { %4467 = vmatprep.subr.bf16.mxu0 %v9408_v56  ;;  %v9482_v56 = vld [vmem:[#allocation7 + $0x848] ss:$12 sps:$4 sm:$0xff]  }
 0x403   : > { %3341 = vmatpush1.bf16.msra.mxu1 %v9403_v57  ;;  %v9481_v57 = vld [vmem:[#allocation7 + $0x6c4] ss:$12 sps:$4 sm:$0xff]  }
 0x404   : > { %4468 = vmatpush1.bf16.msra.mxu0 %v9406_v40  ;;  %3342 = vmatprep.subr.bf16.mxu1 %v9411_v58  ;;  %v9483_v40 = vld [vmem:[#allocation7 + $0x788] ss:$12 sps:$4 sm:$0xff]   ;;  %v9479_v58 = vld [vmem:[#allocation7 + $0x6c0] ss:$12 sps:$4 sm:$0xff]  }
 0x405   : > { %4469 = vmatprep.subr.bf16.mxu0 %v9414_v59  ;;  %v9487_v59 = vld [vmem:[#allocation7 + $0x860] ss:$12 sps:$4 sm:$0xff]  }
 0x407   : > { %3343 = vmatpush1.bf16.msra.mxu1 %v9409_v62  ;;  %v9486_v62 = vld [vmem:[#allocation7 + $0x6dc] ss:$12 sps:$4 sm:$0xff]  }
 0x408   : > { %4470 = vmatpush1.bf16.msra.mxu0 %v9412_v1  ;;  %3344 = vmatprep.subr.bf16.mxu1 %v9417_v2  ;;  %v9488_v1 = vld [vmem:[#allocation7 + $0x7a0] ss:$12 sps:$4 sm:$0xff]   ;;  %v9484_v2 = vld [vmem:[#allocation7 + $0x6d8] ss:$12 sps:$4 sm:$0xff]  }
 0x409   : > { %4471 = vmatprep.subr.bf16.mxu0 %v9420_v14  ;;  %v9492_v14 = vld [vmem:[#allocation7 + $0x878] ss:$12 sps:$4 sm:$0xff]  }
 0x40b   : > { %3345 = vmatpush1.bf16.msra.mxu1 %v9415_v17  ;;  %v9491_v17 = vld [vmem:[#allocation7 + $0x6f4] ss:$12 sps:$4 sm:$0xff]  }
 0x40c   : > { %4472 = vmatpush1.bf16.msra.mxu0 %v9418_v11  ;;  %3346 = vmatprep.subr.bf16.mxu1 %v9423_v36  ;;  %v9493_v11 = vld [vmem:[#allocation7 + $0x7b8] ss:$12 sps:$4 sm:$0xff]   ;;  %v9489_v36 = vld [vmem:[#allocation7 + $0x6f0] ss:$12 sps:$4 sm:$0xff]  }
 0x40d   : > { %4473 = vmatprep.subr.bf16.mxu0 %v9426_v42  ;;  %v9497_v42 = vld [vmem:[#allocation7 + $0x890] ss:$12 sps:$4 sm:$0xff]  }
 0x40f   : > { %3347 = vmatpush1.bf16.msra.mxu1 %v9421_v4  ;;  %v9496_v4 = vld [vmem:[#allocation7 + $0x70c] ss:$12 sps:$4 sm:$0xff]  }
 0x410   : > { %4474 = vmatpush1.bf16.msra.mxu0 %v9424_v5  ;;  %3348 = vmatprep.subr.bf16.mxu1 %v9429_v3  ;;  %v9498_v5 = vld [vmem:[#allocation7 + $0x7d0] ss:$12 sps:$4 sm:$0xff]   ;;  %v9494_v3 = vld [vmem:[#allocation7 + $0x708] ss:$12 sps:$4 sm:$0xff]  }
 0x411   : > { %4475 = vmatprep.subr.bf16.mxu0 %v9432_v7  ;;  %v9502_v7 = vld [vmem:[#allocation7 + $0x8a8] ss:$12 sps:$4 sm:$0xff]  }
 0x413   : > { %3349 = vmatpush1.bf16.msra.mxu1 %v9427_v6  ;;  %v9501_v6 = vld [vmem:[#allocation7 + $0x724] ss:$12 sps:$4 sm:$0xff]  }
 0x414   : > { %4476 = vmatpush1.bf16.msra.mxu0 %v9430_v8  ;;  %3350 = vmatprep.subr.bf16.mxu1 %v9435_v10  ;;  %v9503_v8 = vld [vmem:[#allocation7 + $0x7e8] ss:$12 sps:$4 sm:$0xff]   ;;  %v9499_v10 = vld [vmem:[#allocation7 + $0x720] ss:$12 sps:$4 sm:$0xff]  }
 0x415   : > { %4477 = vmatprep.subr.bf16.mxu0 %v9438_v15  ;;  %v9507_v15 = vld [vmem:[#allocation7 + $0x8c0] ss:$12 sps:$4 sm:$0xff]  }
 0x417   : > { %3351 = vmatpush1.bf16.msra.mxu1 %v9433_v20  ;;  %v9506_v20 = vld [vmem:[#allocation7 + $0x73c] ss:$12 sps:$4 sm:$0xff]  }
 0x418   : > { %4478 = vmatpush1.bf16.msra.mxu0 %v9436_v21  ;;  %8644 = vmatprep.subr.bf16.mxu1 %v9442_v22  ;;  %v9508_v21 = vld [vmem:[#allocation7 + $0x800] ss:$12 sps:$4 sm:$0xff]   ;;  %v9504_v22 = vld [vmem:[#allocation7 + $0x738] ss:$12 sps:$4 sm:$0xff]  }
 0x419   : > { %4490 = vmatprep.subr.bf16.mxu0 %v9441_v23  ;;  %v9512_v23 = vld [vmem:[#allocation7 + $0x8d8] ss:$12 sps:$4 sm:$0xff]  }
 0x41a   : > { %3353 = vmatmul.mubr.bf16.vlgmr.msra.gmra.mrb[44].mxu1 %v11058_v18 }
 0x41b   : > { %4480 = vmatmul.mubr.bf16.vlgmr.msra.gmra.mrb[68].mxu0 %v11040_v43  ;;  %8645 = vmatpush3.bf16.msra.mxu1 %v9443_v24  ;;  %v9511_v24 = vld [vmem:[#allocation7 + $0x754] ss:$12 sps:$4 sm:$0xff]  }
 0x41c   : > { %4491 = vmatpush1.bf16.msra.mxu0 %v9439_v25  ;;  %4522 = vmatprep.mubr.bf16.mxu0 %v11050_v61  ;;  %v9513_v25 = vld [vmem:[#allocation7 + $0x818] ss:$12 sps:$4 sm:$0xff]  }
 0x41d   : > { %4649 = vmatprep.mubr.bf16.mxu1 %v11050_v61  ;;  %4492 = vmatprep.subr.bf16.mxu0 %v9446_v26  ;;  %v9463_v61 = vld [vmem:[#allocation7 + $0x668] ss:$12 sps:$4 sm:$0xff]   ;;  %v9509_v26 = vld [vmem:[#allocation7 + $0x750] ss:$12 sps:$4 sm:$0xff]  }
 0x41e   : > { %8646 = vmatprep.subr.bf16.mxu1 %v9447_v27  ;;  %v9517_v27 = vld [vmem:[#allocation7 + $0x8f0] ss:$12 sps:$4 sm:$0xff]  }
 0x41f   : > { %8647 = vmatpush3.bf16.msra.mxu1 %v9448_v28  ;;  %v9516_v28 = vld [vmem:[#allocation7 + $0x76c] ss:$12 sps:$4 sm:$0xff]  }
 0x420   : > { %4493 = vmatpush1.bf16.msra.mxu0 %v9444_v9  ;;  %8648 = vmatprep.subr.bf16.mxu1 %v9452_v29  ;;  %v9518_v9 = vld [vmem:[#allocation7 + $0x830] ss:$12 sps:$4 sm:$0xff]   ;;  %v9514_v29 = vld [vmem:[#allocation7 + $0x768] ss:$12 sps:$4 sm:$0xff]  }
 0x421   : > { %4494 = vmatprep.subr.bf16.mxu0 %v9451_v13  ;;  %v9521_v13 = vld [vmem:[#allocation7 + $0x784] ss:$12 sps:$4 sm:$0xff]  }
 0x423   : > { %8649 = vmatpush3.bf16.msra.mxu1 %v9453_v30  ;;  %v9519_v30 = vld [vmem:[#allocation7 + $0x780] ss:$12 sps:$4 sm:$0xff]  }
 0x424   : > { %4495 = vmatpush1.bf16.msra.mxu0 %v9449_v45  ;;  %8650 = vmatprep.subr.bf16.mxu1 %v9457_v31  ;;  %v9524_v45 = vld [vmem:[#allocation7 + $0x79c] ss:$12 sps:$4 sm:$0xff]   ;;  %v9522_v31 = vld [vmem:[#allocation7 + $0x798] ss:$12 sps:$4 sm:$0xff]  }
 0x425   : > { %4496 = vmatprep.subr.bf16.mxu0 %v9456_v34  ;;  %v9527_v34 = vld [vmem:[#allocation7 + $0x7b4] ss:$12 sps:$4 sm:$0xff]  }
 0x427   : > { %8651 = vmatpush3.bf16.msra.mxu1 %v9458_v32  ;;  %v9525_v32 = vld [vmem:[#allocation7 + $0x7b0] ss:$12 sps:$4 sm:$0xff]  }
 0x428   : > { %4497 = vmatpush1.bf16.msra.mxu0 %v9454_v33  ;;  %8652 = vmatprep.subr.bf16.mxu1 %v9462_v35  ;;  %v9530_v33 = vld [vmem:[#allocation7 + $0x7cc] ss:$12 sps:$4 sm:$0xff]   ;;  %v9528_v35 = vld [vmem:[#allocation7 + $0x7c8] ss:$12 sps:$4 sm:$0xff]  }
 0x429   : > { %4498 = vmatprep.subr.bf16.mxu0 %v9461_v37  ;;  %v9533_v37 = vld [vmem:[#allocation7 + $0x7e4] ss:$12 sps:$4 sm:$0xff]  }
 0x42b   : > { %8653 = vmatpush3.bf16.msra.mxu1 %v9463_v61  ;;  %v9531_v61 = vld [vmem:[#allocation7 + $0x7e0] ss:$12 sps:$4 sm:$0xff]  }
 0x42c   : > { %4499 = vmatpush1.bf16.msra.mxu0 %v9459_v39  ;;  %8654 = vmatprep.subr.bf16.mxu1 %v9467_v41  ;;  %v9536_v39 = vld [vmem:[#allocation7 + $0x7fc] ss:$12 sps:$4 sm:$0xff]  }
 0x42d   : > { %4500 = vmatprep.subr.bf16.mxu0 %v9466_v46 }
 0x42f   : > { %8655 = vmatpush3.bf16.msra.mxu1 %v9468_v47 }
 0x430   : > { %4501 = vmatpush1.bf16.msra.mxu0 %v9464_v48  ;;  %8656 = vmatprep.subr.bf16.mxu1 %v9472_v49 }
 0x431   : > { %4502 = vmatprep.subr.bf16.mxu0 %v9471_v50  ;;  %v9537_v50 = vld [vmem:[#allocation7 + $0x810] ss:$12 sps:$4 sm:$0xff]  }
 0x433   : > { %8657 = vmatpush3.bf16.msra.mxu1 %v9473_v51 }
 0x434   : > { %4503 = vmatpush1.bf16.msra.mxu0 %v9469_v52  ;;  %8658 = vmatprep.subr.bf16.mxu1 %v9477_v53  ;;  %v9542_v52 = vld [vmem:[#allocation7 + $0x82c] ss:$12 sps:$4 sm:$0xff]   ;;  %v9540_v53 = vld [vmem:[#allocation7 + $0x828] ss:$12 sps:$4 sm:$0xff]  }
 0x435   : > { %4504 = vmatprep.subr.bf16.mxu0 %v9476_v38  ;;  %v9545_v38 = vld [vmem:[#allocation7 + $0x844] ss:$12 sps:$4 sm:$0xff]  }
 0x437   : > { %8659 = vmatpush3.bf16.msra.mxu1 %v9478_v54  ;;  %v9543_v54 = vld [vmem:[#allocation7 + $0x840] ss:$12 sps:$4 sm:$0xff]  }
 0x438   : > { %4505 = vmatpush1.bf16.msra.mxu0 %v9474_v55  ;;  %8666 = vmatprep.subr.bf16.mxu1 %v9482_v56  ;;  %v9548_v55 = vld [vmem:[#allocation7 + $0x85c] ss:$12 sps:$4 sm:$0xff]   ;;  %v9546_v56 = vld [vmem:[#allocation7 + $0x858] ss:$12 sps:$4 sm:$0xff]  }
 0x439   : > { %4506 = vmatprep.subr.bf16.mxu0 %v9481_v57  ;;  %v9551_v57 = vld [vmem:[#allocation7 + $0x874] ss:$12 sps:$4 sm:$0xff]  }
 0x43a   : > { %4650 = vmatmul.mubr.bf16.vlgmr.msra.gmra.mrb[48].mxu1 %v11048_v60 }
 0x43b   : > { %8667 = vmatpush3.bf16.msra.mxu1 %v9483_v40  ;;  %4690 = vmatprep.mubr.bf16.mxu1 %v11060_v19  ;;  %v9549_v40 = vld [vmem:[#allocation7 + $0x870] ss:$12 sps:$4 sm:$0xff]  }
 0x43c   : > { %4507 = vmatpush1.bf16.msra.mxu0 %v9479_v58  ;;  %8668 = vmatprep.subr.bf16.mxu1 %v9487_v59  ;;  %v9554_v58 = vld [vmem:[#allocation7 + $0x88c] ss:$12 sps:$4 sm:$0xff]   ;;  %v9552_v59 = vld [vmem:[#allocation7 + $0x888] ss:$12 sps:$4 sm:$0xff]  }
 0x43d   : > { %4508 = vmatprep.subr.bf16.mxu0 %v9486_v62  ;;  %v9557_v62 = vld [vmem:[#allocation7 + $0x8a4] ss:$12 sps:$4 sm:$0xff]  }
 0x43f   : > { %8669 = vmatpush3.bf16.msra.mxu1 %v9488_v1  ;;  %v9555_v1 = vld [vmem:[#allocation7 + $0x8a0] ss:$12 sps:$4 sm:$0xff]  }
 0x440   : > { %4509 = vmatpush1.bf16.msra.mxu0 %v9484_v2  ;;  %8670 = vmatprep.subr.bf16.mxu1 %v9492_v14  ;;  %v9560_v2 = vld [vmem:[#allocation7 + $0x8bc] ss:$12 sps:$4 sm:$0xff]   ;;  %v9558_v14 = vld [vmem:[#allocation7 + $0x8b8] ss:$12 sps:$4 sm:$0xff]  }
 0x441   : > { %4510 = vmatprep.subr.bf16.mxu0 %v9491_v17 }
 0x443   : > { %8671 = vmatpush3.bf16.msra.mxu1 %v9493_v11  ;;  %v9563_v11 = vld [vmem:[#allocation7 + $0x8d4] ss:$12 sps:$4 sm:$0xff]  }
 0x444   : > { %4511 = vmatpush1.bf16.msra.mxu0 %v9489_v36  ;;  %8672 = vmatprep.subr.bf16.mxu1 %v9497_v42 }
 0x445   : > { %4512 = vmatprep.subr.bf16.mxu0 %v9496_v4 }
 0x447   : > { %8673 = vmatpush3.bf16.msra.mxu1 %v9498_v5 }
 0x448   : > { %4513 = vmatpush1.bf16.msra.mxu0 %v9494_v3  ;;  %8674 = vmatprep.subr.bf16.mxu1 %v9502_v7  ;;  %v9561_v3 = vld [vmem:[#allocation7 + $0x8d0] ss:$12 sps:$4 sm:$0xff]  }
 0x449   : > { %4514 = vmatprep.subr.bf16.mxu0 %v9501_v6 }
 0x44b   : > { %8675 = vmatpush3.bf16.msra.mxu1 %v9503_v8  ;;  %v9566_v8 = vld [vmem:[#allocation7 + $0x8ec] ss:$12 sps:$4 sm:$0xff]  }
 0x44c   : > { %4515 = vmatpush1.bf16.msra.mxu0 %v9499_v10  ;;  %8676 = vmatprep.subr.bf16.mxu1 %v9507_v15  ;;  %v9564_v15 = vld [vmem:[#allocation7 + $0x8e8] ss:$12 sps:$4 sm:$0xff]  }
 0x44d   : > { %4516 = vmatprep.subr.bf16.mxu0 %v9506_v20  ;;  %v9567_v20 = vld [vmem:[#allocation7 + $0x548] ss:$12 sps:$4 sm:$0xff]  }
 0x44f   : > { %8677 = vmatpush3.bf16.msra.mxu1 %v9508_v21  ;;  %v9568_v21 = vld [vmem:[#allocation7 + $0x488] ss:$12 sps:$4 sm:$0xff]  }
 0x450   : > { %4517 = vmatpush1.bf16.msra.mxu0 %v9504_v22  ;;  %8678 = vmatprep.subr.bf16.mxu1 %v9512_v23  ;;  %v9569_v22 = vld [vmem:[#allocation7 + $0x560] ss:$12 sps:$4 sm:$0xff]  }
 0x451   : > { %4518 = vmatprep.subr.bf16.mxu0 %v9511_v24  ;;  %v9570_v23 = vld [vmem:[#allocation7 + $0x4a0] ss:$12 sps:$4 sm:$0xff]   ;;  %v9571_v24 = vld [vmem:[#allocation7 + $0x578] ss:$12 sps:$4 sm:$0xff]  }
 0x453   : > { %8679 = vmatpush3.bf16.msra.mxu1 %v9513_v25  ;;  %v9572_v25 = vld [vmem:[#allocation7 + $0x4b8] ss:$12 sps:$4 sm:$0xff]  }
 0x454   : > { %4519 = vmatpush1.bf16.msra.mxu0 %v9509_v26  ;;  %8680 = vmatprep.subr.bf16.mxu1 %v9517_v27  ;;  %v9573_v26 = vld [vmem:[#allocation7 + $0x590] ss:$12 sps:$4 sm:$0xff]  }
 0x455   : > { %4520 = vmatprep.subr.bf16.mxu0 %v9516_v28  ;;  %v9574_v27 = vld [vmem:[#allocation7 + $0x4d0] ss:$12 sps:$4 sm:$0xff]   ;;  %v9575_v28 = vld [vmem:[#allocation7 + $0x5a8] ss:$12 sps:$4 sm:$0xff]  }
 0x457   : > { %8681 = vmatpush3.bf16.msra.mxu1 %v9518_v9  ;;  %v9576_v9 = vld [vmem:[#allocation7 + $0x4e8] ss:$12 sps:$4 sm:$0xff]  }
 0x458   : > { %4521 = vmatpush1.bf16.msra.mxu0 %v9514_v29  ;;  %v9577_v29 = vld [vmem:[#allocation7 + $0x5c0] ss:$12 sps:$4 sm:$0xff]  }
 0x459   : > { %4533 = vmatprep.subr.bf16.mxu0 %v9521_v13 }
 0x45a   : > { %4691 = vmatmul.mubr.bf16.vlgmr.msra.gmra.mrb[52].mxu1 %v11058_v18 }
 0x45b   : > { %4523 = vmatmul.mubr.bf16.vlgmr.msra.gmra.mrb[68].mxu0 %v11048_v60  ;;  %v9534_v60 = vld [vmem:[#allocation7 + $0x7f8] ss:$12 sps:$4 sm:$0xff]  }
 0x45c   : > { %4534 = vmatpush1.bf16.msra.mxu0 %v9519_v30  ;;  %4565 = vmatprep.mubr.bf16.mxu0 %v11060_v19  ;;  %v9539_v19 = vld [vmem:[#allocation7 + $0x814] ss:$12 sps:$4 sm:$0xff]  }
 0x45d   : > { %4535 = vmatprep.subr.bf16.mxu0 %v9524_v45 }
 0x460   : > { %4536 = vmatpush1.bf16.msra.mxu0 %v9522_v31 }
 0x461   : > { %4537 = vmatprep.subr.bf16.mxu0 %v9527_v34 }
 0x464   : > { %4538 = vmatpush1.bf16.msra.mxu0 %v9525_v32  ;;  %v9580_v32 = vld [vmem:[#allocation7 + $0x518] ss:$12 sps:$4 sm:$0xff]  }
 0x465   : > { %4539 = vmatprep.subr.bf16.mxu0 %v9530_v33 }
 0x468   : > { %4540 = vmatpush1.bf16.msra.mxu0 %v9528_v35 }
 0x469   : > { %4541 = vmatprep.subr.bf16.mxu0 %v9533_v37  ;;  %v9581_v37 = vld [vmem:[#allocation7 + $0x5f0] ss:$12 sps:$4 sm:$0xff]  }
 0x46c   : > { %4542 = vmatpush1.bf16.msra.mxu0 %v9531_v61  ;;  %v9583_v61 = vld [vmem:[#allocation8 + $0x180] ss:$8 sps:$4 sm:$0xff]  }
 0x46d   : > { %v8572_v41 = vpop.f32.mrb[56].mxu0  ;;  %4543 = vmatprep.subr.bf16.mxu0 %v9536_v39  ;;  %v9585_v39 = vld [vmem:[#allocation8 + $0x184] ss:$8 sps:$4 sm:$0xff]  }
 0x46e   : > { %v8573_v46 = vpop.f32.mrb[57].mxu0  ;;  %5072 = vmatprep.subr.bf16.mxu1 %v9585_v39  ;;  %v9679_v39 = vld [vmem:[#allocation8 + $0x2f0] ss:$8 sps:$4 sm:$0xff]  }
 0x46f   : > { %v8574_v47 = vadd.f32 %v8573_v46, %v8572_v41  ;;  %v8575_v48 = vpop.f32.mrb[58].mxu0  ;;  %5073 = vmatpush1.bf16.msra.mxu1 %v9583_v61  ;;  %v9586_v46 = vld [vmem:[#allocation8 + $0x190] ss:$8 sps:$4 sm:$0xff]   ;;  %v9681_v61 = vld [vmem:[#allocation8 + $0x2f4] ss:$8 sps:$4 sm:$0xff]  }
 0x470   : > { %4544 = vmatpush1.bf16.msra.mxu0 %v9534_v60  ;;  %v8576_v49 = vpop.f32.mrb[59].mxu0  ;;  %v9588_v60 = vld [vmem:[#allocation8 + $0x194] ss:$8 sps:$4 sm:$0xff]  }
 0x471   : > { %v8577_v51 = vadd.f32 %v8576_v49, %v8575_v48  ;;  %4545 = vmatprep.subr.bf16.mxu0 %v9539_v19  ;;  %v9582_v19 = vld [vmem:[#allocation7 + $0x530] ss:$12 sps:$4 sm:$0xff]   ;;  %5074 = vmatprep.subr.bf16.mxu1 %v9588_v60  ;;  %v9589_v48 = vld [vmem:[#allocation8 + $0x1a0] ss:$8 sps:$4 sm:$0xff]   ;;  %v9687_v60 = vld [vmem:[#allocation8 + $0x4] ss:$8 sps:$4 sm:$0xff]  }
 0x472   : > { %v9594_v49 = vld [vmem:[#allocation8 + $0x1b4] ss:$8 sps:$4 sm:$0xff]  }
 0x473   : > { %5075 = vmatpush1.bf16.msra.mxu1 %v9586_v46 }
 0x474   : > { %4546 = vmatpush1.bf16.msra.mxu0 %v9537_v50  ;;  %v9592_v50 = vld [vmem:[#allocation8 + $0x1b0] ss:$8 sps:$4 sm:$0xff]  }
 0x475   : > { %4547 = vmatprep.subr.bf16.mxu0 %v9542_v52  ;;  %v9595_v52 = vld [vmem:[#allocation8 + $0x1c0] ss:$8 sps:$4 sm:$0xff]  }
 0x478   : > { %4548 = vmatpush1.bf16.msra.mxu0 %v9540_v53  ;;  %v9600_v53 = vld [vmem:[#allocation8 + $0x1d4] ss:$8 sps:$4 sm:$0xff]  }
 0x479   : > { %4549 = vmatprep.subr.bf16.mxu0 %v9545_v38  ;;  %v9598_v38 = vld [vmem:[#allocation8 + $0x1d0] ss:$8 sps:$4 sm:$0xff]  }
 0x47c   : > { %4550 = vmatpush1.bf16.msra.mxu0 %v9543_v54  ;;  %v9603_v54 = vld [vmem:[#allocation8 + $0x1e4] ss:$8 sps:$4 sm:$0xff]  }
 0x47d   : > { %4551 = vmatprep.subr.bf16.mxu0 %v9548_v55  ;;  %v9601_v55 = vld [vmem:[#allocation8 + $0x1e0] ss:$8 sps:$4 sm:$0xff]  }
 0x480   : > { %4552 = vmatpush1.bf16.msra.mxu0 %v9546_v56  ;;  %v9606_v56 = vld [vmem:[#allocation8 + $0x1f4] ss:$8 sps:$4 sm:$0xff]  }
 0x481   : > { %4553 = vmatprep.subr.bf16.mxu0 %v9551_v57  ;;  %v9609_v57 = vld [vmem:[#allocation8 + $0x204] ss:$8 sps:$4 sm:$0xff]  }
 0x484   : > { %4554 = vmatpush1.bf16.msra.mxu0 %v9549_v40  ;;  %v9607_v40 = vld [vmem:[#allocation8 + $0x200] ss:$8 sps:$4 sm:$0xff]  }
 0x485   : > { %4555 = vmatprep.subr.bf16.mxu0 %v9554_v58  ;;  %v9612_v58 = vld [vmem:[#allocation8 + $0x214] ss:$8 sps:$4 sm:$0xff]  }
 0x488   : > { %4556 = vmatpush1.bf16.msra.mxu0 %v9552_v59  ;;  %v9610_v59 = vld [vmem:[#allocation8 + $0x210] ss:$8 sps:$4 sm:$0xff]  }
 0x489   : > { %4557 = vmatprep.subr.bf16.mxu0 %v9557_v62  ;;  %v9615_v62 = vld [vmem:[#allocation8 + $0x224] ss:$8 sps:$4 sm:$0xff]  }
 0x48c   : > { %4558 = vmatpush1.bf16.msra.mxu0 %v9555_v1  ;;  %v9613_v1 = vld [vmem:[#allocation8 + $0x220] ss:$8 sps:$4 sm:$0xff]  }
 0x48d   : > { %v8594_v17 = vpop.f32.mrb[60].mxu0  ;;  %4559 = vmatprep.subr.bf16.mxu0 %v9560_v2  ;;  %v9618_v2 = vld [vmem:[#allocation8 + $0x234] ss:$8 sps:$4 sm:$0xff]  }
 0x48e   : > { %v8595_v36 = vpop.f32.mrb[61].mxu0 }
 0x48f   : > { %v8596_v42 = vadd.f32 %v8595_v36, %v8594_v17  ;;  %v8597_v4 = vpop.f32.mrb[62].mxu0  ;;  %v9621_v17 = vld [vmem:[#allocation8 + $0x244] ss:$8 sps:$4 sm:$0xff]  }
 0x490   : > { %4560 = vmatpush1.bf16.msra.mxu0 %v9558_v14  ;;  %v8598_v5 = vpop.f32.mrb[63].mxu0  ;;  %v9616_v14 = vld [vmem:[#allocation8 + $0x230] ss:$8 sps:$4 sm:$0xff]  }
 0x491   : > { %v3439_v7 = vadd.f32 %v8596_v42, %v8574_v47  ;;  %v8599_v6 = vadd.f32 %v8598_v5, %v8597_v4  ;;  %4561 = vmatprep.subr.bf16.mxu0 %v9563_v11  ;;  %v9591_v47 = vld [vmem:[#allocation8 + $0x1a4] ss:$8 sps:$4 sm:$0xff]   ;;  %v9619_v11 = vld [vmem:[#allocation8 + $0x240] ss:$8 sps:$4 sm:$0xff]   ;;  %v9624_v5 = vld [vmem:[#allocation8 + $0x254] ss:$8 sps:$4 sm:$0xff]  }
 0x492   : > { %5076 = vmatprep.subr.bf16.mxu1 %v9591_v47 }
 0x493   : > { %v3442_v10 = vadd.f32 %v8599_v6, %v8577_v51  ;;  %5077 = vmatpush1.bf16.msra.mxu1 %v9589_v48  ;;  %v9597_v51 = vld [vmem:[#allocation8 + $0x1c4] ss:$8 sps:$4 sm:$0xff]  }
 0x494   : > { %4562 = vmatpush1.bf16.msra.mxu0 %v9561_v3  ;;  %5078 = vmatprep.subr.bf16.mxu1 %v9594_v49  ;;  %v9627_v6 = vld [vmem:[#allocation8 + $0x264] ss:$8 sps:$4 sm:$0xff]  }
 0x495   : > { %4563 = vmatprep.subr.bf16.mxu0 %v9566_v8  ;;  %v9625_v8 = vld [vmem:[#allocation8 + $0x260] ss:$8 sps:$4 sm:$0xff]  }
 0x497   : > { %5079 = vmatpush1.bf16.msra.mxu1 %v9592_v50 }
 0x498   : > { %4564 = vmatpush1.bf16.msra.mxu0 %v9564_v15  ;;  %5080 = vmatprep.subr.bf16.mxu1 %v9597_v51  ;;  %v9628_v15 = vld [vmem:[#allocation8 + $0x270] ss:$8 sps:$4 sm:$0xff]  }
 0x499   : > { %8622 = vmatprep.subr.bf16.mxu0 %v9567_v20  ;;  %v9633_v20 = vld [vmem:[#allocation8 + $0x104] ss:$8 sps:$4 sm:$0xff]  }
 0x49b   : > { %4566 = vmatmul.mubr.bf16.vlgmr.msra.gmra.mrb[68].mxu0 %v11058_v18  ;;  %v9578_v18 = vld [vmem:[#allocation7 + $0x500] ss:$12 sps:$4 sm:$0xff]   ;;  %5081 = vmatpush1.bf16.msra.mxu1 %v9595_v52 }
 0x49c   : > { %8623 = vmatpush3.bf16.msra.mxu0 %v9568_v21  ;;  %4608 = vmatprep.mubr.bf16.mxu0 %v11042_v44  ;;  %v9579_v44 = vld [vmem:[#allocation7 + $0x5d8] ss:$12 sps:$4 sm:$0xff]   ;;  %v9637_v21 = vld [vmem:[#allocation8 + $0x280] ss:$8 sps:$4 sm:$0xff]  }
 0x49d   : > { %8624 = vmatprep.subr.bf16.mxu0 %v9569_v22  ;;  %5082 = vmatprep.subr.bf16.mxu1 %v9600_v53  ;;  %v9639_v22 = vld [vmem:[#allocation8 + $0x284] ss:$8 sps:$4 sm:$0xff]  }
 0x49f   : > { %5083 = vmatpush1.bf16.msra.mxu1 %v9598_v38 }
 0x4a0   : > { %8625 = vmatpush3.bf16.msra.mxu0 %v9570_v23  ;;  %5084 = vmatprep.subr.bf16.mxu1 %v9603_v54  ;;  %v9643_v23 = vld [vmem:[#allocation8 + $0x290] ss:$8 sps:$4 sm:$0xff]  }
 0x4a1   : > { %8626 = vmatprep.subr.bf16.mxu0 %v9571_v24  ;;  %v9645_v24 = vld [vmem:[#allocation8 + $0x294] ss:$8 sps:$4 sm:$0xff]  }
 0x4a3   : > { %5085 = vmatpush1.bf16.msra.mxu1 %v9601_v55 }
 0x4a4   : > { %8627 = vmatpush3.bf16.msra.mxu0 %v9572_v25  ;;  %5086 = vmatprep.subr.bf16.mxu1 %v9606_v56  ;;  %v9649_v25 = vld [vmem:[#allocation8 + $0x2a0] ss:$8 sps:$4 sm:$0xff]  }
 0x4a5   : > { %8628 = vmatprep.subr.bf16.mxu0 %v9573_v26  ;;  %v9651_v26 = vld [vmem:[#allocation8 + $0x2a4] ss:$8 sps:$4 sm:$0xff]  }
 0x4a8   : > { %8629 = vmatpush3.bf16.msra.mxu0 %v9574_v27  ;;  %v9655_v27 = vld [vmem:[#allocation8 + $0x2b0] ss:$8 sps:$4 sm:$0xff]  }
 0x4a9   : > { %8630 = vmatprep.subr.bf16.mxu0 %v9575_v28  ;;  %v9657_v28 = vld [vmem:[#allocation8 + $0x2b4] ss:$8 sps:$4 sm:$0xff]  }
 0x4ac   : > { %8631 = vmatpush3.bf16.msra.mxu0 %v9576_v9 }
 0x4ad   : > { %v8616_v13 = vpop.f32.mrb[64].mxu0  ;;  %8632 = vmatprep.subr.bf16.mxu0 %v9577_v29 }
 0x4ae   : > { %v8617_v30 = vpop.f32.mrb[65].mxu0 }
 0x4af   : > { %v8618_v45 = vadd.f32 %v8617_v30, %v8616_v13  ;;  %v8619_v31 = vpop.f32.mrb[66].mxu0  ;;  %v9663_v30 = vld [vmem:[#allocation8 + $0x2c4] ss:$8 sps:$4 sm:$0xff]  }
 0x4b0   : > { %8633 = vmatpush3.bf16.msra.mxu0 %v9578_v18  ;;  %v8620_v34 = vpop.f32.mrb[67].mxu0 }
 0x4b1   : > { %v11079_v33 = vadd.f32 %v8618_v45, %v3439_v7  ;;  %v8621_v35 = vadd.f32 %v8620_v34, %v8619_v31  ;;  %8634 = vmatprep.subr.bf16.mxu0 %v9579_v44  ;;  %v9622_v7 = vld [vmem:[#allocation8 + $0x250] ss:$8 sps:$4 sm:$0xff]   ;;  %v9661_v31 = vld [vmem:[#allocation8 + $0x2c0] ss:$8 sps:$4 sm:$0xff]   ;;  %v9669_v34 = vld [vmem:[#allocation8 + $0x2d4] ss:$8 sps:$4 sm:$0xff]  }
 0x4b3   : > { %v11081_v41 = vadd.f32 %v8621_v35, %v3442_v10  ;;  %v9630_v10 = vld [vmem:[#allocation8 + $0x274] ss:$8 sps:$4 sm:$0xff]   ;;  %v9675_v35 = vld [vmem:[#allocation8 + $0x2e4] ss:$8 sps:$4 sm:$0xff]  }
 0x4b4   : > { %8635 = vmatpush3.bf16.msra.mxu0 %v9580_v32  ;;  %v9667_v32 = vld [vmem:[#allocation8 + $0x2d0] ss:$8 sps:$4 sm:$0xff]  }
 0x4b5   : > { %8636 = vmatprep.subr.bf16.mxu0 %v9581_v37  ;;  %v9673_v37 = vld [vmem:[#allocation8 + $0x2e0] ss:$8 sps:$4 sm:$0xff]  }
 0x4b8   : > { %8637 = vmatpush3.bf16.msra.mxu0 %v9582_v19 }
 0x4b9   : > { %5113 = vmatprep.subr.bf16.mxu0 %v9639_v22  ;;  %v9646_v22 = vld [vmem:[#allocation8 + $0x130] ss:$8 sps:$4 sm:$0xff]  }
 0x4bb   : > { %4609 = vmatmul.mubr.bf16.vlgmr.msra.gmra.mrb[72].mxu0 %v11040_v43  ;;  %v9604_v43 = vld [vmem:[#allocation8 + $0x1f0] ss:$8 sps:$4 sm:$0xff]  }
 0x4bc   : > { %5145 = vmatprep.mubr.bf16.mxu0 %v10407_v0  ;;  %5087 = vmatpush1.bf16.msra.mxu1 %v9604_v43 }
 0x4bd   : > { %5088 = vmatprep.subr.bf16.mxu1 %v9609_v57  ;;  %5114 = vmatpush1.bf16.msra.mxu0 %v9637_v21  ;;  %v9648_v21 = vld [vmem:[#allocation8 + $0x134] ss:$8 sps:$4 sm:$0xff]  }
 0x4be   : > { %5115 = vmatprep.subr.bf16.mxu0 %v9645_v24  ;;  %v9652_v24 = vld [vmem:[#allocation8 + $0x140] ss:$8 sps:$4 sm:$0xff]  }
 0x4c0   : > { %5089 = vmatpush1.bf16.msra.mxu1 %v9607_v40 }
 0x4c1   : > { %5090 = vmatprep.subr.bf16.mxu1 %v9612_v58  ;;  %5116 = vmatpush1.bf16.msra.mxu0 %v9643_v23  ;;  %v9654_v23 = vld [vmem:[#allocation8 + $0x144] ss:$8 sps:$4 sm:$0xff]  }
 0x4c2   : > { %5117 = vmatprep.subr.bf16.mxu0 %v9651_v26 }
 0x4c4   : > { %5091 = vmatpush1.bf16.msra.mxu1 %v9610_v59 }
 0x4c5   : > { %5092 = vmatprep.subr.bf16.mxu1 %v9615_v62  ;;  %5118 = vmatpush1.bf16.msra.mxu0 %v9649_v25  ;;  %v9660_v25 = vld [vmem:[#allocation8 + $0x154] ss:$8 sps:$4 sm:$0xff]  }
 0x4c6   : > { %5119 = vmatprep.subr.bf16.mxu0 %v9657_v28 }
 0x4c8   : > { %5093 = vmatpush1.bf16.msra.mxu1 %v9613_v1 }
 0x4c9   : > { %5094 = vmatprep.subr.bf16.mxu1 %v9618_v2  ;;  %5120 = vmatpush1.bf16.msra.mxu0 %v9655_v27  ;;  %v9658_v27 = vld [vmem:[#allocation8 + $0x150] ss:$8 sps:$4 sm:$0xff]  }
 0x4ca   : > { %5121 = vmatprep.subr.bf16.mxu0 %v9663_v30 }
 0x4cc   : > { %5095 = vmatpush1.bf16.msra.mxu1 %v9616_v14 }
 0x4cd   : > { %5096 = vmatprep.subr.bf16.mxu1 %v9621_v17  ;;  %5122 = vmatpush1.bf16.msra.mxu0 %v9661_v31 }
 0x4ce   : > { %5123 = vmatprep.subr.bf16.mxu0 %v9669_v34  ;;  %v9664_v34 = vld [vmem:[#allocation8 + $0x160] ss:$8 sps:$4 sm:$0xff]  }
 0x4d0   : > { %5097 = vmatpush1.bf16.msra.mxu1 %v9619_v11 }
 0x4d1   : > { %5098 = vmatprep.subr.bf16.mxu1 %v9624_v5  ;;  %5124 = vmatpush1.bf16.msra.mxu0 %v9667_v32  ;;  %v9631_v5 = vld [vmem:[#allocation8 + $0x100] ss:$8 sps:$4 sm:$0xff]   ;;  %v9672_v32 = vld [vmem:[#allocation8 + $0x174] ss:$8 sps:$4 sm:$0xff]  }
 0x4d2   : > { %5125 = vmatprep.subr.bf16.mxu0 %v9675_v35 }
 0x4d4   : > { %5099 = vmatpush1.bf16.msra.mxu1 %v9622_v7  ;;  %v9636_v7 = vld [vmem:[#allocation8 + $0x114] ss:$8 sps:$4 sm:$0xff]  }
 0x4d5   : > { %5100 = vmatprep.subr.bf16.mxu1 %v9627_v6  ;;  %5126 = vmatpush1.bf16.msra.mxu0 %v9673_v37 }
 0x4d6   : > { %5127 = vmatprep.subr.bf16.mxu0 %v9681_v61 }
 0x4d8   : > { %5101 = vmatpush1.bf16.msra.mxu1 %v9625_v8 }
 0x4d9   : > { %5102 = vmatprep.subr.bf16.mxu1 %v9630_v10  ;;  %5128 = vmatpush1.bf16.msra.mxu0 %v9679_v39  ;;  %v9634_v10 = vld [vmem:[#allocation8 + $0x110] ss:$8 sps:$4 sm:$0xff]  }
 0x4da   : > { %5394 = vmatprep.subr.bf16.mxu0 %v9687_v60  ;;  %v9670_v60 = vld [vmem:[#allocation8 + $0x170] ss:$8 sps:$4 sm:$0xff]  }
 0x4dc   : > { %5103 = vmatpush1.bf16.msra.mxu1 %v9628_v15  ;;  %v9642_v15 = vld [vmem:[#allocation8 + $0x124] ss:$8 sps:$4 sm:$0xff]  }
 0x4dd   : > { %5435 = vmatprep.subr.bf16.mxu1 %v9633_v20  ;;  %v9640_v20 = vld [vmem:[#allocation8 + $0x120] ss:$8 sps:$4 sm:$0xff]  }
 0x4ed   : > { %v11085_v36 = vpop.f32.mrb[44].mxu1 }
 0x4ee   : > { %v11087_v42 = vpop.f32.mrb[45].mxu1 }
 0x4ef   : > { %v11089_v4 = vpop.f32.mrb[46].mxu1 }
 0x4f0   : > { %v11091_v3 = vpop.f32.mrb[47].mxu1 }
 0x50d   : > { %v8660_v9 = vpop.f32.mrb[48].mxu1 }
 0x50e   : > { %v8661_v29 = vpop.f32.mrb[49].mxu1 }
 0x50f   : > { %v11093_v18 = vadd.f32 %v8661_v29, %v8660_v9  ;;  %v8663_v13 = vpop.f32.mrb[50].mxu1  ;;  %v9666_v9 = vld [vmem:[#allocation8 + $0x164] ss:$8 sps:$4 sm:$0xff]  }
 0x510   : > { %v8664_v44 = vpop.f32.mrb[51].mxu1 }
 0x511   : > { %v11095_v45 = vadd.f32 %v8664_v44, %v8663_v13 }
 0x52d   : > { %v8682_v19 = vpop.f32.mrb[52].mxu1 }
 0x52e   : > { %v8683_v46 = vpop.f32.mrb[53].mxu1 }
 0x52f   : > { %v11097_v47 = vadd.f32 %v8683_v46, %v8682_v19  ;;  %v8685_v48 = vpop.f32.mrb[54].mxu1  ;;  %v9678_v19 = vld [vmem:[#allocation8 + $0x304] ss:$8 sps:$4 sm:$0xff]  }
 0x530   : > { %v8686_v49 = vpop.f32.mrb[55].mxu1 }
 0x531   : > { %v11099_v50 = vadd.f32 %v8686_v49, %v8685_v48  ;;  %v9676_v48 = vld [vmem:[#allocation8 + $0x300] ss:$8 sps:$4 sm:$0xff]  }
 0x56e   : > { %v4567_v51 = vpop.f32.mrb[68].mxu0 }
 0x56f   : > { %v11102_v52 = vmax.f32 %v11085_v36, %v4567_v51  ;;  %v4569_v53 = vpop.f32.mrb[69].mxu0  ;;  %v9684_v51 = vld [vmem:[#allocation8 + $0x314] ss:$8 sps:$4 sm:$0xff]  }
 0x570   : > { %v11105_v38 = vmax.f32 %v11087_v42, %v4569_v53  ;;  %v4571_v54 = vpop.f32.mrb[70].mxu0 }
 0x571   : > { %v4702_v55 = vmax.f32 %v11089_v4, %v4571_v54  ;;  %v4573_v56 = vpop.f32.mrb[71].mxu0 }
 0x572   : > { %v4703_v43 = vmax.f32 %v11091_v3, %v4573_v56 }
 0x573   : > { %v11110_v57 = vpack.c.bf16 %v4702_v55, %v11102_v52  ;;  %v9685_v55 = vld [vmem:[#allocation8] ss:$8 sps:$4 sm:$0xff]  }
 0x574   : > { %v11113_v40 = vpack.c.bf16 %v4703_v43, %v11105_v38  ;;  %v9690_v43 = vld [vmem:[#allocation8 + $0x324] ss:$8 sps:$4 sm:$0xff]  }
 0x575   : > { %v4811_v58 = vshll.u32 %v11110_v57, 16  ;;  %v4809_v59 = vshrl.u32 %v11110_v57, 16 }
 0x576   : > { %v4816_v62 = vshrl.u32 %v11113_v40, 16  ;;  %v4818_v1 = vshll.u32 %v11113_v40, 16 }
 0x577   : > { %v4813_v2 = vrot.slane %v4811_v58, 1  ;;  %v11119_v14 = vrot.slane %v4809_v59, 1  ;;  %v11125_v42 = vrot.slane %v4811_v58, 2  ;;  %v9693_v58 = vld [vmem:[#allocation8 + $0x14] ss:$8 sps:$4 sm:$0xff]  }
 0x578   : > { %v4820_v17 = vrot.slane %v4818_v1, 1  ;;  %v11121_v11 = vrot.slane %v4816_v62, 1  ;;  %v11123_v36 = vrot.slane %v4818_v1, 2  ;;  %v9688_v1 = vld [vmem:[#allocation8 + $0x320] ss:$8 sps:$4 sm:$0xff]  }
 0x579   : > { %v4814_v3 = vor.u32 %v4813_v2, %v4809_v59  ;;  %v5909_v8 = vor.u32 %v11125_v42, %v11119_v14  ;;  %v9691_v2 = vld [vmem:[#allocation8 + $0x10] ss:$8 sps:$4 sm:$0xff]   ;;  %v9936_v14 = vld [vmem:[#allocation8 + $0x754] ss:$8 sps:$4 sm:$0xff]  }
 0x57a   : > { %v4821_v4 = vor.u32 %v4820_v17, %v4816_v62  ;;  %v5912_v6 = vor.u32 %v11123_v36, %v11121_v11  ;;  %v4706_v62 = vpack.c.bf16 %v11105_v38, %v11105_v38  ;;  %v9696_v17 = vld [vmem:[#allocation8 + $0x334] ss:$8 sps:$4 sm:$0xff]   ;;  %v9700_v38 = vld [vmem:[#allocation8 + $0x340] ss:$8 sps:$4 sm:$0xff]   ;;  %v9855_v36 = vld [vmem:[#allocation8 + $0x4c4] ss:$8 sps:$4 sm:$0xff]  }
 0x57b   : > { %v9852_v11 = vld [vmem:[#allocation8 + $0x654] ss:$8 sps:$4 sm:$0xff]  }
 0x57c   : > { %5104 = vmatprep.mubr.bf16.mxu1 %v4821_v4  ;;  %v9699_v4 = vld [vmem:[#allocation8 + $0x24] ss:$8 sps:$4 sm:$0xff]  }
 0x57d   : > { %5105 = vmatmul.mubr.bf16.vlgmr.msra.gmra.mrb[56].mxu1 %v4814_v3  ;;  %v9697_v3 = vld [vmem:[#allocation8 + $0x20] ss:$8 sps:$4 sm:$0xff]  }
 0x57e   : > { %5436 = vmatpush1.bf16.msra.mxu1 %v9631_v5  ;;  %5467 = vmatprep.mubr.bf16.mxu1 %v10407_v0  ;;  %v9694_v5 = vld [vmem:[#allocation8 + $0x330] ss:$8 sps:$4 sm:$0xff]  }
 0x57f   : > { %5437 = vmatprep.subr.bf16.mxu1 %v9636_v7  ;;  %v9702_v7 = vld [vmem:[#allocation8 + $0x344] ss:$8 sps:$4 sm:$0xff]  }
 0x582   : > { %5438 = vmatpush1.bf16.msra.mxu1 %v9634_v10  ;;  %v9705_v10 = vld [vmem:[#allocation8 + $0x34] ss:$8 sps:$4 sm:$0xff]  }
 0x583   : > { %5439 = vmatprep.subr.bf16.mxu1 %v9642_v15  ;;  %v9703_v15 = vld [vmem:[#allocation8 + $0x30] ss:$8 sps:$4 sm:$0xff]  }
 0x586   : > { %5440 = vmatpush1.bf16.msra.mxu1 %v9640_v20  ;;  %v9708_v20 = vld [vmem:[#allocation8 + $0x354] ss:$8 sps:$4 sm:$0xff]  }
 0x587   : > { %5441 = vmatprep.subr.bf16.mxu1 %v9648_v21  ;;  %v9711_v21 = vld [vmem:[#allocation8 + $0x44] ss:$8 sps:$4 sm:$0xff]  }
 0x58a   : > { %5442 = vmatpush1.bf16.msra.mxu1 %v9646_v22  ;;  %v9706_v22 = vld [vmem:[#allocation8 + $0x350] ss:$8 sps:$4 sm:$0xff]  }
 0x58b   : > { %5443 = vmatprep.subr.bf16.mxu1 %v9654_v23  ;;  %v9709_v23 = vld [vmem:[#allocation8 + $0x40] ss:$8 sps:$4 sm:$0xff]  }
 0x58e   : > { %5444 = vmatpush1.bf16.msra.mxu1 %v9652_v24  ;;  %v8638_v26 = vpop.f32.mrb[72].mxu0  ;;  %v9714_v24 = vld [vmem:[#allocation8 + $0x364] ss:$8 sps:$4 sm:$0xff]  }
 0x58f   : > { %v8639_v28 = vpop.f32.mrb[73].mxu0  ;;  %5445 = vmatprep.subr.bf16.mxu1 %v9660_v25  ;;  %v9717_v25 = vld [vmem:[#allocation8 + $0x54] ss:$8 sps:$4 sm:$0xff]  }
 0x590   : > { %v8640_v29 = vadd.f32 %v8639_v28, %v8638_v26  ;;  %v8641_v13 = vpop.f32.mrb[74].mxu0  ;;  %v9712_v26 = vld [vmem:[#allocation8 + $0x360] ss:$8 sps:$4 sm:$0xff]   ;;  %v9720_v28 = vld [vmem:[#allocation8 + $0x374] ss:$8 sps:$4 sm:$0xff]  }
 0x591   : > { %v8642_v44 = vpop.f32.mrb[75].mxu0 }
 0x592   : > { %v4652_v30 = vadd.f32 %v11093_v18, %v8640_v29  ;;  %v8643_v31 = vadd.f32 %v8642_v44, %v8641_v13  ;;  %5446 = vmatpush1.bf16.msra.mxu1 %v9658_v27  ;;  %v9715_v27 = vld [vmem:[#allocation8 + $0x50] ss:$8 sps:$4 sm:$0xff]   ;;  %v9721_v13 = vld [vmem:[#allocation8 + $0x60] ss:$8 sps:$4 sm:$0xff]   ;;  %v9726_v44 = vld [vmem:[#allocation8 + $0x384] ss:$8 sps:$4 sm:$0xff]  }
 0x593   : > { %5447 = vmatprep.subr.bf16.mxu1 %v9666_v9  ;;  %v9723_v9 = vld [vmem:[#allocation8 + $0x64] ss:$8 sps:$4 sm:$0xff]   ;;  %v9718_v29 = vld [vmem:[#allocation8 + $0x370] ss:$8 sps:$4 sm:$0xff]  }
 0x594   : > { %v4693_v35 = vadd.f32 %v11097_v47, %v4652_v30  ;;  %v4655_v37 = vadd.f32 %v11095_v45, %v8643_v31  ;;  %v5529_v47 = vrot.slane %v11113_v40, 1  ;;  %v9729_v30 = vld [vmem:[#allocation8 + $0x74] ss:$8 sps:$4 sm:$0xff]   ;;  %v9724_v31 = vld [vmem:[#allocation8 + $0x380] ss:$8 sps:$4 sm:$0xff]  }
 0x596   : > { %v4701_v61 = vmax.f32 %v11079_v33, %v4693_v35  ;;  %v4696_v39 = vadd.f32 %v11099_v50, %v4655_v37  ;;  %5448 = vmatpush1.bf16.msra.mxu1 %v9664_v34  ;;  %v9682_v50 = vld [vmem:[#allocation8 + $0x310] ss:$8 sps:$4 sm:$0xff]   ;;  %v9735_v35 = vld [vmem:[#allocation8 + $0x84] ss:$8 sps:$4 sm:$0xff]  }
 0x597   : > { %5449 = vmatprep.subr.bf16.mxu1 %v9672_v32  ;;  %v9727_v34 = vld [vmem:[#allocation8 + $0x70] ss:$8 sps:$4 sm:$0xff]   ;;  %v9732_v32 = vld [vmem:[#allocation8 + $0x394] ss:$8 sps:$4 sm:$0xff]  }
 0x598   : > { %v4704_v46 = vmax.f32 %v11081_v41, %v4696_v39  ;;  %v4707_v49 = vpack.c.bf16 %v4701_v61, %v4701_v61  ;;  %v9730_v37 = vld [vmem:[#allocation8 + $0x390] ss:$8 sps:$4 sm:$0xff]   ;;  %v9738_v39 = vld [vmem:[#allocation8 + $0x3a4] ss:$8 sps:$4 sm:$0xff]  }
 0x59a   : > { %v11138_v18 = vpack.c.bf16 %v4704_v46, %v4701_v61  ;;  %5450 = vmatpush1.bf16.msra.mxu1 %v9670_v60  ;;  %v9733_v61 = vld [vmem:[#allocation8 + $0x80] ss:$8 sps:$4 sm:$0xff]   ;;  %v9741_v60 = vld [vmem:[#allocation8 + $0x94] ss:$8 sps:$4 sm:$0xff]   ;;  %v9739_v46 = vld [vmem:[#allocation8 + $0x90] ss:$8 sps:$4 sm:$0xff]  }
 0x59b   : > { %5774 = vmatprep.subr.bf16.mxu1 %v9678_v19  ;;  %v9736_v19 = vld [vmem:[#allocation8 + $0x3a0] ss:$8 sps:$4 sm:$0xff]  }
 0x59c   : > { %v4823_v45 = vshrl.u32 %v11138_v18, 16  ;;  %v4825_v33 = vshll.u32 %v11138_v18, 16 }
 0x59d   : > { %5468 = vmatmul.mubr.bf16.vlgmr.msra.gmra.mrb[60].mxu1 %v4707_v49  ;;  %v9747_v49 = vld [vmem:[#allocation8 + $0xa4] ss:$8 sps:$4 sm:$0xff]  }
 0x59e   : > { %5775 = vmatpush1.bf16.msra.mxu1 %v9676_v48  ;;  %5806 = vmatprep.mubr.bf16.mxu1 %v5529_v47  ;;  %v4827_v53 = vrot.slane %v4825_v33, 1  ;;  %v11143_v54 = vrot.slane %v4823_v45, 1  ;;  %v11145_v41 = vrot.slane %v4825_v33, 2  ;;  %v9744_v48 = vld [vmem:[#allocation8 + $0x3b4] ss:$8 sps:$4 sm:$0xff]  }
 0x59f   : > { %5776 = vmatprep.subr.bf16.mxu1 %v9684_v51  ;;  %v9742_v51 = vld [vmem:[#allocation8 + $0x3b0] ss:$8 sps:$4 sm:$0xff]   ;;  %v9745_v47 = vld [vmem:[#allocation8 + $0xa0] ss:$8 sps:$4 sm:$0xff]   ;;  %v9753_v33 = vld [vmem:[#allocation8 + $0xb4] ss:$8 sps:$4 sm:$0xff]  }
 0x5a0   : > { %v4828_v56 = vor.u32 %v4827_v53, %v4823_v45  ;;  %v5915_v59 = vor.u32 %v11145_v41, %v11143_v54  ;;  %v9750_v45 = vld [vmem:[#allocation8 + $0x3c4] ss:$8 sps:$4 sm:$0xff]   ;;  %v9751_v53 = vld [vmem:[#allocation8 + $0xb0] ss:$8 sps:$4 sm:$0xff]   ;;  %v9840_v54 = vld [vmem:[#allocation8 + $0x634] ss:$8 sps:$4 sm:$0xff]  }
 0x5a1   : > { %v9843_v41 = vld [vmem:[#allocation8 + $0x4a4] ss:$8 sps:$4 sm:$0xff]  }
 0x5a2   : > { %5777 = vmatpush1.bf16.msra.mxu1 %v9682_v50  ;;  %5146 = vmatmul.mubr.bf16.vlgmr.msra.gmra.mrb[76].mxu0 %v4828_v56  ;;  %v9748_v50 = vld [vmem:[#allocation8 + $0x3c0] ss:$8 sps:$4 sm:$0xff]   ;;  %v9759_v56 = vld [vmem:[#allocation8 + $0xc4] ss:$8 sps:$4 sm:$0xff]  }
 0x5a3   : > { %5395 = vmatpush1.bf16.msra.mxu0 %v9685_v55  ;;  %5426 = vmatprep.mubr.bf16.mxu0 %v4706_v62  ;;  %v9756_v55 = vld [vmem:[#allocation8 + $0x3d4] ss:$8 sps:$4 sm:$0xff]   ;;  %v9762_v62 = vld [vmem:[#allocation8 + $0x3e4] ss:$8 sps:$4 sm:$0xff]  }
 0x5a4   : > { %5778 = vmatprep.subr.bf16.mxu1 %v9690_v43  ;;  %5396 = vmatprep.subr.bf16.mxu0 %v9693_v58  ;;  %v9754_v43 = vld [vmem:[#allocation8 + $0x3d0] ss:$8 sps:$4 sm:$0xff]   ;;  %v9757_v58 = vld [vmem:[#allocation8 + $0xc0] ss:$8 sps:$4 sm:$0xff]  }
 0x5a6   : > { %5779 = vmatpush1.bf16.msra.mxu1 %v9688_v1  ;;  %v9765_v1 = vld [vmem:[#allocation8 + $0xd4] ss:$8 sps:$4 sm:$0xff]  }
 0x5a7   : > { %5397 = vmatpush1.bf16.msra.mxu0 %v9691_v2  ;;  %5780 = vmatprep.subr.bf16.mxu1 %v9696_v17  ;;  %v9760_v2 = vld [vmem:[#allocation8 + $0x3e0] ss:$8 sps:$4 sm:$0xff]   ;;  %v9763_v17 = vld [vmem:[#allocation8 + $0xd0] ss:$8 sps:$4 sm:$0xff]  }
 0x5a8   : > { %5398 = vmatprep.subr.bf16.mxu0 %v9699_v4  ;;  %v9768_v4 = vld [vmem:[#allocation8 + $0x3f4] ss:$8 sps:$4 sm:$0xff]  }
 0x5aa   : > { %5781 = vmatpush1.bf16.msra.mxu1 %v9694_v5  ;;  %v9771_v5 = vld [vmem:[#allocation8 + $0xe4] ss:$8 sps:$4 sm:$0xff]  }
 0x5ab   : > { %5399 = vmatpush1.bf16.msra.mxu0 %v9697_v3  ;;  %5782 = vmatprep.subr.bf16.mxu1 %v9702_v7  ;;  %v9766_v3 = vld [vmem:[#allocation8 + $0x3f0] ss:$8 sps:$4 sm:$0xff]   ;;  %v9769_v7 = vld [vmem:[#allocation8 + $0xe0] ss:$8 sps:$4 sm:$0xff]  }
 0x5ac   : > { %5400 = vmatprep.subr.bf16.mxu0 %v9705_v10  ;;  %v9774_v10 = vld [vmem:[#allocation8 + $0x584] ss:$8 sps:$4 sm:$0xff]  }
 0x5ae   : > { %5783 = vmatpush1.bf16.msra.mxu1 %v9700_v38  ;;  %v9777_v38 = vld [vmem:[#allocation8 + $0xf4] ss:$8 sps:$4 sm:$0xff]  }
 0x5af   : > { %5401 = vmatpush1.bf16.msra.mxu0 %v9703_v15  ;;  %5784 = vmatprep.subr.bf16.mxu1 %v9708_v20  ;;  %v9772_v15 = vld [vmem:[#allocation8 + $0x580] ss:$8 sps:$4 sm:$0xff]   ;;  %v5528_v20 = vrot.slane %v11110_v57, 1 }
 0x5b0   : > { %5402 = vmatprep.subr.bf16.mxu0 %v9711_v21  ;;  %v9775_v21 = vld [vmem:[#allocation8 + $0xf0] ss:$8 sps:$4 sm:$0xff]  }
 0x5b2   : > { %5785 = vmatpush1.bf16.msra.mxu1 %v9706_v22  ;;  %v9780_v22 = vld [vmem:[#allocation8 + $0x594] ss:$8 sps:$4 sm:$0xff]  }
 0x5b3   : > { %5403 = vmatpush1.bf16.msra.mxu0 %v9709_v23  ;;  %5786 = vmatprep.subr.bf16.mxu1 %v9714_v24  ;;  %v9783_v23 = vld [vmem:[#allocation8 + $0x404] ss:$8 sps:$4 sm:$0xff]   ;;  %v9778_v24 = vld [vmem:[#allocation8 + $0x590] ss:$8 sps:$4 sm:$0xff]  }
 0x5b4   : > { %5404 = vmatprep.subr.bf16.mxu0 %v9717_v25  ;;  %v9781_v25 = vld [vmem:[#allocation8 + $0x400] ss:$8 sps:$4 sm:$0xff]  }
 0x5b6   : > { %5787 = vmatpush1.bf16.msra.mxu1 %v9712_v26  ;;  %v9786_v26 = vld [vmem:[#allocation8 + $0x5a4] ss:$8 sps:$4 sm:$0xff]  }
 0x5b7   : > { %5405 = vmatpush1.bf16.msra.mxu0 %v9715_v27  ;;  %5788 = vmatprep.subr.bf16.mxu1 %v9720_v28  ;;  %v4705_v27 = vpack.c.bf16 %v11102_v52, %v11102_v52  ;;  %v9789_v28 = vld [vmem:[#allocation8 + $0x414] ss:$8 sps:$4 sm:$0xff]  }
 0x5b8   : > { %5406 = vmatprep.subr.bf16.mxu0 %v9723_v9  ;;  %v9784_v9 = vld [vmem:[#allocation8 + $0x5a0] ss:$8 sps:$4 sm:$0xff]   ;;  %v9801_v52 = vld [vmem:[#allocation8 + $0x434] ss:$8 sps:$4 sm:$0xff]  }
 0x5ba   : > { %5789 = vmatpush1.bf16.msra.mxu1 %v9718_v29  ;;  %v9787_v29 = vld [vmem:[#allocation8 + $0x410] ss:$8 sps:$4 sm:$0xff]  }
 0x5bb   : > { %5407 = vmatpush1.bf16.msra.mxu0 %v9721_v13  ;;  %5790 = vmatprep.subr.bf16.mxu1 %v9726_v44  ;;  %v9792_v13 = vld [vmem:[#allocation8 + $0x5b4] ss:$8 sps:$4 sm:$0xff]   ;;  %v9795_v44 = vld [vmem:[#allocation8 + $0x424] ss:$8 sps:$4 sm:$0xff]  }
 0x5bc   : > { %5408 = vmatprep.subr.bf16.mxu0 %v9729_v30  ;;  %v9790_v30 = vld [vmem:[#allocation8 + $0x5b0] ss:$8 sps:$4 sm:$0xff]  }
 0x5be   : > { %5791 = vmatpush1.bf16.msra.mxu1 %v9724_v31  ;;  %v9793_v31 = vld [vmem:[#allocation8 + $0x420] ss:$8 sps:$4 sm:$0xff]  }
 0x5bf   : > { %5409 = vmatpush1.bf16.msra.mxu0 %v9727_v34  ;;  %5792 = vmatprep.subr.bf16.mxu1 %v9732_v32  ;;  %v9798_v34 = vld [vmem:[#allocation8 + $0x5c4] ss:$8 sps:$4 sm:$0xff]   ;;  %v9796_v32 = vld [vmem:[#allocation8 + $0x5c0] ss:$8 sps:$4 sm:$0xff]  }
 0x5c0   : > { %5410 = vmatprep.subr.bf16.mxu0 %v9735_v35  ;;  %v9799_v35 = vld [vmem:[#allocation8 + $0x430] ss:$8 sps:$4 sm:$0xff]  }
 0x5c2   : > { %5793 = vmatpush1.bf16.msra.mxu1 %v9730_v37  ;;  %v9804_v37 = vld [vmem:[#allocation8 + $0x5d4] ss:$8 sps:$4 sm:$0xff]  }
 0x5c3   : > { %5411 = vmatpush1.bf16.msra.mxu0 %v9733_v61  ;;  %5794 = vmatprep.subr.bf16.mxu1 %v9738_v39  ;;  %v9807_v61 = vld [vmem:[#allocation8 + $0x444] ss:$8 sps:$4 sm:$0xff]   ;;  %v9802_v39 = vld [vmem:[#allocation8 + $0x5d0] ss:$8 sps:$4 sm:$0xff]  }
 0x5c4   : > { %5412 = vmatprep.subr.bf16.mxu0 %v9741_v60  ;;  %v9805_v60 = vld [vmem:[#allocation8 + $0x440] ss:$8 sps:$4 sm:$0xff]  }
 0x5c6   : > { %5795 = vmatpush1.bf16.msra.mxu1 %v9736_v19  ;;  %v9810_v19 = vld [vmem:[#allocation8 + $0x5e4] ss:$8 sps:$4 sm:$0xff]  }
 0x5c7   : > { %5413 = vmatpush1.bf16.msra.mxu0 %v9739_v46  ;;  %5796 = vmatprep.subr.bf16.mxu1 %v9744_v48  ;;  %v9813_v46 = vld [vmem:[#allocation8 + $0x454] ss:$8 sps:$4 sm:$0xff]   ;;  %v9808_v48 = vld [vmem:[#allocation8 + $0x5e0] ss:$8 sps:$4 sm:$0xff]  }
 0x5c8   : > { %5414 = vmatprep.subr.bf16.mxu0 %v9747_v49  ;;  %v9811_v49 = vld [vmem:[#allocation8 + $0x450] ss:$8 sps:$4 sm:$0xff]  }
 0x5ca   : > { %5797 = vmatpush1.bf16.msra.mxu1 %v9742_v51  ;;  %v9816_v51 = vld [vmem:[#allocation8 + $0x5f4] ss:$8 sps:$4 sm:$0xff]  }
 0x5cb   : > { %5415 = vmatpush1.bf16.msra.mxu0 %v9745_v47  ;;  %5798 = vmatprep.subr.bf16.mxu1 %v9750_v45  ;;  %v9819_v47 = vld [vmem:[#allocation8 + $0x464] ss:$8 sps:$4 sm:$0xff]   ;;  %v9814_v45 = vld [vmem:[#allocation8 + $0x5f0] ss:$8 sps:$4 sm:$0xff]  }
 0x5cc   : > { %5416 = vmatprep.subr.bf16.mxu0 %v9753_v33  ;;  %v9817_v33 = vld [vmem:[#allocation8 + $0x460] ss:$8 sps:$4 sm:$0xff]  }
 0x5ce   : > { %5799 = vmatpush1.bf16.msra.mxu1 %v9748_v50  ;;  %v9822_v50 = vld [vmem:[#allocation8 + $0x604] ss:$8 sps:$4 sm:$0xff]  }
 0x5cf   : > { %5417 = vmatpush1.bf16.msra.mxu0 %v9751_v53  ;;  %5800 = vmatprep.subr.bf16.mxu1 %v9756_v55  ;;  %v9825_v53 = vld [vmem:[#allocation8 + $0x474] ss:$8 sps:$4 sm:$0xff]   ;;  %v9820_v55 = vld [vmem:[#allocation8 + $0x600] ss:$8 sps:$4 sm:$0xff]  }
 0x5d0   : > { %5418 = vmatprep.subr.bf16.mxu0 %v9759_v56  ;;  %v9823_v56 = vld [vmem:[#allocation8 + $0x470] ss:$8 sps:$4 sm:$0xff]  }
 0x5d2   : > { %5801 = vmatpush1.bf16.msra.mxu1 %v9754_v43  ;;  %v9828_v43 = vld [vmem:[#allocation8 + $0x614] ss:$8 sps:$4 sm:$0xff]  }
 0x5d3   : > { %5419 = vmatpush1.bf16.msra.mxu0 %v9757_v58  ;;  %5802 = vmatprep.subr.bf16.mxu1 %v9762_v62  ;;  %v6293_v58 = vrot.slane %v11113_v40, 2  ;;  %v9831_v62 = vld [vmem:[#allocation8 + $0x484] ss:$8 sps:$4 sm:$0xff]   ;;  %v9835_v40 = vld [vmem:[#allocation8 + $0x490] ss:$8 sps:$4 sm:$0xff]  }
 0x5d4   : > { %5420 = vmatprep.subr.bf16.mxu0 %v9765_v1  ;;  %v9826_v1 = vld [vmem:[#allocation8 + $0x610] ss:$8 sps:$4 sm:$0xff]  }
 0x5d6   : > { %5803 = vmatpush1.bf16.msra.mxu1 %v9760_v2  ;;  %v9829_v2 = vld [vmem:[#allocation8 + $0x480] ss:$8 sps:$4 sm:$0xff]  }
 0x5d7   : > { %5421 = vmatpush1.bf16.msra.mxu0 %v9763_v17  ;;  %5804 = vmatprep.subr.bf16.mxu1 %v9768_v4  ;;  %v5530_v17 = vrot.slane %v11138_v18, 1  ;;  %v9834_v4 = vld [vmem:[#allocation8 + $0x624] ss:$8 sps:$4 sm:$0xff]  }
 0x5d8   : > { %5422 = vmatprep.subr.bf16.mxu0 %v9771_v5  ;;  %v9837_v5 = vld [vmem:[#allocation8 + $0x494] ss:$8 sps:$4 sm:$0xff]  }
 0x5da   : > { %5805 = vmatpush1.bf16.msra.mxu1 %v9766_v3  ;;  %v9832_v3 = vld [vmem:[#allocation8 + $0x620] ss:$8 sps:$4 sm:$0xff]  }
 0x5db   : > { %5423 = vmatpush1.bf16.msra.mxu0 %v9769_v7  ;;  %6200 = vmatprep.subr.bf16.mxu1 %v9774_v10  ;;  %v9841_v7 = vld [vmem:[#allocation8 + $0x4a0] ss:$8 sps:$4 sm:$0xff]   ;;  %v9846_v10 = vld [vmem:[#allocation8 + $0x644] ss:$8 sps:$4 sm:$0xff]  }
 0x5dc   : > { %5424 = vmatprep.subr.bf16.mxu0 %v9777_v38  ;;  %v9849_v38 = vld [vmem:[#allocation8 + $0x4b4] ss:$8 sps:$4 sm:$0xff]  }
 0x5dd   : > { %5807 = vmatmul.mubr.bf16.vlgmr.msra.gmra.mrb[64].mxu1 %v5528_v20  ;;  %v9847_v20 = vld [vmem:[#allocation8 + $0x4b0] ss:$8 sps:$4 sm:$0xff]  }
 0x5de   : > { %6201 = vmatpush1.bf16.msra.mxu1 %v9772_v15  ;;  %6232 = vmatprep.mubr.bf16.mxu1 %v10407_v0  ;;  %v9844_v15 = vld [vmem:[#allocation8 + $0x640] ss:$8 sps:$4 sm:$0xff]  }
 0x5df   : > { %5425 = vmatpush1.bf16.msra.mxu0 %v9775_v21  ;;  %6202 = vmatprep.subr.bf16.mxu1 %v9780_v22  ;;  %v9853_v21 = vld [vmem:[#allocation8 + $0x4c0] ss:$8 sps:$4 sm:$0xff]   ;;  %v9858_v22 = vld [vmem:[#allocation8 + $0x664] ss:$8 sps:$4 sm:$0xff]  }
 0x5e0   : > { %5815 = vmatprep.subr.bf16.mxu0 %v9783_v23  ;;  %v9861_v23 = vld [vmem:[#allocation8 + $0x4d4] ss:$8 sps:$4 sm:$0xff]  }
 0x5e2   : > { %5427 = vmatmul.mubr.bf16.vlgmr.msra.gmra.mrb[80].mxu0 %v4705_v27  ;;  %6203 = vmatpush1.bf16.msra.mxu1 %v9778_v24  ;;  %v9856_v24 = vld [vmem:[#allocation8 + $0x660] ss:$8 sps:$4 sm:$0xff]   ;;  %v9867_v27 = vld [vmem:[#allocation8 + $0x4e4] ss:$8 sps:$4 sm:$0xff]  }
 0x5e3   : > { %5816 = vmatpush1.bf16.msra.mxu0 %v9781_v25  ;;  %6204 = vmatprep.subr.bf16.mxu1 %v9786_v26  ;;  %v9859_v25 = vld [vmem:[#allocation8 + $0x4d0] ss:$8 sps:$4 sm:$0xff]   ;;  %v9864_v26 = vld [vmem:[#allocation8 + $0x674] ss:$8 sps:$4 sm:$0xff]  }
 0x5e4   : > { %5817 = vmatprep.subr.bf16.mxu0 %v9789_v28  ;;  %5847 = vmatprep.mubr.bf16.mxu0 %v10407_v0  ;;  %v9862_v28 = vld [vmem:[#allocation8 + $0x670] ss:$8 sps:$4 sm:$0xff]  }
 0x5e6   : > { %6205 = vmatpush1.bf16.msra.mxu1 %v9784_v9  ;;  %v9865_v9 = vld [vmem:[#allocation8 + $0x4e0] ss:$8 sps:$4 sm:$0xff]  }
 0x5e7   : > { %5818 = vmatpush1.bf16.msra.mxu0 %v9787_v29  ;;  %6206 = vmatprep.subr.bf16.mxu1 %v9792_v13  ;;  %v9870_v29 = vld [vmem:[#allocation8 + $0x684] ss:$8 sps:$4 sm:$0xff]   ;;  %v9873_v13 = vld [vmem:[#allocation8 + $0x4f4] ss:$8 sps:$4 sm:$0xff]  }
 0x5e8   : > { %5819 = vmatprep.subr.bf16.mxu0 %v9795_v44  ;;  %v9868_v44 = vld [vmem:[#allocation8 + $0x680] ss:$8 sps:$4 sm:$0xff]  }
 0x5ea   : > { %6207 = vmatpush1.bf16.msra.mxu1 %v9790_v30  ;;  %v9871_v30 = vld [vmem:[#allocation8 + $0x4f0] ss:$8 sps:$4 sm:$0xff]  }
 0x5eb   : > { %5820 = vmatpush1.bf16.msra.mxu0 %v9793_v31  ;;  %6208 = vmatprep.subr.bf16.mxu1 %v9798_v34  ;;  %v9876_v31 = vld [vmem:[#allocation8 + $0x694] ss:$8 sps:$4 sm:$0xff]   ;;  %v9879_v34 = vld [vmem:[#allocation8 + $0x504] ss:$8 sps:$4 sm:$0xff]  }
 0x5ec   : > { %5821 = vmatprep.subr.bf16.mxu0 %v9801_v52  ;;  %v9874_v52 = vld [vmem:[#allocation8 + $0x690] ss:$8 sps:$4 sm:$0xff]  }
 0x5ee   : > { %6209 = vmatpush1.bf16.msra.mxu1 %v9796_v32  ;;  %v9877_v32 = vld [vmem:[#allocation8 + $0x500] ss:$8 sps:$4 sm:$0xff]  }
 0x5ef   : > { %5822 = vmatpush1.bf16.msra.mxu0 %v9799_v35  ;;  %6210 = vmatprep.subr.bf16.mxu1 %v9804_v37  ;;  %v9882_v35 = vld [vmem:[#allocation8 + $0x6a4] ss:$8 sps:$4 sm:$0xff]   ;;  %v9885_v37 = vld [vmem:[#allocation8 + $0x514] ss:$8 sps:$4 sm:$0xff]  }
 0x5f0   : > { %5823 = vmatprep.subr.bf16.mxu0 %v9807_v61  ;;  %v9880_v61 = vld [vmem:[#allocation8 + $0x6a0] ss:$8 sps:$4 sm:$0xff]  }
 0x5f2   : > { %6211 = vmatpush1.bf16.msra.mxu1 %v9802_v39  ;;  %v9883_v39 = vld [vmem:[#allocation8 + $0x510] ss:$8 sps:$4 sm:$0xff]  }
 0x5f3   : > { %5824 = vmatpush1.bf16.msra.mxu0 %v9805_v60  ;;  %6212 = vmatprep.subr.bf16.mxu1 %v9810_v19  ;;  %v9888_v60 = vld [vmem:[#allocation8 + $0x6b4] ss:$8 sps:$4 sm:$0xff]   ;;  %v9891_v19 = vld [vmem:[#allocation8 + $0x524] ss:$8 sps:$4 sm:$0xff]  }
 0x5f4   : > { %5825 = vmatprep.subr.bf16.mxu0 %v9813_v46  ;;  %v9886_v46 = vld [vmem:[#allocation8 + $0x6b0] ss:$8 sps:$4 sm:$0xff]  }
 0x5f6   : > { %6213 = vmatpush1.bf16.msra.mxu1 %v9808_v48  ;;  %v9889_v48 = vld [vmem:[#allocation8 + $0x520] ss:$8 sps:$4 sm:$0xff]  }
 0x5f7   : > { %5826 = vmatpush1.bf16.msra.mxu0 %v9811_v49  ;;  %6214 = vmatprep.subr.bf16.mxu1 %v9816_v51  ;;  %v9894_v49 = vld [vmem:[#allocation8 + $0x6c4] ss:$8 sps:$4 sm:$0xff]   ;;  %v9897_v51 = vld [vmem:[#allocation8 + $0x534] ss:$8 sps:$4 sm:$0xff]  }
 0x5f8   : > { %5827 = vmatprep.subr.bf16.mxu0 %v9819_v47  ;;  %v9892_v47 = vld [vmem:[#allocation8 + $0x6c0] ss:$8 sps:$4 sm:$0xff]  }
 0x5fa   : > { %6215 = vmatpush1.bf16.msra.mxu1 %v9814_v45  ;;  %v9895_v45 = vld [vmem:[#allocation8 + $0x530] ss:$8 sps:$4 sm:$0xff]  }
 0x5fb   : > { %5828 = vmatpush1.bf16.msra.mxu0 %v9817_v33  ;;  %6538 = vmatprep.subr.bf16.mxu1 %v9822_v50  ;;  %v9900_v33 = vld [vmem:[#allocation8 + $0x6d4] ss:$8 sps:$4 sm:$0xff]   ;;  %v9903_v50 = vld [vmem:[#allocation8 + $0x544] ss:$8 sps:$4 sm:$0xff]  }
 0x5fc   : > { %5829 = vmatprep.subr.bf16.mxu0 %v9825_v53  ;;  %v9898_v53 = vld [vmem:[#allocation8 + $0x6d0] ss:$8 sps:$4 sm:$0xff]  }
 0x5fd   : > { %6233 = vmatmul.mubr.bf16.vlgmr.msra.gmra.mrb[68].mxu1 %v5915_v59  ;;  %v9838_v59 = vld [vmem:[#allocation8 + $0x630] ss:$8 sps:$4 sm:$0xff]  }
 0x5fe   : > { %6539 = vmatpush1.bf16.msra.mxu1 %v9820_v55  ;;  %6570 = vmatprep.mubr.bf16.mxu1 %v6293_v58  ;;  %v9901_v55 = vld [vmem:[#allocation8 + $0x540] ss:$8 sps:$4 sm:$0xff]  }
 0x5ff   : > { %5830 = vmatpush1.bf16.msra.mxu0 %v9823_v56  ;;  %6540 = vmatprep.subr.bf16.mxu1 %v9828_v43  ;;  %v9906_v56 = vld [vmem:[#allocation8 + $0x6e4] ss:$8 sps:$4 sm:$0xff]   ;;  %v9909_v43 = vld [vmem:[#allocation8 + $0x554] ss:$8 sps:$4 sm:$0xff]   ;;  %v9904_v58 = vld [vmem:[#allocation8 + $0x6e0] ss:$8 sps:$4 sm:$0xff]  }
 0x600   : > { %6159 = vmatprep.subr.bf16.mxu0 %v9831_v62  ;;  %v9907_v62 = vld [vmem:[#allocation8 + $0x550] ss:$8 sps:$4 sm:$0xff]  }
 0x602   : > { %5848 = vmatmul.mubr.bf16.vlgmr.msra.gmra.mrb[84].mxu0 %v5530_v17  ;;  %6541 = vmatpush1.bf16.msra.mxu1 %v9826_v1  ;;  %v9912_v1 = vld [vmem:[#allocation8 + $0x6f4] ss:$8 sps:$4 sm:$0xff]   ;;  %v9910_v17 = vld [vmem:[#allocation8 + $0x6f0] ss:$8 sps:$4 sm:$0xff]  }
 0x603   : > { %6160 = vmatpush1.bf16.msra.mxu0 %v9829_v2  ;;  %6191 = vmatprep.mubr.bf16.mxu0 %v5912_v6  ;;  %v9850_v6 = vld [vmem:[#allocation8 + $0x650] ss:$8 sps:$4 sm:$0xff]   ;;  %v9915_v2 = vld [vmem:[#allocation8 + $0x564] ss:$8 sps:$4 sm:$0xff]  }
 0x604   : > { %6542 = vmatprep.subr.bf16.mxu1 %v9834_v4  ;;  %6161 = vmatprep.subr.bf16.mxu0 %v9837_v5  ;;  %v9913_v4 = vld [vmem:[#allocation8 + $0x560] ss:$8 sps:$4 sm:$0xff]   ;;  %v9918_v5 = vld [vmem:[#allocation8 + $0x574] ss:$8 sps:$4 sm:$0xff]  }
 0x606   : > { %6543 = vmatpush1.bf16.msra.mxu1 %v9832_v3  ;;  %v6292_v3 = vrot.slane %v11110_v57, 2  ;;  %v9925_v57 = vld [vmem:[#allocation8 + $0x720] ss:$8 sps:$4 sm:$0xff]  }
 0x607   : > { %6162 = vmatpush1.bf16.msra.mxu0 %v9835_v40  ;;  %6544 = vmatprep.subr.bf16.mxu1 %v9840_v54  ;;  %v9916_v40 = vld [vmem:[#allocation8 + $0x570] ss:$8 sps:$4 sm:$0xff]   ;;  %v9921_v54 = vld [vmem:[#allocation8 + $0x704] ss:$8 sps:$4 sm:$0xff]  }
 0x608   : > { %6163 = vmatprep.subr.bf16.mxu0 %v9843_v41  ;;  %v9919_v41 = vld [vmem:[#allocation8 + $0x700] ss:$8 sps:$4 sm:$0xff]  }
 0x60a   : > { %6545 = vmatpush1.bf16.msra.mxu1 %v9838_v59  ;;  %v9924_v59 = vld [vmem:[#allocation8 + $0x714] ss:$8 sps:$4 sm:$0xff]  }
 0x60b   : > { %6164 = vmatpush1.bf16.msra.mxu0 %v9841_v7  ;;  %6546 = vmatprep.subr.bf16.mxu1 %v9846_v10  ;;  %v9922_v7 = vld [vmem:[#allocation8 + $0x710] ss:$8 sps:$4 sm:$0xff]   ;;  %v9927_v10 = vld [vmem:[#allocation8 + $0x724] ss:$8 sps:$4 sm:$0xff]  }
 0x60c   : > { %6165 = vmatprep.subr.bf16.mxu0 %v9849_v38  ;;  %v9930_v38 = vld [vmem:[#allocation8 + $0x734] ss:$8 sps:$4 sm:$0xff]  }
 0x60e   : > { %6547 = vmatpush1.bf16.msra.mxu1 %v9844_v15  ;;  %v9928_v15 = vld [vmem:[#allocation8 + $0x730] ss:$8 sps:$4 sm:$0xff]  }
 0x60f   : > { %6166 = vmatpush1.bf16.msra.mxu0 %v9847_v20  ;;  %6548 = vmatprep.subr.bf16.mxu1 %v9852_v11  ;;  %v9933_v20 = vld [vmem:[#allocation8 + $0x744] ss:$8 sps:$4 sm:$0xff]   ;;  %v9931_v11 = vld [vmem:[#allocation8 + $0x740] ss:$8 sps:$4 sm:$0xff]  }
 0x610   : > { %6167 = vmatprep.subr.bf16.mxu0 %v9855_v36 }
 0x612   : > { %6549 = vmatpush1.bf16.msra.mxu1 %v9850_v6 }
 0x613   : > { %6168 = vmatpush1.bf16.msra.mxu0 %v9853_v21  ;;  %6550 = vmatprep.subr.bf16.mxu1 %v9858_v22  ;;  %v9934_v21 = vld [vmem:[#allocation8 + $0x750] ss:$8 sps:$4 sm:$0xff]   ;;  %v9939_v22 = vld [vmem:[#allocation8 + $0x764] ss:$8 sps:$4 sm:$0xff]  }
 0x614   : > { %6169 = vmatprep.subr.bf16.mxu0 %v9861_v23  ;;  %v9937_v23 = vld [vmem:[#allocation8 + $0x760] ss:$8 sps:$4 sm:$0xff]  }
 0x616   : > { %6551 = vmatpush1.bf16.msra.mxu1 %v9856_v24  ;;  %v9942_v24 = vld [vmem:[#allocation8 + $0x774] ss:$8 sps:$4 sm:$0xff]  }
 0x617   : > { %6170 = vmatpush1.bf16.msra.mxu0 %v9859_v25  ;;  %6552 = vmatprep.subr.bf16.mxu1 %v9864_v26  ;;  %v9940_v25 = vld [vmem:[#allocation8 + $0x770] ss:$8 sps:$4 sm:$0xff]   ;;  %v6294_v26 = vrot.slane %v11138_v18, 2 }
 0x618   : > { %6171 = vmatprep.subr.bf16.mxu0 %v9867_v27 }
 0x61a   : > { %6553 = vmatpush1.bf16.msra.mxu1 %v9862_v28 }
 0x61b   : > { %6172 = vmatpush1.bf16.msra.mxu0 %v9865_v9  ;;  %6554 = vmatprep.subr.bf16.mxu1 %v9870_v29 }
 0x61c   : > { %6173 = vmatprep.subr.bf16.mxu0 %v9873_v13 }
 0x61e   : > { %6555 = vmatpush1.bf16.msra.mxu1 %v9868_v44 }
 0x61f   : > { %6174 = vmatpush1.bf16.msra.mxu0 %v9871_v30  ;;  %6556 = vmatprep.subr.bf16.mxu1 %v9876_v31 }
 0x620   : > { %6175 = vmatprep.subr.bf16.mxu0 %v9879_v34 }
 0x622   : > { %6557 = vmatpush1.bf16.msra.mxu1 %v9874_v52 }
 0x623   : > { %6176 = vmatpush1.bf16.msra.mxu0 %v9877_v32  ;;  %6558 = vmatprep.subr.bf16.mxu1 %v9882_v35 }
 0x624   : > { %6177 = vmatprep.subr.bf16.mxu0 %v9885_v37 }
 0x626   : > { %6559 = vmatpush1.bf16.msra.mxu1 %v9880_v61 }
 0x627   : > { %6178 = vmatpush1.bf16.msra.mxu0 %v9883_v39  ;;  %6560 = vmatprep.subr.bf16.mxu1 %v9888_v60 }
 0x628   : > { %6179 = vmatprep.subr.bf16.mxu0 %v9891_v19 }
 0x62a   : > { %6561 = vmatpush1.bf16.msra.mxu1 %v9886_v46 }
 0x62b   : > { %6180 = vmatpush1.bf16.msra.mxu0 %v9889_v48  ;;  %6562 = vmatprep.subr.bf16.mxu1 %v9894_v49 }
 0x62c   : > { %6181 = vmatprep.subr.bf16.mxu0 %v9897_v51 }
 0x62e   : > { %6563 = vmatpush1.bf16.msra.mxu1 %v9892_v47  ;;  %v9943_v47 = vld [vmem:[#allocation13 + $0x40] sm:$0xff]  }
 0x62f   : > { %6182 = vmatpush1.bf16.msra.mxu0 %v9895_v45  ;;  %6564 = vmatprep.subr.bf16.mxu1 %v9900_v33  ;;  %v9945_v45 = vld [vmem:[#allocation13] sm:$0xff]   ;;  %v9947_v33 = vld [vmem:[#allocation13 + $0x48] sm:$0xff]  }
 0x630   : > { %6183 = vmatprep.subr.bf16.mxu0 %v9903_v50 }
 0x632   : > { %6565 = vmatpush1.bf16.msra.mxu1 %v9898_v53  ;;  %v9949_v53 = vld [vmem:[#allocation13 + $0x8] sm:$0xff]  }
 0x633   : > { %6184 = vmatpush1.bf16.msra.mxu0 %v9901_v55  ;;  %6566 = vmatprep.subr.bf16.mxu1 %v9906_v56 }
 0x634   : > { %6185 = vmatprep.subr.bf16.mxu0 %v9909_v43  ;;  %v9951_v43 = vld [vmem:[#allocation13 + $0x50] sm:$0xff]  }
 0x636   : > { %6567 = vmatpush1.bf16.msra.mxu1 %v9904_v58 }
 0x637   : > { %6186 = vmatpush1.bf16.msra.mxu0 %v9907_v62  ;;  %6568 = vmatprep.subr.bf16.mxu1 %v9912_v1  ;;  %v9953_v62 = vld [vmem:[#allocation13 + $0x10] sm:$0xff]  }
 0x638   : > { %6187 = vmatprep.subr.bf16.mxu0 %v9915_v2 }
 0x63a   : > { %6569 = vmatpush1.bf16.msra.mxu1 %v9910_v17 }
 0x63b   : > { %6188 = vmatpush1.bf16.msra.mxu0 %v9913_v4  ;;  %8688 = vmatprep.subr.bf16.mxu1 %v9943_v47  ;;  %v9955_v4 = vld [vmem:[#allocation13 + $0x58] sm:$0xff]   ;;  %v9962_v47 = vld [vmem:[#allocation13 + $0xa0] sm:$0xff]  }
 0x63c   : > { %6189 = vmatprep.subr.bf16.mxu0 %v9918_v5 }
 0x63d   : > { %6571 = vmatmul.mubr.bf16.vlgmr.msra.gmra.mrb[72].mxu1 %v6292_v3 }
 0x63e   : > { %8689 = vmatpush3.bf16.msra.mxu1 %v9945_v45  ;;  %v9964_v45 = vld [vmem:[#allocation13 + $0xe8] sm:$0xff]  }
 0x63f   : > { %6190 = vmatpush1.bf16.msra.mxu0 %v9916_v40  ;;  %8690 = vmatprep.subr.bf16.mxu1 %v9947_v33  ;;  %v9965_v33 = vld [vmem:[#allocation13 + $0x28] sm:$0xff]  }
 0x640   : > { %6579 = vmatprep.subr.bf16.mxu0 %v9921_v54 }
 0x642   : > { %6192 = vmatmul.mubr.bf16.vlgmr.msra.gmra.mrb[88].mxu0 %v5909_v8  ;;  %8691 = vmatpush3.bf16.msra.mxu1 %v9949_v53  ;;  %v9967_v53 = vld [vmem:[#allocation13 + $0x70] sm:$0xff]  }
 0x643   : > { %6580 = vmatpush1.bf16.msra.mxu0 %v9919_v41  ;;  %6611 = vmatprep.mubr.bf16.mxu0 %v10407_v0  ;;  %v9957_v41 = vld [vmem:[#allocation13 + $0x18] sm:$0xff]  }
 0x644   : > { %6581 = vmatprep.subr.bf16.mxu0 %v9924_v59  ;;  %8692 = vmatprep.subr.bf16.mxu1 %v9951_v43  ;;  %v9970_v43 = vld [vmem:[#allocation13 + $0xb0] sm:$0xff]  }
 0x646   : > { %8693 = vmatpush3.bf16.msra.mxu1 %v9953_v62  ;;  %v9972_v62 = vld [vmem:[#allocation13 + $0xf8] sm:$0xff]  }
 0x647   : > { %6582 = vmatpush1.bf16.msra.mxu0 %v9922_v7  ;;  %8694 = vmatprep.subr.bf16.mxu1 %v9955_v4  ;;  %v9959_v7 = vld [vmem:[#allocation13 + $0x60] sm:$0xff]  }
 0x648   : > { %6583 = vmatprep.subr.bf16.mxu0 %v9927_v10  ;;  %v9961_v10 = vld [vmem:[#allocation13 + $0x20] sm:$0xff]  }
 0x64a   : > { %8695 = vmatpush3.bf16.msra.mxu1 %v9957_v41 }
 0x64b   : > { %6584 = vmatpush1.bf16.msra.mxu0 %v9925_v57  ;;  %8696 = vmatprep.subr.bf16.mxu1 %v9959_v7 }
 0x64c   : > { %6585 = vmatprep.subr.bf16.mxu0 %v9930_v38 }
 0x64e   : > { %8697 = vmatpush3.bf16.msra.mxu1 %v9961_v10 }
 0x64f   : > { %6586 = vmatpush1.bf16.msra.mxu0 %v9928_v15 }
 0x650   : > { %v5106_v36 = vpop.f32.mrb[56].mxu1  ;;  %6587 = vmatprep.subr.bf16.mxu0 %v9933_v20 }
 0x651   : > { %v5108_v42 = vpop.f32.mrb[57].mxu1 }
 0x652   : > { %v5110_v8 = vpop.f32.mrb[58].mxu1 }
 0x653   : > { %6588 = vmatpush1.bf16.msra.mxu0 %v9931_v11  ;;  %v5111_v6 = vpop.f32.mrb[59].mxu1 }
 0x654   : > { %6589 = vmatprep.subr.bf16.mxu0 %v9936_v14 }
 0x657   : > { %6590 = vmatpush1.bf16.msra.mxu0 %v9934_v21 }
 0x658   : > { %6591 = vmatprep.subr.bf16.mxu0 %v9939_v22 }
 0x65b   : > { %6592 = vmatpush1.bf16.msra.mxu0 %v9937_v23  ;;  %v6622_v23 = vld [vmem:[#allocation10] sm:$0x3] }
 0x65c   : > { %6593 = vmatprep.subr.bf16.mxu0 %v9942_v24 }
 0x65f   : > { %6594 = vmatpush1.bf16.msra.mxu0 %v9940_v25 }
 0x662   : > { %6612 = vmatmul.mubr.bf16.vlgmr.msra.gmra.mrb[92].mxu0 %v6294_v26  ;;  %v6627_v26 = vrot.slane %v6622_v23, %v1881_v12  ;;  %v6640_v12 = vld [vmem:[#allocation11] sm:$0x3] }
 0x663   : > { %6683 = vmatprep.mubr.bf16.mxu0 %v10407_v0 }
 0x670   : > { %v5469_v27 = vpop.f32.mrb[60].mxu1 }
 0x671   : > { %v5471_v28 = vpop.f32.mrb[61].mxu1 }
 0x672   : > { %v5473_v9 = vpop.f32.mrb[62].mxu1 }
 0x673   : > { %v5474_v29 = vpop.f32.mrb[63].mxu1  ;;  %v6631_v9 = vrot.slane %v6622_v23, %v1885_v16  ;;  %v6693_v16 = vld [vmem:[#allocation11 + $0x2] sm:$0x3] }
 0x674   : > { %v10008_v23 = vld [vmem:[%s11319_s11 + $0x8] sm:$0xff]  }
 0x675   : > { %v5147_v13 = vpop.f32.mrb[76].mxu0 }
 0x676   : > { %v5148_v44 = vadd.f32 %v5147_v13, %v5106_v36  ;;  %v5149_v30 = vpop.f32.mrb[77].mxu0 }
 0x677   : > { %v5150_v31 = vadd.f32 %v5149_v30, %v5108_v42  ;;  %v5151_v34 = vpop.f32.mrb[78].mxu0 }
 0x678   : > { %v5152_v52 = vpop.f32.mrb[79].mxu0 }
 0x6b0   : > { %v5808_v32 = vpop.f32.mrb[64].mxu1 }
 0x6b1   : > { %v5810_v35 = vpop.f32.mrb[65].mxu1 }
 0x6b2   : > { %v5812_v37 = vpop.f32.mrb[66].mxu1 }
 0x6b3   : > { %v5813_v61 = vpop.f32.mrb[67].mxu1 }
 0x6b5   : > { %v5428_v39 = vpop.f32.mrb[80].mxu0 }
 0x6b6   : > { %v5429_v60 = vadd.f32 %v5428_v39, %v5148_v44  ;;  %v5430_v18 = vpop.f32.mrb[81].mxu0  ;;  %v9946_v39 = vld [vmem:[#allocation13 + $0x80] sm:$0xff]  }
 0x6b7   : > { %v5431_v19 = vadd.f32 %v5430_v18, %v5150_v31  ;;  %v5432_v46 = vpop.f32.mrb[82].mxu0  ;;  %v9950_v18 = vld [vmem:[#allocation13 + $0x88] sm:$0xff]  }
 0x6b8   : > { %v5470_v48 = vadd.f32 %v5469_v27, %v5429_v60  ;;  %v5433_v49 = vpop.f32.mrb[83].mxu0  ;;  %v9948_v60 = vld [vmem:[#allocation13 + $0xc8] sm:$0xff]   ;;  %v9954_v46 = vld [vmem:[#allocation13 + $0x90] sm:$0xff]  }
 0x6b9   : > { %v5472_v51 = vadd.f32 %v5471_v28, %v5431_v19  ;;  %v9952_v19 = vld [vmem:[#allocation13 + $0xd0] sm:$0xff]   ;;  %v9958_v49 = vld [vmem:[#allocation13 + $0x98] sm:$0xff]  }
 0x6d0   : > { %v6234_v50 = vpop.f32.mrb[68].mxu1 }
 0x6d1   : > { %v6236_v55 = vpop.f32.mrb[69].mxu1 }
 0x6d2   : > { %v6238_v56 = vpop.f32.mrb[70].mxu1 }
 0x6d3   : > { %v6239_v58 = vpop.f32.mrb[71].mxu1  ;;  %v9969_v56 = vld [vmem:[#allocation13 + $0x30] sm:$0xff]  }
 0x6d4   : > { %v9971_v58 = vld [vmem:[#allocation13 + $0x78] sm:$0xff]  }
 0x6d5   : > { %v5849_v1 = vpop.f32.mrb[84].mxu0 }
 0x6d6   : > { %v5850_v2 = vadd.f32 %v5849_v1, %v5808_v32  ;;  %v5851_v17 = vpop.f32.mrb[85].mxu0  ;;  %v9973_v1 = vld [vmem:[#allocation13 + $0x38] sm:$0xff]  }
 0x6d7   : > { %v5852_v5 = vadd.f32 %v5851_v17, %v5810_v35  ;;  %v5853_v3 = vpop.f32.mrb[86].mxu0  ;;  %v10408_v17 = vmov 0.0  }
 0x6d8   : > { %v5856_v40 = vadd.f32 %v5850_v2, %v5470_v48  ;;  %v5854_v54 = vpop.f32.mrb[87].mxu0  ;;  %v9956_v48 = vld [vmem:[#allocation13 + $0xd8] sm:$0xff]  }
 0x6d9   : > { %v5857_v59 = vadd.f32 %v5852_v5, %v5472_v51  ;;  %v9960_v51 = vld [vmem:[#allocation13 + $0xe0] sm:$0xff]   ;;  %v9974_v2 = vld [vmem:[#allocation13 + $0xb8] sm:$0xff]  }
 0x710   : > { %v6572_v57 = vpop.f32.mrb[72].mxu1 }
 0x711   : > { %v6574_v38 = vpop.f32.mrb[73].mxu1 }
 0x712   : > { %v6576_v15 = vpop.f32.mrb[74].mxu1 }
 0x713   : > { %v6577_v20 = vpop.f32.mrb[75].mxu1  ;;  %v9975_v15 = vld [vmem:[#allocation14] sm:$0xff]  }
 0x715   : > { %v6193_v11 = vpop.f32.mrb[88].mxu0 }
 0x716   : > { %v6235_v36 = vadd.f32 %v6234_v50, %v6193_v11  ;;  %v6195_v14 = vpop.f32.mrb[89].mxu0  ;;  %v9966_v50 = vld [vmem:[#allocation13 + $0xa8] sm:$0xff]  }
 0x717   : > { %v6237_v42 = vadd.f32 %v6236_v55, %v6195_v14  ;;  %v6197_v8 = vpop.f32.mrb[90].mxu0  ;;  %v9968_v55 = vld [vmem:[#allocation13 + $0xf0] sm:$0xff]   ;;  %v9976_v11 = vld [vmem:[#allocation14 + $0x8] sm:$0xff]   ;;  %v9978_v14 = vld [vmem:[#allocation14 + $0x18] sm:$0xff]  }
 0x718   : > { %v6241_v6 = vadd.f32 %v6235_v36, %v5856_v40  ;;  %v6198_v21 = vpop.f32.mrb[91].mxu0  ;;  %v9977_v36 = vld [vmem:[#allocation14 + $0x10] sm:$0xff]   ;;  %v9980_v8 = vld [vmem:[#allocation14 + $0x28] sm:$0xff]  }
 0x719   : > { %v6242_v22 = vadd.f32 %v6237_v42, %v5857_v59  ;;  %v9979_v42 = vld [vmem:[#allocation14 + $0x20] sm:$0xff]   ;;  %v9982_v21 = vld [vmem:[#allocation14 + $0x38] sm:$0xff]  }
 0x735   : > { %v6613_v24 = vpop.f32.mrb[92].mxu0 }
 0x736   : > { %v6614_v25 = vadd.f32 %v6613_v24, %v6572_v57  ;;  %v6615_v27 = vpop.f32.mrb[93].mxu0  ;;  %v10009_v24 = vld [vmem:[%s11319_s11 + $0x10] sm:$0xff]  }
 0x737   : > { %v6616_v28 = vadd.f32 %v6615_v27, %v6574_v38  ;;  %v6617_v29 = vpop.f32.mrb[94].mxu0  ;;  %v10012_v27 = vld [vmem:[%s11319_s11 + $0x28] sm:$0xff]  }
 0x738   : > { %v6620_v13 = vadd.f32 %v6614_v25, %v6241_v6  ;;  %v6618_v44 = vpop.f32.mrb[95].mxu0  ;;  %v9981_v6 = vld [vmem:[#allocation14 + $0x30] sm:$0xff]  }
 0x739   : > { %v6621_v30 = vadd.f32 %v6616_v28, %v6242_v22  ;;  %v10007_v22 = vld [vmem:[%s11319_s11] sm:$0xff]   ;;  %v10010_v25 = vld [vmem:[%s11319_s11 + $0x18] sm:$0xff]  }
 0x73a   : > { %v6634_v31 = vadd.f32 %v6627_v26, %v6620_v13  ;;  %v10011_v26 = vld [vmem:[%s11319_s11 + $0x20] sm:$0xff]  }
 0x73b   : > { %v6635_v34 = vadd.f32 %v6631_v9, %v6621_v30 }
 0x73c   : > { %v6636_v52 = vmax.f32 %v6634_v31, 0.0 }
 0x73d   : > { %v6637_v32 = vmax.f32 %v6635_v34, 0.0 }
 0x73e   : > { %v6638_v35 = vpack.c.bf16 %v6636_v52, %v6636_v52 }
 0x73f   : > { %v6639_v37 = vpack.c.bf16 %v6637_v32, %v6637_v32 }
 0x740   : > { %v6646_v61 = vsel %vm1968_vm2, %v6638_v35, 0 }
 0x741   : > { %8476 = vmatprep.subr.msk.bf16.mxu0 %vm1968_vm2, %v6639_v37 }
 0x742   : > { %6652 = vmatpush1.bf16.msra.mxu0 %v6646_v61 }
 0x743   : > { %8478 = vmatprep.subr.msk.bf16.mxu0 %vm1968_vm2, %v6639_v37  ;;  %v9983_v37 = vld [vmem:[#allocation14 + $0x40] sm:$0xff]  }
 0x745   : > { %8477 = vmatmul.mubr.msk.bf16.vlgmr.msra.gmra.mrb[96].mxu0 %vm6641_vm4, %v6640_v12  ;;  %v9984_v12 = vld [vmem:[#allocation14 + $0x48] sm:$0xff]  }
 0x746   : > { %6698 = vmatpush1.bf16.msra.mxu0 %v6646_v61  ;;  %6729 = vmatprep.mubr.bf16.mxu0 %v10407_v0  ;;  %v9963_v0 = vld [vmem:[#allocation13 + $0x68] sm:$0xff]  }
 0x747   : > { %8710 = vmatprep.subr.bf16.mxu0 %v9944_v63  ;;  %8698 = vmatprep.subr.bf16.mxu1 %v9963_v0  ;;  %v9985_v63 = vld [vmem:[#allocation14 + $0x50] sm:$0xff]   ;;  %v9995_v0 = vld [vmem:[#allocation14 + $0xa0] sm:$0xff]  }
 0x748   : > { %8699 = vmatpush3.bf16.msra.mxu1 %v9965_v33  ;;  %v9997_v33 = vld [vmem:[#allocation14 + $0xb0] sm:$0xff]  }
 0x749   : > { %8700 = vmatprep.subr.bf16.mxu1 %v9967_v53  ;;  %v9999_v53 = vld [vmem:[#allocation14 + $0xc0] sm:$0xff]  }
 0x74c   : > { %8701 = vmatpush3.bf16.msra.mxu1 %v9969_v56  ;;  %v10000_v56 = vld [vmem:[#allocation14 + $0xc8] sm:$0xff]  }
 0x74d   : > { %8479 = vmatmul.mubr.msk.bf16.vlgmr.msra.gmra.mrb[100].mxu0 %vm6641_vm4, %v6693_v16  ;;  %8702 = vmatprep.subr.bf16.mxu1 %v9971_v58  ;;  %v9986_v16 = vld [vmem:[#allocation14 + $0x58] sm:$0xff]  }
 0x74e   : > { %8711 = vmatpush3.bf16.msra.mxu0 %v9946_v39  ;;  %v9987_v39 = vld [vmem:[#allocation14 + $0x60] sm:$0xff]   ;;  %v10002_v58 = vld [vmem:[#allocation14 + $0xd8] sm:$0xff]  }
 0x74f   : > { %8712 = vmatprep.subr.bf16.mxu0 %v9948_v60  ;;  %v9988_v60 = vld [vmem:[#allocation14 + $0x68] sm:$0xff]  }
 0x750   : > { %8703 = vmatpush3.bf16.msra.mxu1 %v9973_v1  ;;  %v10004_v1 = vld [vmem:[#allocation14 + $0xe8] sm:$0xff]  }
 0x751   : > { %8777 = vmatprep.subr.bf16.mxu1 %v10408_v17 }
 0x752   : > { %8713 = vmatpush3.bf16.msra.mxu0 %v9950_v18  ;;  %v9989_v18 = vld [vmem:[#allocation14 + $0x70] sm:$0xff]  }
 0x753   : > { %8714 = vmatprep.subr.bf16.mxu0 %v9952_v19  ;;  %v9990_v19 = vld [vmem:[#allocation14 + $0x78] sm:$0xff]  }
 0x756   : > { %8715 = vmatpush3.bf16.msra.mxu0 %v9954_v46  ;;  %v9991_v46 = vld [vmem:[#allocation14 + $0x80] sm:$0xff]  }
 0x757   : > { %8716 = vmatprep.subr.bf16.mxu0 %v9956_v48 }
 0x75a   : > { %8717 = vmatpush3.bf16.msra.mxu0 %v9958_v49  ;;  %v9992_v49 = vld [vmem:[#allocation14 + $0x88] sm:$0xff]  }
 0x75b   : > { %8718 = vmatprep.subr.bf16.mxu0 %v9960_v51  ;;  %v9993_v51 = vld [vmem:[#allocation14 + $0x90] sm:$0xff]  }
 0x75e   : > { %8719 = vmatpush3.bf16.msra.mxu0 %v9962_v47  ;;  %v9994_v47 = vld [vmem:[#allocation14 + $0x98] sm:$0xff]  }
 0x75f   : > { %8720 = vmatprep.subr.bf16.mxu0 %v9964_v45  ;;  %v9996_v45 = vld [vmem:[#allocation14 + $0xa8] sm:$0xff]  }
 0x762   : > { %8721 = vmatpush3.bf16.msra.mxu0 %v9966_v50  ;;  %v9998_v50 = vld [vmem:[#allocation14 + $0xb8] sm:$0xff]  }
 0x763   : > { %8722 = vmatprep.subr.bf16.mxu0 %v9968_v55 }
 0x766   : > { %8723 = vmatpush3.bf16.msra.mxu0 %v9970_v43  ;;  %v10001_v43 = vld [vmem:[#allocation14 + $0xd0] sm:$0xff]  }
 0x767   : > { %8724 = vmatprep.subr.bf16.mxu0 %v9972_v62  ;;  %v10003_v62 = vld [vmem:[#allocation14 + $0xe0] sm:$0xff]  }
 0x76a   : > { %8725 = vmatpush3.bf16.msra.mxu0 %v9974_v2  ;;  %v10005_v2 = vld [vmem:[#allocation14 + $0xf0] sm:$0xff]  }
 0x76b   : > { %8857 = vmatprep.subr.bf16.mxu0 %v10408_v17 }
 0x818   : > { %v6685_v4 = vpop.f32.mrb[96].mxu0 }
 0x819   : > { %v6687_v5 = vpop.f32.mrb[97].mxu0 }
 0x81a   : > { %v6689_v3 = vpop.f32.mrb[98].mxu0 }
 0x81b   : > { %v6690_v40 = vpop.f32.mrb[99].mxu0  ;;  %v10013_v3 = vld [vmem:[%s11319_s11 + $0x30] sm:$0xff]  }
 0x81c   : > { %v10014_v40 = vld [vmem:[%s11319_s11 + $0x38] sm:$0xff]  }
 0x820   : > { %v6731_v54 = vpop.f32.mrb[100].mxu0 }
 0x821   : > { %v6738_v41 = vmax.f32 %v6685_v4, %v6731_v54  ;;  %v6733_v59 = vpop.f32.mrb[101].mxu0  ;;  %v10006_v4 = vld [vmem:[#allocation14 + $0xf8] sm:$0xff]   ;;  %v7080_v54 = vld [vmem:[#allocation16] sm:$0x1] }
 0x822   : > { %v6739_v7 = vmax.f32 %v6687_v5, %v6733_v59  ;;  %v6735_v10 = vpop.f32.mrb[102].mxu0 }
 0x823   : > { %v6736_v57 = vpop.f32.mrb[103].mxu0  ;;  %v6740_v20 = vpack.c.bf16 %v6738_v41, %v6738_v41 }
 0x824   : > { %v6741_v38 = vpack.c.bf16 %v6739_v7, %v6739_v7 }
 0x826   : > { %6902 = vmatprep.mubr.bf16.mxu1 %v6741_v38  ;;  %7071 = vmatprep.mubr.bf16.mxu0 %v6741_v38 }
 0x827   : > { %6903 = vmatmul.mubr.bf16.vlgmr.msra.gmra.mrb[76].mxu1 %v6740_v20  ;;  %7072 = vmatmul.mubr.bf16.vlgmr.msra.gmra.mrb[104].mxu0 %v6740_v20  ;;  %v7532_v20 = vld [vmem:[#allocation17] sm:$0x1] }
 0x828   : > { %8778 = vmatpush3.bf16.msra.mxu1 %v9975_v15  ;;  %8793 = vmatprep.mubr.msk.bf16.mxu1 %vm10409_vm5, %v10408_v17 }
 0x829   : > { %8779 = vmatprep.subr.bf16.mxu1 %v10408_v17  ;;  %8873 = vmatprep.mubr.msk.bf16.mxu0 %vm10409_vm5, %v10408_v17 }
 0x82a   : > { %8858 = vmatpush3.bf16.msra.mxu0 %v10007_v22 }
 0x82b   : > { %8859 = vmatprep.subr.bf16.mxu0 %v10408_v17 }
 0x82c   : > { %8780 = vmatpush3.bf16.msra.mxu1 %v9976_v11 }
 0x82d   : > { %8781 = vmatprep.subr.bf16.mxu1 %v10408_v17 }
 0x82e   : > { %8860 = vmatpush3.bf16.msra.mxu0 %v10008_v23 }
 0x82f   : > { %8861 = vmatprep.subr.bf16.mxu0 %v10408_v17 }
 0x830   : > { %8782 = vmatpush3.bf16.msra.mxu1 %v9977_v36 }
 0x831   : > { %8783 = vmatprep.subr.bf16.mxu1 %v10408_v17 }
 0x832   : > { %8862 = vmatpush3.bf16.msra.mxu0 %v10009_v24 }
 0x833   : > { %8863 = vmatprep.subr.bf16.mxu0 %v10408_v17 }
 0x834   : > { %8784 = vmatpush3.bf16.msra.mxu1 %v9978_v14 }
 0x835   : > { %8785 = vmatprep.subr.bf16.mxu1 %v10408_v17 }
 0x836   : > { %8864 = vmatpush3.bf16.msra.mxu0 %v10010_v25 }
 0x837   : > { %8865 = vmatprep.subr.bf16.mxu0 %v10408_v17 }
 0x838   : > { %8786 = vmatpush3.bf16.msra.mxu1 %v9979_v42 }
 0x839   : > { %8787 = vmatprep.subr.bf16.mxu1 %v10408_v17 }
 0x83a   : > { %8866 = vmatpush3.bf16.msra.mxu0 %v10011_v26 }
 0x83b   : > { %8867 = vmatprep.subr.bf16.mxu0 %v10408_v17 }
 0x83c   : > { %8788 = vmatpush3.bf16.msra.mxu1 %v9980_v8 }
 0x83d   : > { %8789 = vmatprep.subr.bf16.mxu1 %v10408_v17 }
 0x83e   : > { %8868 = vmatpush3.bf16.msra.mxu0 %v10012_v27 }
 0x83f   : > { %8869 = vmatprep.subr.bf16.mxu0 %v10408_v17 }
 0x840   : > { %8790 = vmatpush3.bf16.msra.mxu1 %v9981_v6 }
 0x841   : > { %8791 = vmatprep.subr.bf16.mxu1 %v10408_v17 }
 0x842   : > { %8870 = vmatpush3.bf16.msra.mxu0 %v10013_v3 }
 0x843   : > { %8871 = vmatprep.subr.bf16.mxu0 %v10408_v17 }
 0x844   : > { %8792 = vmatpush3.bf16.msra.mxu1 %v9982_v21 }
 0x845   : > { %8797 = vmatprep.subr.bf16.mxu1 %v10408_v17 }
 0x846   : > { %8872 = vmatpush3.bf16.msra.mxu0 %v10014_v40 }
 0x8fa   : > { %v8704_v28 = vpop.f32.mrb[76].mxu1  ;;  %v8726_v9 = vpop.f32.mrb[104].mxu0 }
 0x8fb   : > { %v8705_v29 = vpop.f32.mrb[77].mxu1  ;;  %v8727_v13 = vpop.f32.mrb[105].mxu0 }
 0x8fc   : > { %v8706_v44 = vadd.f32 %v8705_v29, %v8704_v28  ;;  %v8728_v30 = vadd.f32 %v8727_v13, %v8726_v9  ;;  %v8707_v31 = vpop.f32.mrb[78].mxu1  ;;  %v8729_v34 = vpop.f32.mrb[106].mxu0 }
 0x8fd   : > { %v8708_v52 = vpop.f32.mrb[79].mxu1  ;;  %v8730_v32 = vpop.f32.mrb[107].mxu0 }
 0x8fe   : > { %v7079_v35 = vmax.f32 %v8706_v44, %v8728_v30 }
 0x900   : > { %v11217_v61 = vpack.c.bf16 %v7079_v35, %v7079_v35 }
 0x902   : > { %8794 = vmatmul.mubr.bf16.vlgmr.msra.gmra.mrb[80].mxu1 %v11217_v61  ;;  %v7205_v48 = vshrl.u32 %v11217_v61, 16  ;;  %v7315_v55 = vrot.slane %v11217_v61, 1 }
 0x903   : > { %8798 = vmatpush3.bf16.msra.mxu1 %v9983_v37  ;;  %8813 = vmatprep.mubr.msk.bf16.mxu1 %vm10409_vm5, %v10408_v17 }
 0x904   : > { %8799 = vmatprep.subr.bf16.mxu1 %v10408_v17  ;;  %v7423_v5 = vrot.slane %v7205_v48, 1 }
 0x907   : > { %8800 = vmatpush3.bf16.msra.mxu1 %v9984_v12 }
 0x908   : > { %8801 = vmatprep.subr.bf16.mxu1 %v10408_v17 }
 0x90b   : > { %8802 = vmatpush3.bf16.msra.mxu1 %v9985_v63 }
 0x90c   : > { %8803 = vmatprep.subr.bf16.mxu1 %v10408_v17 }
 0x90f   : > { %8804 = vmatpush3.bf16.msra.mxu1 %v9986_v16 }
 0x910   : > { %8805 = vmatprep.subr.bf16.mxu1 %v10408_v17 }
 0x913   : > { %8806 = vmatpush3.bf16.msra.mxu1 %v9987_v39 }
 0x914   : > { %8807 = vmatprep.subr.bf16.mxu1 %v10408_v17 }
 0x917   : > { %8808 = vmatpush3.bf16.msra.mxu1 %v9988_v60 }
 0x918   : > { %8809 = vmatprep.subr.bf16.mxu1 %v10408_v17 }
 0x91b   : > { %8810 = vmatpush3.bf16.msra.mxu1 %v9989_v18 }
 0x91c   : > { %8811 = vmatprep.subr.bf16.mxu1 %v10408_v17 }
 0x91f   : > { %8812 = vmatpush3.bf16.msra.mxu1 %v9990_v19 }
 0x920   : > { %8817 = vmatprep.subr.bf16.mxu1 %v10408_v17 }
 0x922   : > { %8814 = vmatmul.mubr.bf16.vlgmr.msra.gmra.mrb[80].mxu1 %v7205_v48 }
 0x923   : > { %8818 = vmatpush3.bf16.msra.mxu1 %v9991_v46  ;;  %8833 = vmatprep.mubr.msk.bf16.mxu1 %vm10409_vm5, %v10408_v17 }
 0x924   : > { %8819 = vmatprep.subr.bf16.mxu1 %v10408_v17 }
 0x927   : > { %8820 = vmatpush3.bf16.msra.mxu1 %v9992_v49 }
 0x928   : > { %8821 = vmatprep.subr.bf16.mxu1 %v10408_v17 }
 0x92b   : > { %8822 = vmatpush3.bf16.msra.mxu1 %v9993_v51 }
 0x92c   : > { %8823 = vmatprep.subr.bf16.mxu1 %v10408_v17 }
 0x92f   : > { %8824 = vmatpush3.bf16.msra.mxu1 %v9994_v47 }
 0x930   : > { %8825 = vmatprep.subr.bf16.mxu1 %v10408_v17 }
 0x933   : > { %8826 = vmatpush3.bf16.msra.mxu1 %v9995_v0 }
 0x934   : > { %8827 = vmatprep.subr.bf16.mxu1 %v10408_v17 }
 0x937   : > { %8828 = vmatpush3.bf16.msra.mxu1 %v9996_v45 }
 0x938   : > { %8829 = vmatprep.subr.bf16.mxu1 %v10408_v17 }
 0x93b   : > { %8830 = vmatpush3.bf16.msra.mxu1 %v9997_v33 }
 0x93c   : > { %8831 = vmatprep.subr.bf16.mxu1 %v10408_v17 }
 0x93f   : > { %8832 = vmatpush3.bf16.msra.mxu1 %v9998_v50 }
 0x940   : > { %8837 = vmatprep.subr.bf16.mxu1 %v10408_v17 }
 0x942   : > { %8834 = vmatmul.mubr.bf16.vlgmr.msra.gmra.mrb[80].mxu1 %v7315_v55 }
 0x943   : > { %8838 = vmatpush3.bf16.msra.mxu1 %v9999_v53  ;;  %8853 = vmatprep.mubr.msk.bf16.mxu1 %vm10409_vm5, %v10408_v17 }
 0x944   : > { %8839 = vmatprep.subr.bf16.mxu1 %v10408_v17 }
 0x947   : > { %8840 = vmatpush3.bf16.msra.mxu1 %v10000_v56 }
 0x948   : > { %8841 = vmatprep.subr.bf16.mxu1 %v10408_v17 }
 0x94b   : > { %8842 = vmatpush3.bf16.msra.mxu1 %v10001_v43 }
 0x94c   : > { %8843 = vmatprep.subr.bf16.mxu1 %v10408_v17 }
 0x94f   : > { %8844 = vmatpush3.bf16.msra.mxu1 %v10002_v58 }
 0x950   : > { %8845 = vmatprep.subr.bf16.mxu1 %v10408_v17 }
 0x953   : > { %8846 = vmatpush3.bf16.msra.mxu1 %v10003_v62 }
 0x954   : > { %8847 = vmatprep.subr.bf16.mxu1 %v10408_v17 }
 0x957   : > { %8848 = vmatpush3.bf16.msra.mxu1 %v10004_v1 }
 0x958   : > { %8849 = vmatprep.subr.bf16.mxu1 %v10408_v17 }
 0x95b   : > { %8850 = vmatpush3.bf16.msra.mxu1 %v10005_v2 }
 0x95c   : > { %8851 = vmatprep.subr.bf16.mxu1 %v10408_v17 }
 0x95f   : > { %8852 = vmatpush3.bf16.msra.mxu1 %v10006_v4 }
 0x962   : > { %8854 = vmatmul.mubr.bf16.vlgmr.msra.gmra.mrb[80].mxu1 %v7423_v5 }
 0xa35   : > { %v7507_v41 = vpop.f32.mrb[80].mxu1 }
 0xa36   : > { %v8881_v59 = vadd.f32 %v7507_v41, %v7080_v54  ;;  %v8855_v7 = vpop.f32.mrb[81].mxu1 }
 0xa37   : > { %v7510_v10 = vpop.f32.mrb[82].mxu1 }
 0xa38   : > { %v7514_v57 = vmax.f32 %v8881_v59, 0.0  ;;  %v8856_v38 = vpop.f32.mrb[83].mxu1 }
 0xa3a   : > { %v7515_v15 = vpack.c.bf16 %v7514_v57, %v7514_v57 }
 0xa3c   : > { %8874 = vmatmul.mubr.bf16.vlgmr.msra.gmra.mrb[108].mxu0 %v7515_v15 }
 0xb0f   : > { %v7615_v11 = vpop.f32.mrb[108].mxu0 }
 0xb10   : > { %v7616_v36 = vadd.f32 %v7615_v11, %v7532_v20  ;;  %v8875_v17 = vpop.f32.mrb[109].mxu0 }
 0xb11   : > { %v7618_v14 = vpop.f32.mrb[110].mxu0 }
 0xb12   : > { %v8876_v42 = vpop.f32.mrb[111].mxu0  ;;  %v7622_v8 = vsel %vm7621_vm6, %v7616_v36, -inf }
 0xb13   : > { %7623 = vmax.xlane.f32.xlu0 %v7622_v8 }
 0xba0   : > { %v7624_v6 = vpop.xlane.xlu0 %7623 }
 0xba1   : > { %v7625_v21 = vsub.f32 %v7616_v36, %v7624_v6 }
 0xba3   : > { %v7626_v22 = vmul.f32 1.442695, %v7625_v21 }
 0xba5   : > { %10015 = vpow2.f32 %v7626_v22 }
 0xbaf   : > { %v10016_v23 = vpop.eup %10015 }
 0xbb0   : > { %v7628_v24 = vsel %vm7621_vm6, %v10016_v23, 0.0 }
 0xbb1   : > { %7629 = vadd.xlane.f32.xlu0 %v7628_v24 }
 0xc3e   : > { %v7630_v25 = vpop.xlane.xlu0 %7629 }
 0xc3f   : > { %10017 = vlog2.f32 %v7630_v25 }
 0xc49   : > { %v10018_v26 = vpop.eup %10017 }
 0xc4a   : > { %v7632_v27 = vmul.f32 0.6931472, %v10018_v26 }
 0xc4c   : > { %v7633_v28 = vsub.f32 %v7625_v21, %v7632_v27 }
 0xc4e   : > { %7634 = vst.msk [vmem:[%s570_s26] sm:$0x1] %vm7621_vm6, %v7633_v28 }
 0xc4f   : > { %10312 = shalt.err (!%p10309_p10)
}
 0xc50   : > { %s10313_s23 = scalar_lea.hbm %s11265_s22, 16  ;;  %s10317_s17 = scalar_lea.hbm %s11369_s14, 32 }
 0xc51   : > { %p10314_p2 = scmp.ne.s32.totalorder %s11265_s22, %s10313_s23  ;;  %p10318_p7 = scmp.lt.u32.totalorder %s11265_s22, %s11369_s14 }
 0xc52   : > { %p10319_p8 = scmp.lt.u32.totalorder %s10317_s17, %s10313_s23  ;;  %p10321_p13 = scmp.lt.u32.totalorder %s10313_s23, %s11265_s22 }
 0xc53   : > { %p10315_p3 = pnand %p10314_p2, %p11370_p0 }
 0xc54   : > { %p10320_p11 = por %p10319_p8, %p10318_p7 }
 0xc55   : > { %p10316_p4 = pneg %p10315_p3 }
 0xc56   : > { %p10322_p1 = por %p10321_p13, %p10320_p11 }
 0xc58   : > { %p10323_p6 = pnand %p10322_p1, %p10316_p4 }
 0xc5a   : > { %10326 = shalt.err (!%p10323_p6)
}
 0xc5b   : > { %8994 = dma.vmem_to_hbm [thread:$0]  (%p11370_p0), %s11267_s13, 16, %s11265_s22, %s7636_s21  }
 0xc5c PF: > { %s11371_s25 = sld [smem:[#allocation30_spill]]  ;;  %s11372_s26 = sld [smem:[#allocation27_spill]] }
 0xc5d   : > { %s11373_s19 = sld [smem:[#allocation34_spill]] }
 0xc62   : > { %p9051_p5 = scmp.ge.s32.totalorder %s11371_s25, 2  ;;  %s7660_s15 = sand.u32 1, %s11372_s26  }
 0xc63   : > { %p11374_p9 = scmp.ne.s32.totalorder %s11373_s19, 0  ;;  %s7661_s27 = scalar_lea.sflag [#allocation4], %s7660_s15 }
 0xc65   : > { %p9028_p12 = pnand %p9051_p5, %p11374_p9 }
 0xc67   : > { %10368 = dma.done.wait (!%p9028_p12), %s7661_s27, 16  }
 0xc68   : > { %10370 = vsyncadd (!%p9028_p12), %s7661_s27, 4294967280  ;;  %s11375_s28 = sld [smem:[#allocation31_spill]]  ;;  %s11376_s25 = sld [smem:[#allocation28_spill]] }
 0xc69   : > { %s11377_s26 = sld [smem:[#allocation29_spill]]  ;;  %s11378_s27 = sld [smem:[#allocation32_spill]] }
 0xc6e   : > { %p29_p10 = scmp.ge.s32.totalorder %s11375_s28, 4  }
 0xc70   :  { %31 = sbr.rel (!%p29_p10) target bundleno = 13 (0xd), region = 163 }
 0xc77   :  { %7665 = vsyncpa [#allocation3], 1 }
 0xc78   :  { %7667 = vsyncpa [#allocation3 + $0x1], 1 }
 0xc79   :  { %7668 = vsyncpa [#allocation6], 1 }
 0xc7a   :  { %7669 = vsyncpa [#allocation9], 1 }
 0xc7b   :  { %7670 = vsyncpa [#allocation12], 1 }
 0xc7c   :  { %7671 = vsyncpa [#allocation15], 1 }
 0xc7d   :  { %7672 = vsyncpa [#allocation18], 1 }
 0xc7e   :  { %7673 = vsyncpa [#allocation4], 1 }
 0xc7f   :  { %7675 = vsyncpa [#allocation4 + $0x1], 1 }

</bundles_post_ra>
